<compile_context>
chip_gen: v6e
topology: v6e:2x2x1
jax: 0.10.0
libtpu: 0.0.40
codegen_flags: <defaults>
</compile_context>

<pallas_src>
import functools

import jax
import jax.numpy as jnp
from jax import lax
from jax.experimental import pallas as pl
from jax.experimental.pallas import tpu as pltpu


def _transformer_layer_kernel(
    x_ref,                      # (1, N, C)
    ln1_w_ref, ln1_b_ref,       # (1, C), (1, C)
    wq_ref,                     # (C, C)      to_queries (bias=False)
    wkv_ref,                    # (C, 2C)     to_keys_values (bias=False)
    wproj_ref, bproj_ref,       # (C, C), (1, C)
    ln2_w_ref, ln2_b_ref,       # (1, C), (1, C)
    w1_ref, b1_ref,             # (C, Hm), (1, Hm)
    w2_ref, b2_ref,             # (Hm, C), (1, C)
    o_ref,                      # (1, N, C)
    *, num_heads: int, head_dim: int, scale: float, eps: float):
    C = num_heads * head_dim
    x = x_ref[0].astype(jnp.float32)                                     # (N, C)

    def layer_norm(v, w_ref, b_ref):
        mu = jnp.mean(v, axis=-1, keepdims=True)
        ctr = v - mu
        var = jnp.mean(ctr * ctr, axis=-1, keepdims=True)
        return ctr * lax.rsqrt(var + eps) * w_ref[...] + b_ref[...]

    # ---------------- attention block: x = x + proj(MHA(norm1(x))) ----------------
    xn = layer_norm(x, ln1_w_ref, ln1_b_ref)
    q = jnp.dot(xn, wq_ref[...], preferred_element_type=jnp.float32)     # (N, C)
    kv = jnp.dot(xn, wkv_ref[...], preferred_element_type=jnp.float32)   # (N, 2C)
    k = kv[:, :C]                                                        # keys
    v = kv[:, C:]                                                        # values

    attn_out = None
    for h in range(num_heads):                     # static unroll; slices lane-aligned
        lo, hi = h * head_dim, (h + 1) * head_dim
        qh, kh, vh = q[:, lo:hi], k[:, lo:hi], v[:, lo:hi]               # (N, D)
        # scores = qh @ kh^T  (contract head_dim), softmax over keys
        s = lax.dot_general(qh, kh, (((1,), (1,)), ((), ())),
                            preferred_element_type=jnp.float32) * scale  # (N, N)
        s = s - jnp.max(s, axis=-1, keepdims=True)
        p = jnp.exp(s)
        p = p / jnp.sum(p, axis=-1, keepdims=True)
        oh = jnp.dot(p, vh, preferred_element_type=jnp.float32)          # (N, D)
        # fold the output projection per head: concat(out_h) @ Wp == sum_h out_h @ Wp[h]
        contrib = jnp.dot(oh, wproj_ref[lo:hi, :],
                          preferred_element_type=jnp.float32)            # (N, C)
        attn_out = contrib if attn_out is None else attn_out + contrib

    x = x + attn_out + bproj_ref[...]                                    # residual 1

    # ---------------- MLP block: x = x + fc2(relu(fc1(norm2(x)))) ----------------
    xn2 = layer_norm(x, ln2_w_ref, ln2_b_ref)
    h1 = jnp.dot(xn2, w1_ref[...], preferred_element_type=jnp.float32) + b1_ref[...]
    h1 = jnp.maximum(h1, 0.0)                                            # relu
    h2 = jnp.dot(h1, w2_ref[...], preferred_element_type=jnp.float32) + b2_ref[...]

    o_ref[0] = (x + h2).astype(o_ref.dtype)                              # residual 2


def transformer_layer_forward(params, x: jax.Array) -> jax.Array:
    B, N, C = x.shape
    num_heads = params["num_heads"]
    head_dim = C // num_heads
    Hm = params["w1"].shape[1]

    kernel = functools.partial(
        _transformer_layer_kernel,
        num_heads=num_heads, head_dim=head_dim,
        scale=float(head_dim) ** -0.5, eps=1e-5)

    _w = lambda b: (0, 0)        # weights: one full-array block, constant over the grid
    in_specs = [
        pl.BlockSpec((1, N, C), lambda b: (b, 0, 0)),   # x
        pl.BlockSpec((1, C), _w), pl.BlockSpec((1, C), _w),          # ln1 w,b
        pl.BlockSpec((C, C), _w),                                    # wq
        pl.BlockSpec((C, 2 * C), _w),                                # wkv
        pl.BlockSpec((C, C), _w), pl.BlockSpec((1, C), _w),          # wproj, bproj
        pl.BlockSpec((1, C), _w), pl.BlockSpec((1, C), _w),          # ln2 w,b
        pl.BlockSpec((C, Hm), _w), pl.BlockSpec((1, Hm), _w),        # w1, b1
        pl.BlockSpec((Hm, C), _w), pl.BlockSpec((1, C), _w),         # w2, b2
    ]

    return pl.pallas_call(
        kernel,
        out_shape=jax.ShapeDtypeStruct((B, N, C), x.dtype),
        grid=(B,),
        in_specs=in_specs,
        out_specs=pl.BlockSpec((1, N, C), lambda b: (b, 0, 0)),
        compiler_params=pltpu.CompilerParams(
            dimension_semantics=("parallel",)),   # shards batch across v7x's 2 TCs
    )(x, params["ln1_w"], params["ln1_b"], params["wq"], params["wkv"],
      params["wproj"], params["bproj"], params["ln2_w"], params["ln2_b"],
      params["w1"], params["b1"], params["w2"], params["b2"])


def init_transformer_layer_params(key, dim_self: int, num_heads: int,
                                  mlp_ratio: float = 4.0):
    """Mirrors TransformerLayer(dim_self, dim_ref=dim_self, num_heads, bias=False).
    Linear weights are stored pre-transposed as (in, out) so kernels compute x @ W + b."""
    C = dim_self
    Hm = int(C * mlp_ratio)
    ks = jax.random.split(key, 12)

    def linear_w(k, d_in, d_out):
        bound = 1.0 / (d_in ** 0.5)
        return jax.random.uniform(k, (d_in, d_out), minval=-bound, maxval=bound,
                                  dtype=jnp.float32)

    def linear_b(k, d_in, d_out):
        bound = 1.0 / (d_in ** 0.5)
        return jax.random.uniform(k, (1, d_out), minval=-bound, maxval=bound,
                                  dtype=jnp.float32)

    return dict(
        num_heads=num_heads,
        # LayerNorm params (randomized slightly for a meaningful test)
        ln1_w=1.0 + 0.1 * jax.random.normal(ks[0], (1, C), jnp.float32),
        ln1_b=0.1 * jax.random.normal(ks[1], (1, C), jnp.float32),
        # MultiHeadAttention (bias=False for to_queries / to_keys_values)
        wq=linear_w(ks[2], C, C),
        wkv=linear_w(ks[3], C, 2 * C),
        wproj=linear_w(ks[4], C, C),
        bproj=linear_b(ks[5], C, C),
        ln2_w=1.0 + 0.1 * jax.random.normal(ks[6], (1, C), jnp.float32),
        ln2_b=0.1 * jax.random.normal(ks[7], (1, C), jnp.float32),
        # MlpTransformer (fc1 / fc2 with bias)
        w1=linear_w(ks[8], C, Hm),
        b1=linear_b(ks[9], C, Hm),
        w2=linear_w(ks[10], Hm, C),
        b2=linear_b(ks[11], Hm, C),
    )


def transformer_layer_reference(params, x: jax.Array, eps: float = 1e-5) -> jax.Array:
    """Pure-jnp reference mirroring the PyTorch forward exactly."""
    hp = lax.Precision.HIGHEST
    B, N, C = x.shape
    H = params["num_heads"]
    D = C // H
    scale = float(D) ** -0.5

    def layer_norm(v, w, b):
        mu = v.mean(-1, keepdims=True)
        ctr = v - mu
        var = (ctr * ctr).mean(-1, keepdims=True)
        return ctr * lax.rsqrt(var + eps) * w + b

    xn = layer_norm(x, params["ln1_w"], params["ln1_b"])
    q = jnp.einsum("bnc,cd->bnd", xn, params["wq"], precision=hp).reshape(B, N, H, D)
    kv = jnp.einsum("bnc,cd->bnd", xn, params["wkv"], precision=hp).reshape(B, N, 2, H, D)
    k, v = kv[:, :, 0], kv[:, :, 1]
    att = jnp.einsum("bnhd,bmhd->bnmh", q, k, precision=hp) * scale
    att = att - att.max(axis=2, keepdims=True)
    att = jnp.exp(att)
    att = att / att.sum(axis=2, keepdims=True)
    out = jnp.einsum("bnmh,bmhd->bnhd", att, v, precision=hp).reshape(B, N, C)
    out = jnp.einsum("bnc,cd->bnd", out, params["wproj"], precision=hp) + params["bproj"]
    x = x + out
    xn2 = layer_norm(x, params["ln2_w"], params["ln2_b"])
    h = jnp.einsum("bnc,ch->bnh", xn2, params["w1"], precision=hp) + params["b1"]
    h = jnp.maximum(h, 0.0)
    h = jnp.einsum("bnh,hc->bnc", h, params["w2"], precision=hp) + params["b2"]
    return x + h


if __name__ == "__main__":
    key = jax.random.PRNGKey(0)
    dim_self = 256      # lane-aligned model dim
    num_heads = 2       # head_dim = 128 -> every per-head slice is a full lane tile
    mlp_ratio = 4.0     # mlp hidden = 1024
    batch, seq = 2, 8

    pkey, xkey = jax.random.split(key)
    params = init_transformer_layer_params(pkey, dim_self, num_heads, mlp_ratio)
    x = jax.random.normal(xkey, (batch, seq, dim_self), dtype=jnp.float32)

    out = transformer_layer_forward(params, x)
    out = jax.block_until_ready(out)

    ref = transformer_layer_reference(params, x)
    assert out.shape == (batch, seq, dim_self)
    assert jnp.allclose(out, ref, atol=1e-3, rtol=1e-3), "mismatch vs reference"

    print("KERNEL_OK")
</pallas_src>

<mosaic_0001>
module attributes {stable_mosaic.version = 11 : i64} {
  func.func @_transformer_layer_kernel(%arg0: i32, %arg1: memref<1x8x256xf32, #tpu.memory_space<vmem>>, %arg2: memref<1x256xf32, #tpu.memory_space<vmem>>, %arg3: memref<1x256xf32, #tpu.memory_space<vmem>>, %arg4: memref<256x256xf32, #tpu.memory_space<vmem>>, %arg5: memref<256x512xf32, #tpu.memory_space<vmem>>, %arg6: memref<256x256xf32, #tpu.memory_space<vmem>>, %arg7: memref<1x256xf32, #tpu.memory_space<vmem>>, %arg8: memref<1x256xf32, #tpu.memory_space<vmem>>, %arg9: memref<1x256xf32, #tpu.memory_space<vmem>>, %arg10: memref<256x1024xf32, #tpu.memory_space<vmem>>, %arg11: memref<1x1024xf32, #tpu.memory_space<vmem>>, %arg12: memref<1024x256xf32, #tpu.memory_space<vmem>>, %arg13: memref<1x256xf32, #tpu.memory_space<vmem>>, %arg14: memref<1x8x256xf32, #tpu.memory_space<vmem>>) attributes {dimension_semantics = [#tpu.dimension_semantics<parallel>], iteration_bounds = array<i64: 2>, scalar_prefetch = 0 : i64, scratch_operands = 0 : i64, tpu.core_type = #tpu.core_type<tc>, window_params = [{transform_indices = @transform_0, window_bounds = array<i64: 1, 8, 256>}, {pipeline_mode = #tpu.pipeline_mode<synchronous>, transform_indices = @transform_1, window_bounds = array<i64: 1, 256>}, {pipeline_mode = #tpu.pipeline_mode<synchronous>, transform_indices = @transform_2, window_bounds = array<i64: 1, 256>}, {pipeline_mode = #tpu.pipeline_mode<synchronous>, transform_indices = @transform_3, window_bounds = array<i64: 256, 256>}, {pipeline_mode = #tpu.pipeline_mode<synchronous>, transform_indices = @transform_4, window_bounds = array<i64: 256, 512>}, {pipeline_mode = #tpu.pipeline_mode<synchronous>, transform_indices = @transform_5, window_bounds = array<i64: 256, 256>}, {pipeline_mode = #tpu.pipeline_mode<synchronous>, transform_indices = @transform_6, window_bounds = array<i64: 1, 256>}, {pipeline_mode = #tpu.pipeline_mode<synchronous>, transform_indices = @transform_7, window_bounds = array<i64: 1, 256>}, {pipeline_mode = #tpu.pipeline_mode<synchronous>, transform_indices = @transform_8, window_bounds = array<i64: 1, 256>}, {pipeline_mode = #tpu.pipeline_mode<synchronous>, transform_indices = @transform_9, window_bounds = array<i64: 256, 1024>}, {pipeline_mode = #tpu.pipeline_mode<synchronous>, transform_indices = @transform_10, window_bounds = array<i64: 1, 1024>}, {pipeline_mode = #tpu.pipeline_mode<synchronous>, transform_indices = @transform_11, window_bounds = array<i64: 1024, 256>}, {pipeline_mode = #tpu.pipeline_mode<synchronous>, transform_indices = @transform_12, window_bounds = array<i64: 1, 256>}, {transform_indices = @transform_13, window_bounds = array<i64: 1, 8, 256>}]} {
    %c0 = arith.constant 0 : index
    %c0_0 = arith.constant 0 : index
    %c0_1 = arith.constant 0 : index
    %0 = vector.load %arg1[%c0, %c0_0, %c0_1] : memref<1x8x256xf32, #tpu.memory_space<vmem>>, vector<1x8x256xf32>
    %1 = vector.shape_cast %0 : vector<1x8x256xf32> to vector<8x256xf32>
    %cst = arith.constant dense<0.000000e+00> : vector<8xf32>
    %2 = vector.multi_reduction <add>, %1, %cst [1] : vector<8x256xf32> to vector<8xf32>
    %3 = vector.shape_cast %2 : vector<8xf32> to vector<8x1xf32>
    %cst_2 = arith.constant 2.560000e+02 : f32
    %4 = vector.broadcast %cst_2 : f32 to vector<8x1xf32>
    %5 = arith.divf %3, %4 : vector<8x1xf32>
    %6 = vector.broadcast %5 : vector<8x1xf32> to vector<8x256xf32>
    %7 = arith.subf %1, %6 : vector<8x256xf32>
    %8 = arith.mulf %7, %7 : vector<8x256xf32>
    %cst_3 = arith.constant dense<0.000000e+00> : vector<8xf32>
    %9 = vector.multi_reduction <add>, %8, %cst_3 [1] : vector<8x256xf32> to vector<8xf32>
    %10 = vector.shape_cast %9 : vector<8xf32> to vector<8x1xf32>
    %cst_4 = arith.constant 2.560000e+02 : f32
    %11 = vector.broadcast %cst_4 : f32 to vector<8x1xf32>
    %12 = arith.divf %10, %11 : vector<8x1xf32>
    %cst_5 = arith.constant 9.99999974E-6 : f32
    %13 = vector.broadcast %cst_5 : f32 to vector<8x1xf32>
    %14 = arith.addf %12, %13 : vector<8x1xf32>
    %15 = math.rsqrt %14 : vector<8x1xf32>
    %16 = vector.broadcast %15 : vector<8x1xf32> to vector<8x256xf32>
    %17 = arith.mulf %7, %16 : vector<8x256xf32>
    %c0_6 = arith.constant 0 : index
    %c0_7 = arith.constant 0 : index
    %18 = vector.load %arg2[%c0_6, %c0_7] : memref<1x256xf32, #tpu.memory_space<vmem>>, vector<1x256xf32>
    %19 = vector.broadcast %18 : vector<1x256xf32> to vector<8x256xf32>
    %20 = arith.mulf %17, %19 : vector<8x256xf32>
    %c0_8 = arith.constant 0 : index
    %c0_9 = arith.constant 0 : index
    %21 = vector.load %arg3[%c0_8, %c0_9] : memref<1x256xf32, #tpu.memory_space<vmem>>, vector<1x256xf32>
    %22 = vector.broadcast %21 : vector<1x256xf32> to vector<8x256xf32>
    %23 = arith.addf %20, %22 : vector<8x256xf32>
    %c0_10 = arith.constant 0 : index
    %c0_11 = arith.constant 0 : index
    %24 = vector.load %arg4[%c0_10, %c0_11] : memref<256x256xf32, #tpu.memory_space<vmem>>, vector<256x256xf32>
    %cst_12 = arith.constant dense<0.000000e+00> : vector<8x256xf32>
    %25 = tpu.matmul %23, %24, %cst_12 {dimension_numbers = #tpu.dot_dimension_numbers<[1], [0], [0], [1], [0, 0, 1, 1], [], []>} : vector<8x256xf32>, vector<256x256xf32>, vector<8x256xf32> -> vector<8x256xf32>
    %c0_13 = arith.constant 0 : index
    %c0_14 = arith.constant 0 : index
    %26 = vector.load %arg5[%c0_13, %c0_14] : memref<256x512xf32, #tpu.memory_space<vmem>>, vector<256x512xf32>
    %cst_15 = arith.constant dense<0.000000e+00> : vector<8x512xf32>
    %27 = tpu.matmul %23, %26, %cst_15 {dimension_numbers = #tpu.dot_dimension_numbers<[1], [0], [0], [1], [0, 0, 1, 1], [], []>} : vector<8x256xf32>, vector<256x512xf32>, vector<8x512xf32> -> vector<8x512xf32>
    %28 = vector.extract_strided_slice %27 {offsets = [0, 0], sizes = [8, 256], strides = [1, 1]} : vector<8x512xf32> to vector<8x256xf32>
    %29 = vector.extract_strided_slice %27 {offsets = [0, 256], sizes = [8, 256], strides = [1, 1]} : vector<8x512xf32> to vector<8x256xf32>
    %30 = vector.extract_strided_slice %25 {offsets = [0, 0], sizes = [8, 128], strides = [1, 1]} : vector<8x256xf32> to vector<8x128xf32>
    %31 = vector.extract_strided_slice %28 {offsets = [0, 0], sizes = [8, 128], strides = [1, 1]} : vector<8x256xf32> to vector<8x128xf32>
    %32 = vector.extract_strided_slice %29 {offsets = [0, 0], sizes = [8, 128], strides = [1, 1]} : vector<8x256xf32> to vector<8x128xf32>
    %cst_16 = arith.constant dense<0.000000e+00> : vector<8x8xf32>
    %33 = tpu.matmul %30, %31, %cst_16 {dimension_numbers = #tpu.dot_dimension_numbers<[1], [1], [0], [0], [0, 0, 1, 0], [], []>} : vector<8x128xf32>, vector<8x128xf32>, vector<8x8xf32> -> vector<8x8xf32>
    %cst_17 = arith.constant 0.0883883461 : f32
    %34 = vector.broadcast %cst_17 : f32 to vector<8x8xf32>
    %35 = arith.mulf %33, %34 : vector<8x8xf32>
    %cst_18 = arith.constant dense<0xFF800000> : vector<8xf32>
    %36 = vector.multi_reduction <maximumf>, %35, %cst_18 [1] : vector<8x8xf32> to vector<8xf32>
    %37 = vector.shape_cast %36 : vector<8xf32> to vector<8x1xf32>
    %38 = vector.broadcast %37 : vector<8x1xf32> to vector<8x8xf32>
    %39 = arith.subf %35, %38 : vector<8x8xf32>
    %40 = math.exp %39 : vector<8x8xf32>
    %cst_19 = arith.constant dense<0.000000e+00> : vector<8xf32>
    %41 = vector.multi_reduction <add>, %40, %cst_19 [1] : vector<8x8xf32> to vector<8xf32>
    %42 = vector.shape_cast %41 : vector<8xf32> to vector<8x1xf32>
    %43 = vector.broadcast %42 : vector<8x1xf32> to vector<8x8xf32>
    %44 = arith.divf %40, %43 : vector<8x8xf32>
    %cst_20 = arith.constant dense<0.000000e+00> : vector<8x128xf32>
    %45 = tpu.matmul %44, %32, %cst_20 {dimension_numbers = #tpu.dot_dimension_numbers<[1], [0], [0], [1], [0, 0, 1, 1], [], []>} : vector<8x8xf32>, vector<8x128xf32>, vector<8x128xf32> -> vector<8x128xf32>
    %c0_21 = arith.constant 0 : index
    %c0_22 = arith.constant 0 : index
    %46 = vector.load %arg6[%c0_21, %c0_22] : memref<256x256xf32, #tpu.memory_space<vmem>>, vector<128x256xf32>
    %cst_23 = arith.constant dense<0.000000e+00> : vector<8x256xf32>
    %47 = tpu.matmul %45, %46, %cst_23 {dimension_numbers = #tpu.dot_dimension_numbers<[1], [0], [0], [1], [0, 0, 1, 1], [], []>} : vector<8x128xf32>, vector<128x256xf32>, vector<8x256xf32> -> vector<8x256xf32>
    %48 = vector.extract_strided_slice %25 {offsets = [0, 128], sizes = [8, 128], strides = [1, 1]} : vector<8x256xf32> to vector<8x128xf32>
    %49 = vector.extract_strided_slice %28 {offsets = [0, 128], sizes = [8, 128], strides = [1, 1]} : vector<8x256xf32> to vector<8x128xf32>
    %50 = vector.extract_strided_slice %29 {offsets = [0, 128], sizes = [8, 128], strides = [1, 1]} : vector<8x256xf32> to vector<8x128xf32>
    %cst_24 = arith.constant dense<0.000000e+00> : vector<8x8xf32>
    %51 = tpu.matmul %48, %49, %cst_24 {dimension_numbers = #tpu.dot_dimension_numbers<[1], [1], [0], [0], [0, 0, 1, 0], [], []>} : vector<8x128xf32>, vector<8x128xf32>, vector<8x8xf32> -> vector<8x8xf32>
    %cst_25 = arith.constant 0.0883883461 : f32
    %52 = vector.broadcast %cst_25 : f32 to vector<8x8xf32>
    %53 = arith.mulf %51, %52 : vector<8x8xf32>
    %cst_26 = arith.constant dense<0xFF800000> : vector<8xf32>
    %54 = vector.multi_reduction <maximumf>, %53, %cst_26 [1] : vector<8x8xf32> to vector<8xf32>
    %55 = vector.shape_cast %54 : vector<8xf32> to vector<8x1xf32>
    %56 = vector.broadcast %55 : vector<8x1xf32> to vector<8x8xf32>
    %57 = arith.subf %53, %56 : vector<8x8xf32>
    %58 = math.exp %57 : vector<8x8xf32>
    %cst_27 = arith.constant dense<0.000000e+00> : vector<8xf32>
    %59 = vector.multi_reduction <add>, %58, %cst_27 [1] : vector<8x8xf32> to vector<8xf32>
    %60 = vector.shape_cast %59 : vector<8xf32> to vector<8x1xf32>
    %61 = vector.broadcast %60 : vector<8x1xf32> to vector<8x8xf32>
    %62 = arith.divf %58, %61 : vector<8x8xf32>
    %cst_28 = arith.constant dense<0.000000e+00> : vector<8x128xf32>
    %63 = tpu.matmul %62, %50, %cst_28 {dimension_numbers = #tpu.dot_dimension_numbers<[1], [0], [0], [1], [0, 0, 1, 1], [], []>} : vector<8x8xf32>, vector<8x128xf32>, vector<8x128xf32> -> vector<8x128xf32>
    %c128 = arith.constant 128 : index
    %c0_29 = arith.constant 0 : index
    %64 = vector.load %arg6[%c128, %c0_29] : memref<256x256xf32, #tpu.memory_space<vmem>>, vector<128x256xf32>
    %cst_30 = arith.constant dense<0.000000e+00> : vector<8x256xf32>
    %65 = tpu.matmul %63, %64, %cst_30 {dimension_numbers = #tpu.dot_dimension_numbers<[1], [0], [0], [1], [0, 0, 1, 1], [], []>} : vector<8x128xf32>, vector<128x256xf32>, vector<8x256xf32> -> vector<8x256xf32>
    %66 = arith.addf %47, %65 : vector<8x256xf32>
    %67 = arith.addf %1, %66 : vector<8x256xf32>
    %c0_31 = arith.constant 0 : index
    %c0_32 = arith.constant 0 : index
    %68 = vector.load %arg7[%c0_31, %c0_32] : memref<1x256xf32, #tpu.memory_space<vmem>>, vector<1x256xf32>
    %69 = vector.broadcast %68 : vector<1x256xf32> to vector<8x256xf32>
    %70 = arith.addf %67, %69 : vector<8x256xf32>
    %cst_33 = arith.constant dense<0.000000e+00> : vector<8xf32>
    %71 = vector.multi_reduction <add>, %70, %cst_33 [1] : vector<8x256xf32> to vector<8xf32>
    %72 = vector.shape_cast %71 : vector<8xf32> to vector<8x1xf32>
    %cst_34 = arith.constant 2.560000e+02 : f32
    %73 = vector.broadcast %cst_34 : f32 to vector<8x1xf32>
    %74 = arith.divf %72, %73 : vector<8x1xf32>
    %75 = vector.broadcast %74 : vector<8x1xf32> to vector<8x256xf32>
    %76 = arith.subf %70, %75 : vector<8x256xf32>
    %77 = arith.mulf %76, %76 : vector<8x256xf32>
    %cst_35 = arith.constant dense<0.000000e+00> : vector<8xf32>
    %78 = vector.multi_reduction <add>, %77, %cst_35 [1] : vector<8x256xf32> to vector<8xf32>
    %79 = vector.shape_cast %78 : vector<8xf32> to vector<8x1xf32>
    %cst_36 = arith.constant 2.560000e+02 : f32
    %80 = vector.broadcast %cst_36 : f32 to vector<8x1xf32>
    %81 = arith.divf %79, %80 : vector<8x1xf32>
    %cst_37 = arith.constant 9.99999974E-6 : f32
    %82 = vector.broadcast %cst_37 : f32 to vector<8x1xf32>
    %83 = arith.addf %81, %82 : vector<8x1xf32>
    %84 = math.rsqrt %83 : vector<8x1xf32>
    %85 = vector.broadcast %84 : vector<8x1xf32> to vector<8x256xf32>
    %86 = arith.mulf %76, %85 : vector<8x256xf32>
    %c0_38 = arith.constant 0 : index
    %c0_39 = arith.constant 0 : index
    %87 = vector.load %arg8[%c0_38, %c0_39] : memref<1x256xf32, #tpu.memory_space<vmem>>, vector<1x256xf32>
    %88 = vector.broadcast %87 : vector<1x256xf32> to vector<8x256xf32>
    %89 = arith.mulf %86, %88 : vector<8x256xf32>
    %c0_40 = arith.constant 0 : index
    %c0_41 = arith.constant 0 : index
    %90 = vector.load %arg9[%c0_40, %c0_41] : memref<1x256xf32, #tpu.memory_space<vmem>>, vector<1x256xf32>
    %91 = vector.broadcast %90 : vector<1x256xf32> to vector<8x256xf32>
    %92 = arith.addf %89, %91 : vector<8x256xf32>
    %c0_42 = arith.constant 0 : index
    %c0_43 = arith.constant 0 : index
    %93 = vector.load %arg10[%c0_42, %c0_43] : memref<256x1024xf32, #tpu.memory_space<vmem>>, vector<256x1024xf32>
    %cst_44 = arith.constant dense<0.000000e+00> : vector<8x1024xf32>
    %94 = tpu.matmul %92, %93, %cst_44 {dimension_numbers = #tpu.dot_dimension_numbers<[1], [0], [0], [1], [0, 0, 1, 1], [], []>} : vector<8x256xf32>, vector<256x1024xf32>, vector<8x1024xf32> -> vector<8x1024xf32>
    %c0_45 = arith.constant 0 : index
    %c0_46 = arith.constant 0 : index
    %95 = vector.load %arg11[%c0_45, %c0_46] : memref<1x1024xf32, #tpu.memory_space<vmem>>, vector<1x1024xf32>
    %96 = vector.broadcast %95 : vector<1x1024xf32> to vector<8x1024xf32>
    %97 = arith.addf %94, %96 : vector<8x1024xf32>
    %cst_47 = arith.constant 0.000000e+00 : f32
    %98 = vector.broadcast %cst_47 : f32 to vector<8x1024xf32>
    %99 = arith.maximumf %97, %98 : vector<8x1024xf32>
    %c0_48 = arith.constant 0 : index
    %c0_49 = arith.constant 0 : index
    %100 = vector.load %arg12[%c0_48, %c0_49] : memref<1024x256xf32, #tpu.memory_space<vmem>>, vector<1024x256xf32>
    %cst_50 = arith.constant dense<0.000000e+00> : vector<8x256xf32>
    %101 = tpu.matmul %99, %100, %cst_50 {dimension_numbers = #tpu.dot_dimension_numbers<[1], [0], [0], [1], [0, 0, 1, 1], [], []>} : vector<8x1024xf32>, vector<1024x256xf32>, vector<8x256xf32> -> vector<8x256xf32>
    %c0_51 = arith.constant 0 : index
    %c0_52 = arith.constant 0 : index
    %102 = vector.load %arg13[%c0_51, %c0_52] : memref<1x256xf32, #tpu.memory_space<vmem>>, vector<1x256xf32>
    %103 = vector.broadcast %102 : vector<1x256xf32> to vector<8x256xf32>
    %104 = arith.addf %101, %103 : vector<8x256xf32>
    %105 = arith.addf %70, %104 : vector<8x256xf32>
    %c0_53 = arith.constant 0 : index
    %c0_54 = arith.constant 0 : index
    %c0_55 = arith.constant 0 : index
    %106 = vector.load %arg14[%c0_53, %c0_54, %c0_55] : memref<1x8x256xf32, #tpu.memory_space<vmem>>, vector<1x8x256xf32>
    %107 = vector.shape_cast %106 : vector<1x8x256xf32> to vector<8x256xf32>
    %108 = vector.shape_cast %105 : vector<8x256xf32> to vector<1x8x256xf32>
    tpu.vector_store %arg14[%c0_53, %c0_54, %c0_55], %108 {strides = array<i32>} : memref<1x8x256xf32, #tpu.memory_space<vmem>>, vector<1x8x256xf32>,
    return
  }
  func.func @transform_0(%arg0: i32) -> (i32, i32, i32) {
    %c0_i32 = arith.constant 0 : i32
    %c0_i32_0 = arith.constant 0 : i32
    %c0_i32_1 = arith.constant 0 : i32
    return %arg0, %c0_i32, %c0_i32_0 : i32, i32, i32
  }
  func.func @transform_1(%arg0: i32) -> (i32, i32) {
    %c0_i32 = arith.constant 0 : i32
    %c0_i32_0 = arith.constant 0 : i32
    %c0_i32_1 = arith.constant 0 : i32
    return %c0_i32, %c0_i32_0 : i32, i32
  }
  func.func @transform_2(%arg0: i32) -> (i32, i32) {
    %c0_i32 = arith.constant 0 : i32
    %c0_i32_0 = arith.constant 0 : i32
    %c0_i32_1 = arith.constant 0 : i32
    return %c0_i32, %c0_i32_0 : i32, i32
  }
  func.func @transform_3(%arg0: i32) -> (i32, i32) {
    %c0_i32 = arith.constant 0 : i32
    %c0_i32_0 = arith.constant 0 : i32
    %c0_i32_1 = arith.constant 0 : i32
    return %c0_i32, %c0_i32_0 : i32, i32
  }
  func.func @transform_4(%arg0: i32) -> (i32, i32) {
    %c0_i32 = arith.constant 0 : i32
    %c0_i32_0 = arith.constant 0 : i32
    %c0_i32_1 = arith.constant 0 : i32
    return %c0_i32, %c0_i32_0 : i32, i32
  }
  func.func @transform_5(%arg0: i32) -> (i32, i32) {
    %c0_i32 = arith.constant 0 : i32
    %c0_i32_0 = arith.constant 0 : i32
    %c0_i32_1 = arith.constant 0 : i32
    return %c0_i32, %c0_i32_0 : i32, i32
  }
  func.func @transform_6(%arg0: i32) -> (i32, i32) {
    %c0_i32 = arith.constant 0 : i32
    %c0_i32_0 = arith.constant 0 : i32
    %c0_i32_1 = arith.constant 0 : i32
    return %c0_i32, %c0_i32_0 : i32, i32
  }
  func.func @transform_7(%arg0: i32) -> (i32, i32) {
    %c0_i32 = arith.constant 0 : i32
    %c0_i32_0 = arith.constant 0 : i32
    %c0_i32_1 = arith.constant 0 : i32
    return %c0_i32, %c0_i32_0 : i32, i32
  }
  func.func @transform_8(%arg0: i32) -> (i32, i32) {
    %c0_i32 = arith.constant 0 : i32
    %c0_i32_0 = arith.constant 0 : i32
    %c0_i32_1 = arith.constant 0 : i32
    return %c0_i32, %c0_i32_0 : i32, i32
  }
  func.func @transform_9(%arg0: i32) -> (i32, i32) {
    %c0_i32 = arith.constant 0 : i32
    %c0_i32_0 = arith.constant 0 : i32
    %c0_i32_1 = arith.constant 0 : i32
    return %c0_i32, %c0_i32_0 : i32, i32
  }
  func.func @transform_10(%arg0: i32) -> (i32, i32) {
    %c0_i32 = arith.constant 0 : i32
    %c0_i32_0 = arith.constant 0 : i32
    %c0_i32_1 = arith.constant 0 : i32
    return %c0_i32, %c0_i32_0 : i32, i32
  }
  func.func @transform_11(%arg0: i32) -> (i32, i32) {
    %c0_i32 = arith.constant 0 : i32
    %c0_i32_0 = arith.constant 0 : i32
    %c0_i32_1 = arith.constant 0 : i32
    return %c0_i32, %c0_i32_0 : i32, i32
  }
  func.func @transform_12(%arg0: i32) -> (i32, i32) {
    %c0_i32 = arith.constant 0 : i32
    %c0_i32_0 = arith.constant 0 : i32
    %c0_i32_1 = arith.constant 0 : i32
    return %c0_i32, %c0_i32_0 : i32, i32
  }
  func.func @transform_13(%arg0: i32) -> (i32, i32, i32) {
    %c0_i32 = arith.constant 0 : i32
    %c0_i32_0 = arith.constant 0 : i32
    %c0_i32_1 = arith.constant 0 : i32
    return %arg0, %c0_i32, %c0_i32_0 : i32, i32, i32
  }
}

</mosaic_0001>

<bundles_post_ra>
// kernel: tpu_custom_call.1
= control target key start
LH: loop header
LB: loop body
LE: loop exit
PB: predicated region body
PF: predicated region fallthrough
CT: control target
= control target key end

     0   :  { %s3755_s0 = inlined_call_operand.hbm [shape: f32[2,8,256], index: 0, kind: input, shape index: {}]   ;;  %s3756_s1 = inlined_call_operand.hbm [shape: f32[1,256], index: 1, kind: input, shape index: {}]   ;;  %s3757_s2 = inlined_call_operand.vmem [shape: f32[1,256], index: 2, kind: input, shape index: {}]   ;;  %s3758_s3 = inlined_call_operand.hbm [shape: f32[256,256], index: 3, kind: input, shape index: {}]   ;;  %s3759_s4 = inlined_call_operand.hbm [shape: f32[256,512], index: 4, kind: input, shape index: {}]   ;;  %s3760_s5 = inlined_call_operand.hbm [shape: f32[256,256], index: 5, kind: input, shape index: {}]   ;;  %s3761_s6 = inlined_call_operand.vmem [shape: f32[1,256], index: 6, kind: input, shape index: {}]   ;;  %s3762_s7 = inlined_call_operand.vmem [shape: f32[1,256], index: 7, kind: input, shape index: {}]   ;;  %s3763_s8 = inlined_call_operand.vmem [shape: f32[1,256], index: 8, kind: input, shape index: {}]   ;;  %s3764_s9 = inlined_call_operand.hbm [shape: f32[256,1024], index: 9, kind: input, shape index: {}]   ;;  %s3765_s10 = inlined_call_operand.vmem [shape: f32[1,1024], index: 10, kind: input, shape index: {}]   ;;  %s3766_s11 = inlined_call_operand.hbm [shape: f32[1024,256], index: 11, kind: input, shape index: {}]   ;;  %s3767_s12 = inlined_call_operand.vmem [shape: f32[1,256], index: 12, kind: input, shape index: {}]   ;;  %s3768_s13 = inlined_call_operand.hbm [shape: f32[2,8,256], index: 13, kind: output, shape index: {}]  }
   0x1   :  { %3774 = sst [smem:[#allocation22_spill]] %s3756_s1 }
   0x2   :  { %3775 = sst [smem:[#allocation23_spill]] %s3758_s3 }
   0x3   :  { %3776 = sst [smem:[#allocation24_spill]] %s3759_s4 }
   0x4   :  { %3777 = sst [smem:[#allocation25_spill]] %s3760_s5 }
   0x5   :  { %3778 = sst [smem:[#allocation26_spill]] %s3764_s9 }
   0x6   :  { %3779 = sst [smem:[#allocation27_spill]] %s3766_s11 }
   0x7   :  { %18 = vsyncpa [#allocation3], 0 }
   0x8   :  { %20 = vsyncpa [#allocation3 + $0x1], 0 }
   0x9   :  { %21 = vsyncpa [#allocation6], 0 }
   0xa   :  { %22 = vsyncpa [#allocation9], 0 }
   0xb   :  { %23 = vsyncpa [#allocation12], 0 }
   0xc   :  { %24 = vsyncpa [#allocation4], 0 }
   0xd   :  { %26 = vsyncpa [#allocation4 + $0x1], 0  ;;  %s3394_s25 = smov 0   ;;  %s3396_s26 = smov 0  }
   0xe   :  { %s3398_s27 = smov 0   ;;  %s3400_s28 = smov 0  }
   0xf LB: > { %3780 = sst [smem:[#allocation20_spill]] %s3302_s27  ;;  %s3308_s29 = smov [#allocation5]   ;;  %s3306_s28 = sphi %s3400_s28, %s3811_s28   ;;  %s3302_s27 = sphi %s3398_s27, %s3808_s27   ;;  %s3298_s26 = sphi %s3396_s26, %s3810_s26   ;;  %s3294_s25 = sphi %s3394_s25, %s3809_s25  }
  0x10   : > { %s354_s30 = sshll.u32 %s3308_s29, 4  ;;  %s3415_s14 = sadd.s32 4294967295, %s3306_s28   ;;  %s355_s30 = int_to_ptr.vmem [resolvable:$true] %s354_s30 }
  0x11   : > { %p2860_p0 = scmp.ge.s32.totalorder %s3306_s28, 1  ;;  %p3769_p1 = scmp.eq.s32.totalorder %s3415_s14, 0 }
  0x12   : > { %p341_p2 = scmp.lt.s32.totalorder %s3306_s28, 3  ;;  %s3309_s16 = smov [#allocation8]  }
  0x13   : > { %s380_s17 = sshll.u32 %s3309_s16, 4  ;;  %s3310_s19 = smov [#allocation11]   ;;  %s3427_s17 = int_to_ptr.vmem [resolvable:$true] %s380_s17 }
  0x14   : > { %p3420_p3 = pnand %p2860_p0, %p341_p2  ;;  %s415_s20 = sshll.u32 %s3310_s19, 4  ;;  %s3435_s20 = int_to_ptr.vmem [resolvable:$true] %s415_s20 }
  0x15   : > { %s3057_s22 = scalar_lea.vmem %s355_s30, 32  ;;  %p3065_p11 = scmp.lt.s32.totalorder %s355_s30, %s355_s30 }
  0x16   : > { %s3781_s15 = scalar_select %p3420_p3, 1, 0 }
  0x17   : > { %p2945_p5 = pneg %p3420_p3  ;;  %p3058_p8 = scmp.ne.s32.totalorder %s355_s30, %s3057_s22 }
  0x18   : > { %p3066_p12 = scmp.lt.s32.totalorder %s3057_s22, %s3057_s22 }
  0x19   : > { %p3431_p6 = pnand %p2945_p5, %p3769_p1 }
  0x1a   : > { %p3067_p13 = por %p3066_p12, %p3065_p11 }
  0x1b   : > { %p3439_p7 = pneg %p3431_p6 }
  0x1d   : > { %p3060_p9 = pnand %p3058_p8, %p3439_p7 }
  0x1f   : > { %p3061_p10 = pneg %p3060_p9 }
  0x21   : > { %p3068_p0 = pnand %p3067_p13, %p3061_p10 }
  0x23   : > { %3071 = shalt.err (!%p3068_p0)
}
  0x24   : > { %s3784_s1 = sld [smem:[#allocation22_spill]]  ;;  %s3083_s29 = scalar_lea.vmem %s3427_s17, 16384 }
  0x25   : > { %p3084_p2 = scmp.ne.s32.totalorder %s3427_s17, %s3083_s29  ;;  %p3091_p9 = scmp.lt.s32.totalorder %s3427_s17, %s3427_s17 }
  0x26   : > { %p3092_p11 = scmp.lt.s32.totalorder %s3083_s29, %s3083_s29 }
  0x27   : > { %p3086_p5 = pnand %p3084_p2, %p3439_p7 }
  0x28   : > { %p3093_p10 = por %p3092_p11, %p3091_p9 }
  0x29   : > { %p3087_p8 = pneg %p3086_p5 }
  0x2a   : > { %2948 = dma.hbm_to_vmem [thread:$0]  (!%p3431_p6), %s3784_s1, 32, %s355_s30, [#allocation6]  }
  0x2b   : > { %p3094_p12 = pnand %p3093_p10, %p3087_p8 }
  0x2d   : > { %3097 = shalt.err (!%p3094_p12)
}
  0x2e   : > { %s3311_s16 = smov 512   ;;  %s3312_s19 = smov 32  }
  0x2f   : > { %s3785_s4 = sld [smem:[#allocation24_spill]]  ;;  %s3109_s23 = scalar_lea.vmem %s3435_s20, 32768 }
  0x30   : > { %p3110_p13 = scmp.ne.s32.totalorder %s3435_s20, %s3109_s23  ;;  %p3117_p5 = scmp.lt.s32.totalorder %s3435_s20, %s3435_s20 }
  0x31   : > { %p3118_p8 = scmp.lt.s32.totalorder %s3109_s23, %s3109_s23 }
  0x32   : > { %p3112_p0 = pnand %p3110_p13, %p3439_p7 }
  0x33   : > { %p3119_p9 = por %p3118_p8, %p3117_p5 }
  0x34   : > { %p3113_p2 = pneg %p3112_p0 }
  0x35   : > { %2954 = dma.hbm_to_vmem [thread:$0]  (!%p3431_p6), %s3785_s4, 16384, %s3427_s17, [#allocation9], %s3311_s16, %s3311_s16, %s3312_s19  }
  0x36   : > { %p3120_p11 = pnand %p3119_p9, %p3113_p2 }
  0x38   : > { %3123 = shalt.err (!%p3120_p11)
}
  0x39   : > { %s3313_s24 = smov 1024   ;;  %s3314_s29 = smov 64  }
  0x3a   : > { %s3786_s9 = sld [smem:[#allocation26_spill]]  ;;  %s3315_s17 = smov [#allocation7]  }
  0x3b   : > { %s367_s16 = sshll.u32 %s3315_s17, 4  ;;  %s368_s16 = int_to_ptr.vmem [resolvable:$true] %s367_s16 }
  0x3c   : > { %s3135_s19 = scalar_lea.vmem %s368_s16, 8192  ;;  %p3143_p0 = scmp.lt.s32.totalorder %s368_s16, %s368_s16 }
  0x3d   : > { %p3136_p10 = scmp.ne.s32.totalorder %s368_s16, %s3135_s19  ;;  %p3144_p2 = scmp.lt.s32.totalorder %s3135_s19, %s3135_s19 }
  0x3f   : > { %p3138_p12 = pnand %p3136_p10, %p3439_p7  ;;  %p3145_p5 = por %p3144_p2, %p3143_p0 }
  0x40   : > { %2960 = dma.hbm_to_vmem [thread:$0]  (!%p3431_p6), %s3786_s9, 32768, %s3435_s20, [#allocation12], %s3313_s24, %s3313_s24, %s3314_s29  }
  0x41   : > { %p3139_p13 = pneg %p3138_p12 }
  0x43   : > { %p3146_p8 = pnand %p3145_p5, %p3139_p13 }
  0x45   : > { %3149 = shalt.err (!%p3146_p8)
}
  0x46   : > { %s3316_s22 = smov 256   ;;  %s3317_s23 = smov 16  }
  0x47   : > { %s3787_s3 = sld [smem:[#allocation23_spill]]  ;;  %s3318_s24 = smov [#allocation10]  }
  0x48   : > { %s393_s29 = sshll.u32 %s3318_s24, 4  ;;  %s3319_s30 = smov [#allocation13]   ;;  %s394_s29 = int_to_ptr.vmem [resolvable:$true] %s393_s29 }
  0x49   : > { %s431_s17 = sshll.u32 %s3319_s30, 4  ;;  %s3161_s19 = scalar_lea.vmem %s394_s29, 8192  ;;  %s432_s17 = int_to_ptr.vmem [resolvable:$true] %s431_s17 }
  0x4a   : > { %p3162_p9 = scmp.ne.s32.totalorder %s394_s29, %s3161_s19  ;;  %p3169_p12 = scmp.lt.s32.totalorder %s394_s29, %s394_s29 }
  0x4b   : > { %p3170_p13 = scmp.lt.s32.totalorder %s3161_s19, %s3161_s19 }
  0x4c   : > { %p3164_p11 = pnand %p3162_p9, %p3439_p7 }
  0x4d   : > { %2951 = dma.hbm_to_vmem [thread:$0]  (!%p3431_p6), %s3787_s3, 8192, %s368_s16, [#allocation6], %s3316_s22, %s3316_s22, %s3317_s23  }
  0x4e   : > { %p3165_p10 = pneg %p3164_p11  ;;  %p3171_p0 = por %p3170_p13, %p3169_p12 }
  0x50   : > { %p3172_p2 = pnand %p3171_p0, %p3165_p10 }
  0x52   : > { %3175 = shalt.err (!%p3172_p2)
}
  0x53   : > { %s3788_s5 = sld [smem:[#allocation25_spill]]  ;;  %s3187_s20 = scalar_lea.vmem %s432_s17, 32768 }
  0x54   : > { %p3188_p5 = scmp.ne.s32.totalorder %s432_s17, %s3187_s20  ;;  %p3195_p11 = scmp.lt.s32.totalorder %s432_s17, %s432_s17 }
  0x55   : > { %p3196_p4 = scmp.lt.s32.totalorder %s3187_s20, %s3187_s20 }
  0x56   : > { %p3190_p8 = pnand %p3188_p5, %p3439_p7 }
  0x57   : > { %p3197_p12 = por %p3196_p4, %p3195_p11 }
  0x58   : > { %p3191_p9 = pneg %p3190_p8 }
  0x59   : > { %2957 = dma.hbm_to_vmem [thread:$0]  (!%p3431_p6), %s3788_s5, 8192, %s394_s29, [#allocation9], %s3316_s22, %s3316_s22, %s3317_s23  }
  0x5a   : > { %p3198_p10 = pnand %p3197_p12, %p3191_p9 }
  0x5c   : > { %3201 = shalt.err (!%p3198_p10)
}
  0x5d   : > { %s3789_s11 = sld [smem:[#allocation27_spill]]  ;;  %s2859_s18 = sadd.s32 4294967294, %s3306_s28  }
  0x5e   : > { %s3506_s21 = sadd.s32 1, %s3306_s28   ;;  %s39_s19 = sadd.s32 1, %s3302_s27 }
  0x5f   : > { %s36_s29 = ssub.s32 %s3306_s28, %s3506_s21  ;;  %p46_p7 = scmp.ne.s32.totalorder %s3302_s27, %s3298_s26 }
  0x60   : > { %p37_p4 = scmp.eq.s32.totalorder %s36_s29, 0  ;;  %p47_p13 = scmp.eq.s32.totalorder %s3306_s28, 0 }
  0x61   : > { %p52_p0 = scmp.ne.s32.totalorder %s3298_s26, %s3294_s25  ;;  %p328_p5 = scmp.eq.s32.totalorder %s3415_s14, 1 }
  0x62   : > { %s3517_s16 = scalar_select %p37_p4, %s3302_s27, %s39_s19  }
  0x63   : > { %2963 = dma.hbm_to_vmem [thread:$0]  (!%p3431_p6), %s3789_s11, 32768, %s432_s17, [#allocation12], %s3316_s22, %s3316_s22, %s3317_s23  }
  0x64   : > { %3790 = sst [smem:[#allocation21_spill]] %s3517_s16  ;;  %p3519_p2 = por %p47_p13, %p46_p7 }
  0x65   : > { %p3525_p6 = por %p3769_p1, %p52_p0  ;;  %p334_p8 = scmp.eq.s32.totalorder %s2859_s18, 1 }
  0x66   : > { %p2978_p9 = scmp.lt.s32.totalorder %s3306_s28, 2  ;;  %s448_s23 = sand.u32 1, %s3302_s27  }
  0x67   : > { %s3792_s22 = scalar_select %p3525_p6, 1, 0 }
  0x68   : > { %p3532_p11 = por %p328_p5, %p46_p7  ;;  %p3536_p12 = por %p334_p8, %p52_p0 }
  0x69   : > { %s2868_s24 = sshll.u32 %s448_s23, 4  ;;  %s2887_s30 = sshll.u32 %s3306_s28, 8 }
  0x6a   : > { %s3793_s17 = scalar_select %p3532_p11, 1, 0 }
  0x6b   : > { %s3794_s20 = scalar_select %p3536_p12, 1, 0 }
  0x6c   : > { %s3544_s3 = scalar_lea.hbm %s3755_s0, %s2887_s30  ;;  %s452_s18 = scalar_lea.vmem [#allocation2], %s2868_s24 }
  0x6d   : > { %s460_s4 = sshll.u32 %s452_s18, 4  ;;  %p3548_p10 = pnand %p2978_p9, %p3519_p2  ;;  %s461_s4 = int_to_ptr.vmem [resolvable:$true] %s460_s4 }
  0x6e   : > { %s449_s9 = scalar_lea.sflag [#allocation3], %s448_s23  ;;  %s3202_s11 = scalar_lea.hbm %s3544_s3, 256 }
  0x6f   : > { %p3203_p4 = scmp.ne.s32.totalorder %s3544_s3, %s3202_s11  ;;  %p3204_p7 = pneg %p3548_p10 }
  0x70   : > { %s3207_s19 = scalar_lea.hbm %s3755_s0, 512  ;;  %p3208_p5 = scmp.lt.s32.totalorder %s3544_s3, %s3755_s0 }
  0x71   : > { %p3205_p13 = pnand %p3204_p7, %p3203_p4  ;;  %p3209_p2 = scmp.lt.s32.totalorder %s3207_s19, %s3202_s11 }
  0x73   : > { %p3206_p0 = pneg %p3205_p13  ;;  %p3210_p8 = por %p3209_p2, %p3208_p5 }
  0x75   : > { %p3211_p9 = pnand %p3210_p8, %p3206_p0 }
  0x77   : > { %3214 = shalt.err (!%p3211_p9)
}
  0x78   : > { %s3215_s1 = scalar_lea.vmem %s461_s4, 256  ;;  %s3320_s23 = smov [#allocation2]  }
  0x79   : > { %p3216_p1 = scmp.ne.s32.totalorder %s461_s4, %s3215_s1  ;;  %s3220_s16 = sshll.u32 %s3320_s23, 4  ;;  %s3221_s16 = int_to_ptr.vmem [resolvable:$false] %s3220_s16 }
  0x7a   : > { %s3222_s27 = scalar_lea.vmem %s3221_s16, 512  ;;  %p3223_p4 = scmp.lt.s32.totalorder %s461_s4, %s3221_s16 }
  0x7b   : > { %p3218_p12 = pnand %p3216_p1, %p3204_p7  ;;  %p3224_p13 = scmp.lt.s32.totalorder %s3222_s27, %s3215_s1 }
  0x7d   : > { %p3219_p11 = pneg %p3218_p12  ;;  %p3225_p6 = por %p3224_p13, %p3223_p4 }
  0x7f   : > { %p3226_p3 = pnand %p3225_p6, %p3219_p11 }
  0x81   : > { %3229 = shalt.err (!%p3226_p3)
}
  0x82   : > { %2967 = dma.hbm_to_vmem [thread:$0]  (!%p3548_p10), %s3544_s3, 256, %s461_s4, %s449_s9  }
  0x83   : > { %p3796_p0 = scmp.ne.s32.totalorder %s3781_s15, 0 }
  0x84   : > { %s3569_s11 = sand.u32 (!%p3796_p0), 1, %s3298_s26   ;;  %p3797_p1 = scmp.ne.s32.totalorder (!%p3796_p0), %s3792_s22, 0 }
  0x85   : > { %469 = sbr.rel (%p3796_p0) target bundleno = 2381 (0x94d), region = 72  ;;  %s2872_s30 = sshll.u32 (!%p3796_p0), %s3569_s11, 4 }
  0x86   : > { %s472_s16 = scalar_lea.sflag (!%p3796_p0), [#allocation3], %s3569_s11  ;;  %s3575_s27 = scalar_lea.vmem (!%p3796_p0), [#allocation2], %s2872_s30 }
  0x8a   : > { %3273 = dma.done.wait (%p3797_p1), %s472_s16, 256  }
  0x8b   : > { %3275 = vsyncadd (%p3797_p1), %s472_s16, 4294967040  ;;  %p3798_p3 = scmp.eq.s32.totalorder %s3415_s14, 0 }
  0x8d   : > { %3277 = dma.done.wait (%p3798_p3), [#allocation6], 8224   ;;  %p3799_p6 = pmov %p3798_p3 }
  0x8e   : > { %p3800_p11 = pmov %p3798_p3 }
  0x8f   : > { %3279 = vsyncadd (%p3799_p6), [#allocation6], 4294959072 }
  0x90   : > { %3281 = dma.done.wait (%p3800_p11), [#allocation9], 24576   ;;  %p3801_p12 = pmov %p3798_p3 }
  0x91   : > { %p3802_p10 = pmov %p3798_p3 }
  0x92   : > { %3283 = vsyncadd (%p3801_p12), [#allocation9], 4294942720 }
  0x93   : > { %3285 = dma.done.wait (%p3802_p10), [#allocation12], 65536   ;;  %p3803_p7 = pmov %p3798_p3 }
  0x94   : > { %v3594_v0 = vld [vmem:[%s3575_s27] sm:$0xff]  ;;  %v3597_v1 = vld [vmem:[%s3575_s27 + $0x8] sm:$0xff]  ;;  %vm3322_vm0 = vmmov 0   ;;  %vm1065_vm1 = vcmask 64512   ;;  %s2888_s16 = sshll.u32 %s3415_s14, 8  ;;  %s2718_s15 = scalar_lea.sflag [#allocation4], %s3569_s11 }
  0x95   : > { %3287 = vsyncadd (%p3803_p7), [#allocation12], 4294901760  ;;  %v544_v2 = vadd.f32 %v3597_v1, %v3594_v0  ;;  %v620_v3 = vld [vmem:[#allocation7 + $0xf8] sm:$0xff]  ;;  %v619_v4 = vld [vmem:[#allocation7 + $0xf0] sm:$0xff]  ;;  %s2730_s9 = scalar_lea.hbm %s3768_s13, %s2888_s16  ;;  %p3804_p2 = scmp.ne.s32.totalorder %s3793_s17, 0 }
  0x96   : > { %v785_v5 = vld [vmem:[#allocation8 + $0x1e8] sm:$0xff]  ;;  %653 = vmatprep.subr.mxu0 %v620_v3  ;;  %v784_v7 = vld [vmem:[#allocation8 + $0x1e0] sm:$0xff]  ;;  %v616_v10 = vld [vmem:[#allocation7 + $0xd8] sm:$0xff]  ;;  %s3323_s14 = smov [#allocation14]  }
  0x97   : > { %545 = vadd.xlane.f32.xlu0 %v544_v2  ;;  %852 = vmatprep.subr.mxu1 %v785_v5  ;;  %v618_v6 = vld [vmem:[#allocation7 + $0xe8] sm:$0xff]  ;;  %v617_v8 = vld [vmem:[#allocation7 + $0xe0] sm:$0xff]  ;;  %v615_v12 = vld [vmem:[#allocation7 + $0xd0] sm:$0xff] }
  0x98   : > { %654 = vmatpush1.msra.mxu0 %v619_v4  ;;  %853 = vmatpush1.msra.mxu1 %v784_v7  ;;  %v781_v9 = vld [vmem:[#allocation8 + $0x1c8] sm:$0xff]  ;;  %v780_v11 = vld [vmem:[#allocation8 + $0x1c0] sm:$0xff]  ;;  %v612_v19 = vld [vmem:[#allocation7 + $0xb8] sm:$0xff] }
  0x99   : > { %655 = vmatprep.subr.mxu0 %v618_v6  ;;  %854 = vmatprep.subr.mxu1 %v781_v9  ;;  %v777_v13 = vld [vmem:[#allocation8 + $0x1a8] sm:$0xff]  ;;  %v776_v15 = vld [vmem:[#allocation8 + $0x1a0] sm:$0xff]  ;;  %v611_v21 = vld [vmem:[#allocation7 + $0xb0] sm:$0xff] }
  0x9a   : > { %656 = vmatpush1.msra.mxu0 %v617_v8  ;;  %855 = vmatpush1.msra.mxu1 %v780_v11  ;;  %v614_v14 = vld [vmem:[#allocation7 + $0xc8] sm:$0xff]  ;;  %v613_v17 = vld [vmem:[#allocation7 + $0xc0] sm:$0xff]  ;;  %v608_v27 = vld [vmem:[#allocation7 + $0x98] sm:$0xff] }
  0x9b   : > { %v773_v16 = vld [vmem:[#allocation8 + $0x188] sm:$0xff]  ;;  %657 = vmatprep.subr.mxu0 %v616_v10  ;;  %856 = vmatprep.subr.mxu1 %v777_v13  ;;  %v772_v18 = vld [vmem:[#allocation8 + $0x180] sm:$0xff]  ;;  %v607_v29 = vld [vmem:[#allocation7 + $0x90] sm:$0xff] }
  0x9c   : > { %658 = vmatpush1.msra.mxu0 %v615_v12  ;;  %857 = vmatpush1.msra.mxu1 %v776_v15  ;;  %v769_v20 = vld [vmem:[#allocation8 + $0x168] sm:$0xff]  ;;  %v768_v22 = vld [vmem:[#allocation8 + $0x160] sm:$0xff]  ;;  %v604_v35 = vld [vmem:[#allocation7 + $0x78] sm:$0xff] }
  0x9d   : > { %659 = vmatprep.subr.mxu0 %v614_v14  ;;  %858 = vmatprep.subr.mxu1 %v773_v16  ;;  %v610_v23 = vld [vmem:[#allocation7 + $0xa8] sm:$0xff]  ;;  %v609_v25 = vld [vmem:[#allocation7 + $0xa0] sm:$0xff]  ;;  %v603_v37 = vld [vmem:[#allocation7 + $0x70] sm:$0xff] }
  0x9e   : > { %660 = vmatpush1.msra.mxu0 %v613_v17  ;;  %859 = vmatpush1.msra.mxu1 %v772_v18  ;;  %v765_v24 = vld [vmem:[#allocation8 + $0x148] sm:$0xff]  ;;  %v764_v26 = vld [vmem:[#allocation8 + $0x140] sm:$0xff]  ;;  %v600_v43 = vld [vmem:[#allocation7 + $0x58] sm:$0xff] }
  0x9f   : > { %661 = vmatprep.subr.mxu0 %v612_v19  ;;  %860 = vmatprep.subr.mxu1 %v769_v20  ;;  %v761_v28 = vld [vmem:[#allocation8 + $0x128] sm:$0xff]  ;;  %v760_v30 = vld [vmem:[#allocation8 + $0x120] sm:$0xff]  ;;  %v599_v45 = vld [vmem:[#allocation7 + $0x50] sm:$0xff] }
  0xa0   : > { %662 = vmatpush1.msra.mxu0 %v611_v21  ;;  %861 = vmatpush1.msra.mxu1 %v768_v22  ;;  %v606_v31 = vld [vmem:[#allocation7 + $0x88] sm:$0xff]  ;;  %v605_v33 = vld [vmem:[#allocation7 + $0x80] sm:$0xff]  ;;  %v596_v51 = vld [vmem:[#allocation7 + $0x38] sm:$0xff] }
  0xa1   : > { %663 = vmatprep.subr.mxu0 %v610_v23  ;;  %862 = vmatprep.subr.mxu1 %v765_v24  ;;  %v757_v32 = vld [vmem:[#allocation8 + $0x108] sm:$0xff]  ;;  %v756_v34 = vld [vmem:[#allocation8 + $0x100] sm:$0xff]  ;;  %v595_v53 = vld [vmem:[#allocation7 + $0x30] sm:$0xff] }
  0xa2   : > { %664 = vmatpush1.msra.mxu0 %v609_v25  ;;  %863 = vmatpush1.msra.mxu1 %v764_v26  ;;  %v753_v36 = vld [vmem:[#allocation8 + $0xe8] sm:$0xff]  ;;  %v752_v38 = vld [vmem:[#allocation8 + $0xe0] sm:$0xff]  ;;  %v592_v59 = vld [vmem:[#allocation7 + $0x18] sm:$0xff] }
  0xa3   : > { %665 = vmatprep.subr.mxu0 %v608_v27  ;;  %864 = vmatprep.subr.mxu1 %v761_v28  ;;  %v602_v39 = vld [vmem:[#allocation7 + $0x68] sm:$0xff]  ;;  %v601_v41 = vld [vmem:[#allocation7 + $0x60] sm:$0xff]  ;;  %v591_v61 = vld [vmem:[#allocation7 + $0x10] sm:$0xff] }
  0xa4   : > { %666 = vmatpush1.msra.mxu0 %v607_v29  ;;  %865 = vmatpush1.msra.mxu1 %v760_v30  ;;  %v749_v40 = vld [vmem:[#allocation8 + $0xc8] sm:$0xff]  ;;  %v748_v42 = vld [vmem:[#allocation8 + $0xc0] sm:$0xff]  ;;  %v652_v5 = vld [vmem:[#allocation7 + $0x1f8] sm:$0xff] }
  0xa5   : > { %667 = vmatprep.subr.mxu0 %v606_v31  ;;  %866 = vmatprep.subr.mxu1 %v757_v32  ;;  %v745_v44 = vld [vmem:[#allocation8 + $0xa8] sm:$0xff]  ;;  %v744_v46 = vld [vmem:[#allocation8 + $0xa0] sm:$0xff]  ;;  %v651_v7 = vld [vmem:[#allocation7 + $0x1f0] sm:$0xff] }
  0xa6   : > { %668 = vmatpush1.msra.mxu0 %v605_v33  ;;  %867 = vmatpush1.msra.mxu1 %v756_v34  ;;  %v598_v47 = vld [vmem:[#allocation7 + $0x48] sm:$0xff]  ;;  %v597_v49 = vld [vmem:[#allocation7 + $0x40] sm:$0xff]  ;;  %v648_v13 = vld [vmem:[#allocation7 + $0x1d8] sm:$0xff] }
  0xa7   : > { %669 = vmatprep.subr.mxu0 %v604_v35  ;;  %868 = vmatprep.subr.mxu1 %v753_v36  ;;  %v741_v48 = vld [vmem:[#allocation8 + $0x88] sm:$0xff]  ;;  %v740_v50 = vld [vmem:[#allocation8 + $0x80] sm:$0xff]  ;;  %v647_v15 = vld [vmem:[#allocation7 + $0x1d0] sm:$0xff] }
  0xa8   : > { %670 = vmatpush1.msra.mxu0 %v603_v37  ;;  %869 = vmatpush1.msra.mxu1 %v752_v38  ;;  %v737_v52 = vld [vmem:[#allocation8 + $0x68] sm:$0xff]  ;;  %v736_v54 = vld [vmem:[#allocation8 + $0x60] sm:$0xff]  ;;  %v644_v27 = vld [vmem:[#allocation7 + $0x1b8] sm:$0xff] }
  0xa9   : > { %671 = vmatprep.subr.mxu0 %v602_v39  ;;  %870 = vmatprep.subr.mxu1 %v749_v40  ;;  %v594_v55 = vld [vmem:[#allocation7 + $0x28] sm:$0xff]  ;;  %v593_v57 = vld [vmem:[#allocation7 + $0x20] sm:$0xff]  ;;  %v643_v29 = vld [vmem:[#allocation7 + $0x1b0] sm:$0xff] }
  0xaa   : > { %672 = vmatpush1.msra.mxu0 %v601_v41  ;;  %871 = vmatpush1.msra.mxu1 %v748_v42  ;;  %v733_v56 = vld [vmem:[#allocation8 + $0x48] sm:$0xff]  ;;  %v732_v58 = vld [vmem:[#allocation8 + $0x40] sm:$0xff]  ;;  %v640_v33 = vld [vmem:[#allocation7 + $0x198] sm:$0xff] }
  0xab   : > { %673 = vmatprep.subr.mxu0 %v600_v43  ;;  %872 = vmatprep.subr.mxu1 %v745_v44  ;;  %v729_v60 = vld [vmem:[#allocation8 + $0x28] sm:$0xff]  ;;  %v728_v62 = vld [vmem:[#allocation8 + $0x20] sm:$0xff]  ;;  %v639_v35 = vld [vmem:[#allocation7 + $0x190] sm:$0xff] }
  0xac   : > { %674 = vmatpush1.msra.mxu0 %v599_v45  ;;  %873 = vmatpush1.msra.mxu1 %v744_v46  ;;  %v590_v63 = vld [vmem:[#allocation7 + $0x8] sm:$0xff]  ;;  %v589_v3 = vld [vmem:[#allocation7] sm:$0xff]  ;;  %v636_v41 = vld [vmem:[#allocation7 + $0x178] sm:$0xff] }
  0xad   : > { %675 = vmatprep.subr.mxu0 %v598_v47  ;;  %874 = vmatprep.subr.mxu1 %v741_v48  ;;  %v725_v2 = vld [vmem:[#allocation8 + $0x8] sm:$0xff]  ;;  %v724_v4 = vld [vmem:[#allocation8] sm:$0xff]  ;;  %v635_v43 = vld [vmem:[#allocation7 + $0x170] sm:$0xff] }
  0xae   : > { %676 = vmatpush1.msra.mxu0 %v597_v49  ;;  %875 = vmatpush1.msra.mxu1 %v740_v50  ;;  %v849_v6 = vld [vmem:[#allocation8 + $0x3e8] sm:$0xff]  ;;  %v848_v8 = vld [vmem:[#allocation8 + $0x3e0] sm:$0xff]  ;;  %v632_v49 = vld [vmem:[#allocation7 + $0x158] sm:$0xff] }
  0xaf   : > { %677 = vmatprep.subr.mxu0 %v596_v51  ;;  %876 = vmatprep.subr.mxu1 %v737_v52  ;;  %v650_v9 = vld [vmem:[#allocation7 + $0x1e8] sm:$0xff]  ;;  %v649_v11 = vld [vmem:[#allocation7 + $0x1e0] sm:$0xff]  ;;  %v631_v51 = vld [vmem:[#allocation7 + $0x150] sm:$0xff] }
  0xb0   : > { %678 = vmatpush1.msra.mxu0 %v595_v53  ;;  %877 = vmatpush1.msra.mxu1 %v736_v54  ;;  %v845_v10 = vld [vmem:[#allocation8 + $0x3c8] sm:$0xff]  ;;  %v844_v12 = vld [vmem:[#allocation8 + $0x3c0] sm:$0xff] }
  0xb1   : > { %679 = vmatprep.subr.mxu0 %v594_v55  ;;  %878 = vmatprep.subr.mxu1 %v733_v56  ;;  %v841_v14 = vld [vmem:[#allocation8 + $0x3a8] sm:$0xff]  ;;  %v840_v16 = vld [vmem:[#allocation8 + $0x3a0] sm:$0xff] }
  0xb2   : > { %680 = vmatpush1.msra.mxu0 %v593_v57  ;;  %879 = vmatpush1.msra.mxu1 %v732_v58  ;;  %v646_v17 = vld [vmem:[#allocation7 + $0x1c8] sm:$0xff]  ;;  %v645_v19 = vld [vmem:[#allocation7 + $0x1c0] sm:$0xff]  ;;  %v628_v57 = vld [vmem:[#allocation7 + $0x138] sm:$0xff] }
  0xb3   : > { %681 = vmatprep.subr.mxu0 %v592_v59  ;;  %880 = vmatprep.subr.mxu1 %v729_v60  ;;  %v837_v18 = vld [vmem:[#allocation8 + $0x388] sm:$0xff]  ;;  %v836_v28 = vld [vmem:[#allocation8 + $0x380] sm:$0xff]  ;;  %v627_v59 = vld [vmem:[#allocation7 + $0x130] sm:$0xff] }
  0xb4   : > { %682 = vmatpush1.msra.mxu0 %v591_v61  ;;  %881 = vmatpush1.msra.mxu1 %v728_v62  ;;  %v833_v30 = vld [vmem:[#allocation8 + $0x368] sm:$0xff]  ;;  %v832_v31 = vld [vmem:[#allocation8 + $0x360] sm:$0xff] }
  0xb5   : > { %683 = vmatprep.subr.mxu0 %v590_v63  ;;  %882 = vmatprep.subr.mxu1 %v725_v2  ;;  %v829_v32 = vld [vmem:[#allocation8 + $0x348] sm:$0xff]  ;;  %v828_v34 = vld [vmem:[#allocation8 + $0x340] sm:$0xff] }
  0xb6   : > { %684 = vmatpush1.msra.mxu0 %v589_v3  ;;  %883 = vmatpush1.msra.mxu1 %v724_v4  ;;  %v825_v36 = vld [vmem:[#allocation8 + $0x328] sm:$0xff]  ;;  %v824_v38 = vld [vmem:[#allocation8 + $0x320] sm:$0xff]  ;;  %v624_v3 = vld [vmem:[#allocation7 + $0x118] sm:$0xff] }
  0xb7   : > { %685 = vmatprep.subr.mxu0 %v652_v5  ;;  %884 = vmatprep.subr.mxu1 %v849_v6  ;;  %v638_v37 = vld [vmem:[#allocation7 + $0x188] sm:$0xff]  ;;  %v637_v39 = vld [vmem:[#allocation7 + $0x180] sm:$0xff]  ;;  %v623_v5 = vld [vmem:[#allocation7 + $0x110] sm:$0xff] }
  0xb8   : > { %686 = vmatpush2.msra.mxu0 %v651_v7  ;;  %885 = vmatpush2.msra.mxu1 %v848_v8  ;;  %v821_v40 = vld [vmem:[#allocation8 + $0x308] sm:$0xff]  ;;  %v820_v42 = vld [vmem:[#allocation8 + $0x300] sm:$0xff] }
  0xb9   : > { %687 = vmatprep.subr.mxu0 %v650_v9  ;;  %886 = vmatprep.subr.mxu1 %v845_v10  ;;  %v817_v44 = vld [vmem:[#allocation8 + $0x2e8] sm:$0xff]  ;;  %v816_v46 = vld [vmem:[#allocation8 + $0x2e0] sm:$0xff] }
  0xba   : > { %688 = vmatpush2.msra.mxu0 %v649_v11  ;;  %887 = vmatpush2.msra.mxu1 %v844_v12  ;;  %v634_v45 = vld [vmem:[#allocation7 + $0x168] sm:$0xff]  ;;  %v633_v47 = vld [vmem:[#allocation7 + $0x160] sm:$0xff]  ;;  %v787_v12 = vld [vmem:[#allocation8 + $0x1f8] sm:$0xff] }
  0xbb   : > { %689 = vmatprep.subr.mxu0 %v648_v13  ;;  %888 = vmatprep.subr.mxu1 %v841_v14  ;;  %v813_v48 = vld [vmem:[#allocation8 + $0x2c8] sm:$0xff]  ;;  %v812_v50 = vld [vmem:[#allocation8 + $0x2c0] sm:$0xff] }
  0xbc   : > { %690 = vmatpush2.msra.mxu0 %v647_v15  ;;  %889 = vmatpush2.msra.mxu1 %v840_v16  ;;  %v809_v52 = vld [vmem:[#allocation8 + $0x2a8] sm:$0xff]  ;;  %v808_v54 = vld [vmem:[#allocation8 + $0x2a0] sm:$0xff]  ;;  %v563_v16 = vlaneseq }
  0xbd   : > { %691 = vmatprep.subr.mxu0 %v646_v17  ;;  %890 = vmatprep.subr.mxu1 %v837_v18  ;;  %v630_v53 = vld [vmem:[#allocation7 + $0x148] sm:$0xff]  ;;  %v629_v55 = vld [vmem:[#allocation7 + $0x140] sm:$0xff] }
  0xbe   : > { %692 = vmatpush2.msra.mxu0 %v645_v19  ;;  %891 = vmatpush2.msra.mxu1 %v836_v28  ;;  %v805_v56 = vld [vmem:[#allocation8 + $0x288] sm:$0xff]  ;;  %v804_v58 = vld [vmem:[#allocation8 + $0x280] sm:$0xff]  ;;  %v3611_v17 = vshrl.u32 %v563_v16, 7  ;;  %v819_v16 = vld [vmem:[#allocation8 + $0x2f8] sm:$0xff] }
  0xbf   : > { %693 = vmatprep.subr.mxu0 %v644_v27  ;;  %892 = vmatprep.subr.mxu1 %v833_v30  ;;  %v801_v60 = vld [vmem:[#allocation8 + $0x268] sm:$0xff]  ;;  %v800_v62 = vld [vmem:[#allocation8 + $0x260] sm:$0xff] }
  0xc0   : > { %694 = vmatpush2.msra.mxu0 %v643_v29  ;;  %893 = vmatpush2.msra.mxu1 %v832_v31  ;;  %v626_v61 = vld [vmem:[#allocation7 + $0x128] sm:$0xff]  ;;  %v625_v63 = vld [vmem:[#allocation7 + $0x120] sm:$0xff]  ;;  %v3614_v18 = vsub.s32 1, %v3611_v17  ;;  %v3617_v19 = vsub.s32 0, %v3611_v17 }
  0xc1   : > { %894 = vmatprep.subr.mxu1 %v829_v32  ;;  %v797_v2 = vld [vmem:[#allocation8 + $0x248] sm:$0xff]  ;;  %v796_v4 = vld [vmem:[#allocation8 + $0x240] sm:$0xff] }
  0xc2   : > { %895 = vmatpush2.msra.mxu1 %v828_v34  ;;  %v793_v6 = vld [vmem:[#allocation8 + $0x228] sm:$0xff]  ;;  %v792_v8 = vld [vmem:[#allocation8 + $0x220] sm:$0xff]  ;;  %v783_v34 = vld [vmem:[#allocation8 + $0x1d8] sm:$0xff] }
  0xc3   : > { %896 = vmatprep.subr.mxu1 %v825_v36  ;;  %v622_v7 = vld [vmem:[#allocation7 + $0x108] sm:$0xff]  ;;  %v621_v9 = vld [vmem:[#allocation7 + $0x100] sm:$0xff]  ;;  %v775_v36 = vld [vmem:[#allocation8 + $0x198] sm:$0xff] }
  0xc4   : > { %897 = vmatpush2.msra.mxu1 %v824_v38  ;;  %v789_v10 = vld [vmem:[#allocation8 + $0x208] sm:$0xff]  ;;  %v788_v11 = vld [vmem:[#allocation8 + $0x200] sm:$0xff]  ;;  %v771_v38 = vld [vmem:[#allocation8 + $0x178] sm:$0xff] }
  0xc5   : > { %898 = vmatprep.subr.mxu1 %v821_v40  ;;  %v767_v40 = vld [vmem:[#allocation8 + $0x158] sm:$0xff] }
  0xc6   : > { %899 = vmatpush2.msra.mxu1 %v820_v42  ;;  %v763_v42 = vld [vmem:[#allocation8 + $0x138] sm:$0xff] }
  0xc7   : > { %900 = vmatprep.subr.mxu1 %v817_v44  ;;  %v759_v44 = vld [vmem:[#allocation8 + $0x118] sm:$0xff] }
  0xc8   : > { %901 = vmatpush2.msra.mxu1 %v816_v46  ;;  %v755_v46 = vld [vmem:[#allocation8 + $0xf8] sm:$0xff] }
  0xc9   : > { %902 = vmatprep.subr.mxu1 %v813_v48  ;;  %v751_v48 = vld [vmem:[#allocation8 + $0xd8] sm:$0xff] }
  0xca   : > { %903 = vmatpush2.msra.mxu1 %v812_v50  ;;  %v747_v50 = vld [vmem:[#allocation8 + $0xb8] sm:$0xff] }
  0xcb   : > { %904 = vmatprep.subr.mxu1 %v809_v52  ;;  %v743_v52 = vld [vmem:[#allocation8 + $0x98] sm:$0xff] }
  0xcc   : > { %905 = vmatpush2.msra.mxu1 %v808_v54  ;;  %v739_v54 = vld [vmem:[#allocation8 + $0x78] sm:$0xff] }
  0xcd   : > { %906 = vmatprep.subr.mxu1 %v805_v56  ;;  %v735_v56 = vld [vmem:[#allocation8 + $0x58] sm:$0xff] }
  0xce   : > { %907 = vmatpush2.msra.mxu1 %v804_v58  ;;  %v731_v58 = vld [vmem:[#allocation8 + $0x38] sm:$0xff] }
  0xcf   : > { %908 = vmatprep.subr.mxu1 %v801_v60  ;;  %v727_v60 = vld [vmem:[#allocation8 + $0x18] sm:$0xff] }
  0xd0   : > { %909 = vmatpush2.msra.mxu1 %v800_v62  ;;  %v851_v62 = vld [vmem:[#allocation8 + $0x3f8] sm:$0xff] }
  0xd1   : > { %910 = vmatprep.subr.mxu1 %v797_v2  ;;  %v847_v2 = vld [vmem:[#allocation8 + $0x3d8] sm:$0xff] }
  0xd2   : > { %911 = vmatpush2.msra.mxu1 %v796_v4  ;;  %v843_v4 = vld [vmem:[#allocation8 + $0x3b8] sm:$0xff] }
  0xd3   : > { %912 = vmatprep.subr.mxu1 %v793_v6  ;;  %v839_v6 = vld [vmem:[#allocation8 + $0x398] sm:$0xff] }
  0xd4   : > { %913 = vmatpush2.msra.mxu1 %v792_v8  ;;  %v835_v8 = vld [vmem:[#allocation8 + $0x378] sm:$0xff] }
  0xd5   : > { %914 = vmatprep.subr.mxu1 %v789_v10  ;;  %v831_v10 = vld [vmem:[#allocation8 + $0x358] sm:$0xff] }
  0xd6   : > { %915 = vmatpush2.msra.mxu1 %v788_v11  ;;  %v830_v11 = vld [vmem:[#allocation8 + $0x350] sm:$0xff] }
 0x120   : > { %v546_v20 = vpop.xlane.xlu0 %545 }
 0x121   : > { %v548_v21 = vmul.f32 0.00390625, %v546_v20  ;;  %v561_v20 = vld [vmem:[#allocation5] sm:$0x3] }
 0x123   : > { %v3602_v22 = vsub.f32 %v3594_v0, %v548_v21  ;;  %v3605_v23 = vsub.f32 %v3597_v1, %v548_v21  ;;  %v642_v0 = vld [vmem:[#allocation7 + $0x1a8] sm:$0xff]  ;;  %v641_v1 = vld [vmem:[#allocation7 + $0x1a0] sm:$0xff]  ;;  %v575_v21 = vld [vmem:[%s3757_s2] sm:$0x3] }
 0x124   : > { %695 = vmatprep.subr.mxu0 %v642_v0  ;;  %v584_v28 = vrot.slane %v575_v21, %v3614_v18  ;;  %v580_v30 = vrot.slane %v575_v21, %v3617_v19  ;;  %v815_v21 = vld [vmem:[#allocation8 + $0x2d8] sm:$0xff] }
 0x125   : > { %v551_v24 = vmul.f32 %v3602_v22, %v3602_v22  ;;  %v552_v25 = vmul.f32 %v3605_v23, %v3605_v23  ;;  %696 = vmatpush2.msra.mxu0 %v641_v1 }
 0x126   : > { %697 = vmatprep.subr.mxu0 %v640_v33  ;;  %v786_v33 = vld [vmem:[#allocation8 + $0x1f0] sm:$0xff] }
 0x127   : > { %v553_v26 = vadd.f32 %v552_v25, %v551_v24  ;;  %698 = vmatpush2.msra.mxu0 %v639_v35  ;;  %v570_v24 = vrot.slane %v561_v20, %v3614_v18  ;;  %v566_v25 = vrot.slane %v561_v20, %v3617_v19  ;;  %v779_v35 = vld [vmem:[#allocation8 + $0x1b8] sm:$0xff]  ;;  %v818_v20 = vld [vmem:[#allocation8 + $0x2f0] sm:$0xff] }
 0x128   : > { %699 = vmatprep.subr.mxu0 %v638_v37  ;;  %v774_v37 = vld [vmem:[#allocation8 + $0x190] sm:$0xff] }
 0x129   : > { %554 = vadd.xlane.f32.xlu0 %v553_v26  ;;  %700 = vmatpush2.msra.mxu0 %v637_v39  ;;  %v770_v39 = vld [vmem:[#allocation8 + $0x170] sm:$0xff] }
 0x12a   : > { %701 = vmatprep.subr.mxu0 %v636_v41  ;;  %v766_v41 = vld [vmem:[#allocation8 + $0x150] sm:$0xff] }
 0x12b   : > { %702 = vmatpush2.msra.mxu0 %v635_v43  ;;  %v762_v43 = vld [vmem:[#allocation8 + $0x130] sm:$0xff] }
 0x12c   : > { %703 = vmatprep.subr.mxu0 %v634_v45  ;;  %v758_v45 = vld [vmem:[#allocation8 + $0x110] sm:$0xff] }
 0x12d   : > { %704 = vmatpush2.msra.mxu0 %v633_v47  ;;  %v754_v47 = vld [vmem:[#allocation8 + $0xf0] sm:$0xff] }
 0x12e   : > { %705 = vmatprep.subr.mxu0 %v632_v49  ;;  %v750_v49 = vld [vmem:[#allocation8 + $0xd0] sm:$0xff] }
 0x12f   : > { %706 = vmatpush2.msra.mxu0 %v631_v51  ;;  %v746_v51 = vld [vmem:[#allocation8 + $0xb0] sm:$0xff] }
 0x130   : > { %707 = vmatprep.subr.mxu0 %v630_v53  ;;  %v742_v53 = vld [vmem:[#allocation8 + $0x90] sm:$0xff] }
 0x131   : > { %708 = vmatpush2.msra.mxu0 %v629_v55  ;;  %v738_v55 = vld [vmem:[#allocation8 + $0x70] sm:$0xff] }
 0x132   : > { %709 = vmatprep.subr.mxu0 %v628_v57  ;;  %v734_v57 = vld [vmem:[#allocation8 + $0x50] sm:$0xff] }
 0x133   : > { %710 = vmatpush2.msra.mxu0 %v627_v59  ;;  %v730_v59 = vld [vmem:[#allocation8 + $0x30] sm:$0xff] }
 0x134   : > { %711 = vmatprep.subr.mxu0 %v626_v61  ;;  %v726_v61 = vld [vmem:[#allocation8 + $0x10] sm:$0xff] }
 0x135   : > { %712 = vmatpush2.msra.mxu0 %v625_v63  ;;  %v850_v63 = vld [vmem:[#allocation8 + $0x3f0] sm:$0xff] }
 0x136   : > { %713 = vmatprep.subr.mxu0 %v624_v3  ;;  %v846_v3 = vld [vmem:[#allocation8 + $0x3d0] sm:$0xff] }
 0x137   : > { %714 = vmatpush2.msra.mxu0 %v623_v5  ;;  %v842_v5 = vld [vmem:[#allocation8 + $0x3b0] sm:$0xff] }
 0x138   : > { %715 = vmatprep.subr.mxu0 %v622_v7  ;;  %v838_v7 = vld [vmem:[#allocation8 + $0x390] sm:$0xff] }
 0x139   : > { %716 = vmatpush2.msra.mxu0 %v621_v9  ;;  %v834_v9 = vld [vmem:[#allocation8 + $0x370] sm:$0xff] }
 0x13a   : > { %923 = vmatprep.subr.mxu0 %v787_v12  ;;  %v827_v12 = vld [vmem:[#allocation8 + $0x338] sm:$0xff] }
 0x1b2   : > { %v555_v13 = vpop.xlane.xlu0 %554 }
 0x1b3   : > { %v556_v14 = vmul.f32 0.00390625, %v555_v13  ;;  %v826_v13 = vld [vmem:[#allocation8 + $0x330] sm:$0xff] }
 0x1b5   : > { %v557_v15 = vadd.f32 1e-05, %v556_v14  ;;  %v823_v14 = vld [vmem:[#allocation8 + $0x318] sm:$0xff] }
 0x1b7   : > { %3032 = vrsqrt.f32 %v557_v15  ;;  %v822_v15 = vld [vmem:[#allocation8 + $0x310] sm:$0xff] }
 0x1c4   : > { %v3033_v26 = vpop.eup %3032 }
 0x1c5   : > { %v560_v27 = vmul.f32 %v3033_v26, %v3605_v23  ;;  %v559_v29 = vmul.f32 %v3033_v26, %v3602_v22  ;;  %v782_v23 = vld [vmem:[#allocation8 + $0x1d0] sm:$0xff] }
 0x1c6   : > { %v778_v22 = vld [vmem:[#allocation8 + $0x1b0] sm:$0xff] }
 0x1c7   : > { %v574_v0 = vmul.f32 %v570_v24, %v560_v27  ;;  %v573_v31 = vmul.f32 %v566_v25, %v559_v29  ;;  %v814_v24 = vld [vmem:[#allocation8 + $0x2d0] sm:$0xff]  ;;  %v811_v25 = vld [vmem:[#allocation8 + $0x2b8] sm:$0xff] }
 0x1c8   : > { %v810_v26 = vld [vmem:[#allocation8 + $0x2b0] sm:$0xff]  ;;  %v807_v27 = vld [vmem:[#allocation8 + $0x298] sm:$0xff] }
 0x1c9   : > { %v588_v1 = vadd.f32 %v584_v28, %v574_v0  ;;  %v3628_v32 = vadd.f32 %v580_v30, %v573_v31  ;;  %v806_v28 = vld [vmem:[#allocation8 + $0x290] sm:$0xff]  ;;  %v803_v29 = vld [vmem:[#allocation8 + $0x278] sm:$0xff] }
 0x1ca   : > { %v802_v30 = vld [vmem:[#allocation8 + $0x270] sm:$0xff]  ;;  %v799_v0 = vld [vmem:[#allocation8 + $0x258] sm:$0xff] }
 0x1cb   : > { %717 = vmatprep.mubr.f32.mxu0 %v588_v1  ;;  %916 = vmatprep.mubr.f32.mxu1 %v588_v1  ;;  %v798_v31 = vld [vmem:[#allocation8 + $0x250] sm:$0xff] }
 0x1cc   : > { %718 = vmatmul.mubr.f32.vlgmr.msra.gmra.mxu0 %v3628_v32  ;;  %917 = vmatmul.mubr.f32.vlgmr.msra.gmra.mxu1 %v3628_v32 }
 0x1cd   : > { %924 = vmatpush1.msra.mxu0 %v786_v33  ;;  %987 = vmatprep.mubr.f32.mxu0 %v588_v1  ;;  %v795_v1 = vld [vmem:[#allocation8 + $0x238] sm:$0xff]  ;;  %v794_v33 = vld [vmem:[#allocation8 + $0x230] sm:$0xff] }
 0x1ce   : > { %925 = vmatprep.subr.mxu0 %v783_v34  ;;  %v791_v34 = vld [vmem:[#allocation8 + $0x218] sm:$0xff] }
 0x1cf   : > { %926 = vmatpush1.msra.mxu0 %v782_v23  ;;  %v790_v23 = vld [vmem:[#allocation8 + $0x210] sm:$0xff] }
 0x1d0   : > { %927 = vmatprep.subr.mxu0 %v779_v35  ;;  %v3321_v35 = vmov 0.0  }
 0x1d1   : > { %928 = vmatpush1.msra.mxu0 %v778_v22  ;;  %2907 = vmatprep.subr.mxu1 %v3321_v35 }
 0x1d2   : > { %929 = vmatprep.subr.mxu0 %v775_v36  ;;  %2909 = vmatprep.mubr.msk.f32.mxu1 %vm3322_vm0, %v3321_v35 }
 0x1d3   : > { %930 = vmatpush1.msra.mxu0 %v774_v37 }
 0x1d4   : > { %931 = vmatprep.subr.mxu0 %v771_v38 }
 0x1d5   : > { %932 = vmatpush1.msra.mxu0 %v770_v39 }
 0x1d6   : > { %933 = vmatprep.subr.mxu0 %v767_v40 }
 0x1d7   : > { %934 = vmatpush1.msra.mxu0 %v766_v41 }
 0x1d8   : > { %935 = vmatprep.subr.mxu0 %v763_v42 }
 0x1d9   : > { %936 = vmatpush1.msra.mxu0 %v762_v43 }
 0x1da   : > { %937 = vmatprep.subr.mxu0 %v759_v44 }
 0x1db   : > { %938 = vmatpush1.msra.mxu0 %v758_v45 }
 0x1dc   : > { %939 = vmatprep.subr.mxu0 %v755_v46 }
 0x1dd   : > { %940 = vmatpush1.msra.mxu0 %v754_v47 }
 0x1de   : > { %941 = vmatprep.subr.mxu0 %v751_v48 }
 0x1df   : > { %942 = vmatpush1.msra.mxu0 %v750_v49 }
 0x1e0   : > { %943 = vmatprep.subr.mxu0 %v747_v50 }
 0x1e1   : > { %944 = vmatpush1.msra.mxu0 %v746_v51 }
 0x1e2   : > { %945 = vmatprep.subr.mxu0 %v743_v52 }
 0x1e3   : > { %946 = vmatpush1.msra.mxu0 %v742_v53 }
 0x1e4   : > { %947 = vmatprep.subr.mxu0 %v739_v54 }
 0x1e5   : > { %948 = vmatpush1.msra.mxu0 %v738_v55 }
 0x1e6   : > { %949 = vmatprep.subr.mxu0 %v735_v56 }
 0x1e7   : > { %950 = vmatpush1.msra.mxu0 %v734_v57 }
 0x1e8   : > { %951 = vmatprep.subr.mxu0 %v731_v58  ;;  %v1368_v58 = vld [vmem:[#allocation10 + $0x1f8] sm:$0xff] }
 0x1e9   : > { %952 = vmatpush1.msra.mxu0 %v730_v59 }
 0x1ea   : > { %953 = vmatprep.subr.mxu0 %v727_v60 }
 0x1eb   : > { %954 = vmatpush1.msra.mxu0 %v726_v61 }
 0x1ec   : > { %955 = vmatprep.subr.mxu0 %v851_v62 }
 0x1ed   : > { %956 = vmatpush2.msra.mxu0 %v850_v63  ;;  %v1367_v63 = vld [vmem:[#allocation10 + $0x1f0] sm:$0xff] }
 0x1ee   : > { %957 = vmatprep.subr.mxu0 %v847_v2  ;;  %v1366_v2 = vld [vmem:[#allocation10 + $0x1e8] sm:$0xff] }
 0x1ef   : > { %958 = vmatpush2.msra.mxu0 %v846_v3  ;;  %v1365_v3 = vld [vmem:[#allocation10 + $0x1e0] sm:$0xff] }
 0x1f0   : > { %959 = vmatprep.subr.mxu0 %v843_v4 }
 0x1f1   : > { %960 = vmatpush2.msra.mxu0 %v842_v5  ;;  %v1364_v5 = vld [vmem:[#allocation10 + $0x1d8] sm:$0xff] }
 0x1f2   : > { %961 = vmatprep.subr.mxu0 %v839_v6 }
 0x1f3   : > { %962 = vmatpush2.msra.mxu0 %v838_v7  ;;  %v1363_v7 = vld [vmem:[#allocation10 + $0x1d0] sm:$0xff] }
 0x1f4   : > { %963 = vmatprep.subr.mxu0 %v835_v8  ;;  %v1362_v8 = vld [vmem:[#allocation10 + $0x1c8] sm:$0xff] }
 0x1f5   : > { %964 = vmatpush2.msra.mxu0 %v834_v9  ;;  %v1361_v9 = vld [vmem:[#allocation10 + $0x1c0] sm:$0xff] }
 0x1f6   : > { %965 = vmatprep.subr.mxu0 %v831_v10  ;;  %v1360_v10 = vld [vmem:[#allocation10 + $0x1b8] sm:$0xff] }
 0x1f7   : > { %966 = vmatpush2.msra.mxu0 %v830_v11  ;;  %v1359_v11 = vld [vmem:[#allocation10 + $0x1b0] sm:$0xff] }
 0x1f8   : > { %967 = vmatprep.subr.mxu0 %v827_v12  ;;  %v1358_v12 = vld [vmem:[#allocation10 + $0x1a8] sm:$0xff] }
 0x1f9   : > { %968 = vmatpush2.msra.mxu0 %v826_v13  ;;  %v1357_v13 = vld [vmem:[#allocation10 + $0x1a0] sm:$0xff] }
 0x1fa   : > { %969 = vmatprep.subr.mxu0 %v823_v14  ;;  %v1356_v14 = vld [vmem:[#allocation10 + $0x198] sm:$0xff] }
 0x1fb   : > { %970 = vmatpush2.msra.mxu0 %v822_v15  ;;  %v1355_v15 = vld [vmem:[#allocation10 + $0x190] sm:$0xff] }
 0x1fc   : > { %971 = vmatprep.subr.mxu0 %v819_v16  ;;  %v1354_v16 = vld [vmem:[#allocation10 + $0x188] sm:$0xff] }
 0x1fd   : > { %972 = vmatpush2.msra.mxu0 %v818_v20  ;;  %v1353_v20 = vld [vmem:[#allocation10 + $0x180] sm:$0xff] }
 0x1fe   : > { %973 = vmatprep.subr.mxu0 %v815_v21  ;;  %v1352_v21 = vld [vmem:[#allocation10 + $0x178] sm:$0xff] }
 0x1ff   : > { %974 = vmatpush2.msra.mxu0 %v814_v24  ;;  %v1351_v24 = vld [vmem:[#allocation10 + $0x170] sm:$0xff] }
 0x200   : > { %975 = vmatprep.subr.mxu0 %v811_v25  ;;  %v1350_v25 = vld [vmem:[#allocation10 + $0x168] sm:$0xff] }
 0x201   : > { %976 = vmatpush2.msra.mxu0 %v810_v26  ;;  %v1349_v26 = vld [vmem:[#allocation10 + $0x160] sm:$0xff] }
 0x202   : > { %977 = vmatprep.subr.mxu0 %v807_v27  ;;  %v1348_v27 = vld [vmem:[#allocation10 + $0x158] sm:$0xff] }
 0x203   : > { %978 = vmatpush2.msra.mxu0 %v806_v28  ;;  %v1347_v28 = vld [vmem:[#allocation10 + $0x150] sm:$0xff] }
 0x204   : > { %979 = vmatprep.subr.mxu0 %v803_v29  ;;  %v1346_v29 = vld [vmem:[#allocation10 + $0x148] sm:$0xff] }
 0x205   : > { %980 = vmatpush2.msra.mxu0 %v802_v30  ;;  %v1345_v30 = vld [vmem:[#allocation10 + $0x140] sm:$0xff] }
 0x206   : > { %981 = vmatprep.subr.mxu0 %v799_v0  ;;  %v1344_v0 = vld [vmem:[#allocation10 + $0x138] sm:$0xff] }
 0x207   : > { %982 = vmatpush2.msra.mxu0 %v798_v31  ;;  %v1343_v31 = vld [vmem:[#allocation10 + $0x130] sm:$0xff] }
 0x208   : > { %983 = vmatprep.subr.mxu0 %v795_v1  ;;  %v1342_v1 = vld [vmem:[#allocation10 + $0x128] sm:$0xff] }
 0x209   : > { %984 = vmatpush2.msra.mxu0 %v794_v33  ;;  %v1341_v33 = vld [vmem:[#allocation10 + $0x120] sm:$0xff] }
 0x20a   : > { %985 = vmatprep.subr.mxu0 %v791_v34  ;;  %v1340_v34 = vld [vmem:[#allocation10 + $0x118] sm:$0xff] }
 0x20b   : > { %986 = vmatpush2.msra.mxu0 %v790_v23  ;;  %v1339_v23 = vld [vmem:[#allocation10 + $0x110] sm:$0xff] }
 0x20c   : > { %988 = vmatmul.mubr.f32.vlgmr.msra.gmra.mxu0 %v3628_v32  ;;  %2897 = vmatprep.subr.mxu0 %v3321_v35 }
 0x20d   : > { %2899 = vmatprep.mubr.msk.f32.mxu0 %vm3322_vm0, %v3321_v35 }
 0x28c   : > { %v918_v22 = vpop.f32.mrf.mxu1  ;;  %v719_v36 = vpop.f32.mrf.mxu0 }
 0x28d   : > { %2898 = vmatpush3.xpose.msra.mxu0 %v918_v22  ;;  %v1338_v22 = vld [vmem:[#allocation10 + $0x108] sm:$0xff] }
 0x28e   : > { %v920_v37 = vpop.f32.mrf.mxu1  ;;  %2902 = vmatprep.subr.mxu0 %v3321_v35  ;;  %v721_v32 = vpop.f32.mrf.mxu0 }
 0x28f   : > { %2908 = vmatpush3.xpose.msra.mxu1 %v920_v37  ;;  %v1181_v37 = vld [vmem:[#allocation10 + $0xf8] sm:$0xff] }
 0x290   : > { %2900 = vmatmul.mubr.f32.vlgmr.msra.gmra.mxu0 %v719_v36  ;;  %2912 = vmatprep.subr.mxu1 %v3321_v35  ;;  %v1337_v36 = vld [vmem:[#allocation10 + $0x100] sm:$0xff] }
 0x291   : > { %2904 = vmatprep.mubr.msk.f32.mxu0 %vm3322_vm0, %v3321_v35 }
 0x292   : > { %2910 = vmatmul.mubr.f32.vlgmr.msra.gmra.mxu1 %v721_v32  ;;  %v1180_v32 = vld [vmem:[#allocation10 + $0xf0] sm:$0xff] }
 0x293   : > { %2914 = vmatprep.mubr.msk.f32.mxu1 %vm3322_vm0, %v3321_v35 }
 0x2cc   : > { %v989_v38 = vpop.f32.mrf.mxu0 }
 0x2cd   : > { %2903 = vmatpush3.msra.mxu0 %v989_v38 }
 0x2ce   : > { %v991_v39 = vpop.f32.mrf.mxu0 }
 0x2cf   : > { %2913 = vmatpush3.msra.mxu1 %v991_v39  ;;  %v1179_v39 = vld [vmem:[#allocation10 + $0xe8] sm:$0xff] }
 0x2d0   : > { %1369 = vmatprep.subr.mxu1 %v1368_v58  ;;  %v1162_v58 = vld [vmem:[#allocation10 + $0x60] sm:$0xff] }
 0x350   : > { %v1060_v40 = vpop.f32.mrf.mxu0 }
 0x351   : > { %v1064_v45 = vmul.f32 0.088388346, %v1060_v40  ;;  %v1178_v40 = vld [vmem:[#allocation10 + $0xe0] sm:$0xff] }
 0x352   : > { %v2901_v41 = vpop.f32.mrf.mxu0  ;;  %v1248_v42 = vpop.f32.mrf.mxu1 }
 0x353   : > { %v1252_v43 = vmul.f32 0.088388346, %v1248_v42  ;;  %v1066_v47 = vsel %vm1065_vm1, %v1064_v45, -inf  ;;  %v1177_v42 = vld [vmem:[#allocation10 + $0xd8] sm:$0xff] }
 0x354   : > { %v2911_v44 = vpop.f32.mrf.mxu1 }
 0x355   : > { %v1253_v46 = vsel %vm1065_vm1, %v1252_v43, -inf }
 0x356   : > { %1254 = vmax.xlane.f32.xlu1 %v1253_v46  ;;  %v1174_v46 = vld [vmem:[#allocation10 + $0xc0] sm:$0xff] }
 0x35a   : > { %1067 = vmax.xlane.f32.xlu1 %v1066_v47 }
 0x3df   : > { %v1255_v48 = vpop.xlane.xlu1 %1254 }
 0x3e0   : > { %v1256_v49 = vsub.f32 %v1252_v43, %v1255_v48  ;;  %v1176_v43 = vld [vmem:[#allocation10 + $0xd0] sm:$0xff]  ;;  %v1173_v48 = vld [vmem:[#allocation10 + $0xb8] sm:$0xff] }
 0x3e2   : > { %v1257_v50 = vmul.f32 1.442695, %v1256_v49  ;;  %v1172_v49 = vld [vmem:[#allocation10 + $0xb0] sm:$0xff] }
 0x3e3   : > { %v1068_v51 = vpop.xlane.xlu1 %1067 }
 0x3e4   : > { %3034 = vpow2.f32 %v1257_v50  ;;  %v1069_v52 = vsub.f32 %v1064_v45, %v1068_v51  ;;  %v1175_v45 = vld [vmem:[#allocation10 + $0xc8] sm:$0xff]  ;;  %v1170_v51 = vld [vmem:[#allocation10 + $0xa0] sm:$0xff] }
 0x3e5   : > { %v1171_v50 = vld [vmem:[#allocation10 + $0xa8] sm:$0xff] }
 0x3e6   : > { %v1070_v53 = vmul.f32 1.442695, %v1069_v52  ;;  %v1169_v52 = vld [vmem:[#allocation10 + $0x98] sm:$0xff] }
 0x3e8   : > { %3036 = vpow2.f32 %v1070_v53  ;;  %v1167_v53 = vld [vmem:[#allocation10 + $0x88] sm:$0xff] }
 0x3f1   : > { %v3035_v54 = vpop.eup %3034 }
 0x3f2   : > { %v1259_v55 = vsel %vm1065_vm1, %v3035_v54, 0.0 }
 0x3f3   : > { %1260 = vadd.xlane.f32.xlu0 %v1259_v55  ;;  %v1165_v55 = vld [vmem:[#allocation10 + $0x78] sm:$0xff] }
 0x3f5   : > { %v3037_v56 = vpop.eup %3036 }
 0x3f6   : > { %v1072_v57 = vsel %vm1065_vm1, %v3037_v56, 0.0 }
 0x3f7   : > { %1073 = vadd.xlane.f32.xlu1 %v1072_v57  ;;  %v1163_v57 = vld [vmem:[#allocation10 + $0x68] sm:$0xff] }
 0x47c   : > { %v1261_v59 = vpop.xlane.xlu0 %1260 }
 0x47d   : > { %3038 = vrcp.f32 %v1261_v59  ;;  %v1161_v59 = vld [vmem:[#allocation10 + $0x58] sm:$0xff] }
 0x480   : > { %v1074_v60 = vpop.xlane.xlu1 %1073 }
 0x481   : > { %3040 = vrcp.f32 %v1074_v60  ;;  %v1160_v60 = vld [vmem:[#allocation10 + $0x50] sm:$0xff] }
 0x48a   : > { %v3039_v61 = vpop.eup %3038 }
 0x48b   : > { %v1263_v62 = vmul.f32 %v3039_v61, %v3035_v54  ;;  %v1166_v54 = vld [vmem:[#allocation10 + $0x80] sm:$0xff]  ;;  %v1159_v61 = vld [vmem:[#allocation10 + $0x48] sm:$0xff] }
 0x48d   : > { %2915 = vmatmul.mubr.msk.f32.vlgmr.msra.gmra.mxu1 %vm1065_vm1, %v1263_v62  ;;  %v1158_v62 = vld [vmem:[#allocation10 + $0x40] sm:$0xff] }
 0x48e   : > { %v3041_v4 = vpop.eup %3040  ;;  %1370 = vmatpush1.msra.mxu1 %v1367_v63  ;;  %1433 = vmatprep.mubr.f32.mxu1 %v3321_v35  ;;  %v1157_v63 = vld [vmem:[#allocation10 + $0x38] sm:$0xff] }
 0x48f   : > { %v1076_v6 = vmul.f32 %v3041_v4, %v3037_v56  ;;  %1371 = vmatprep.subr.mxu1 %v1366_v2  ;;  %v1164_v56 = vld [vmem:[#allocation10 + $0x70] sm:$0xff]  ;;  %v1154_v4 = vld [vmem:[#allocation10 + $0x20] sm:$0xff] }
 0x490   : > { %1372 = vmatpush1.msra.mxu1 %v1365_v3  ;;  %v1156_v2 = vld [vmem:[#allocation10 + $0x30] sm:$0xff]  ;;  %v1155_v3 = vld [vmem:[#allocation10 + $0x28] sm:$0xff] }
 0x491   : > { %2905 = vmatmul.mubr.msk.f32.vlgmr.msra.gmra.mxu0 %vm1065_vm1, %v1076_v6  ;;  %1373 = vmatprep.subr.mxu1 %v1364_v5  ;;  %v1153_v5 = vld [vmem:[#allocation10 + $0x18] sm:$0xff]  ;;  %v1152_v6 = vld [vmem:[#allocation10 + $0x10] sm:$0xff] }
 0x492   : > { %1374 = vmatpush1.msra.mxu1 %v1363_v7  ;;  %v1151_v7 = vld [vmem:[#allocation10 + $0x8] sm:$0xff] }
 0x493   : > { %1375 = vmatprep.subr.mxu1 %v1362_v8  ;;  %v1150_v8 = vld [vmem:[#allocation10] sm:$0xff] }
 0x494   : > { %1376 = vmatpush1.msra.mxu1 %v1361_v9 }
 0x495   : > { %1377 = vmatprep.subr.mxu1 %v1360_v10 }
 0x496   : > { %1378 = vmatpush1.msra.mxu1 %v1359_v11 }
 0x497   : > { %1379 = vmatprep.subr.mxu1 %v1358_v12  ;;  %v1513_v12 = vld [vmem:[%s3761_s6] sm:$0x3] }
 0x498   : > { %1380 = vmatpush1.msra.mxu1 %v1357_v13 }
 0x499   : > { %1381 = vmatprep.subr.mxu1 %v1356_v14 }
 0x49a   : > { %1382 = vmatpush1.msra.mxu1 %v1355_v15  ;;  %v3044_v15 = vld [vmem:[%s3575_s27] sm:$0xff] }
 0x49b   : > { %1383 = vmatprep.subr.mxu1 %v1354_v16 }
 0x49c   : > { %1384 = vmatpush1.msra.mxu1 %v1353_v20  ;;  %v1518_v20 = vrot.slane %v1513_v12, %v3617_v19 }
 0x49d   : > { %1385 = vmatprep.subr.mxu1 %v1352_v21 }
 0x49e   : > { %1386 = vmatpush1.msra.mxu1 %v1351_v24  ;;  %v1522_v24 = vrot.slane %v1513_v12, %v3614_v18  ;;  %v1596_v12 = vld [vmem:[#allocation11 + $0xc8] sm:$0xff] }
 0x49f   : > { %1387 = vmatprep.subr.mxu1 %v1350_v25  ;;  %v3045_v25 = vld [vmem:[%s3575_s27 + $0x8] sm:$0xff]  ;;  %s541_s27 = scalar_lea.vmem [#allocation14], %s2872_s30  ;;  %s3234_s30 = sshll.u32 %s3323_s14, 4  ;;  %s3235_s30 = int_to_ptr.vmem [resolvable:$false] %s3234_s30 }
 0x4a0   : > { %1388 = vmatpush1.msra.mxu1 %v1349_v26  ;;  %s2732_s3 = sshll.u32 %s541_s27, 4  ;;  %s3236_s29 = scalar_lea.vmem %s3235_s30, 512  ;;  %s2733_s3 = int_to_ptr.vmem [resolvable:$true] %s2732_s3 }
 0x4a1   : > { %1389 = vmatprep.subr.mxu1 %v1348_v27  ;;  %s3230_s22 = scalar_lea.vmem %s2733_s3, 256  ;;  %p3237_p4 = scmp.lt.s32.totalorder %s2733_s3, %s3235_s30 }
 0x4a2   : > { %1390 = vmatpush1.msra.mxu1 %v1347_v28  ;;  %p3231_p5 = scmp.ne.s32.totalorder %s2733_s3, %s3230_s22  ;;  %p3238_p13 = scmp.lt.s32.totalorder %s3236_s29, %s3230_s22 }
 0x4a3   : > { %1391 = vmatprep.subr.mxu1 %v1346_v29 }
 0x4a4   : > { %1392 = vmatpush1.msra.mxu1 %v1345_v30  ;;  %v1692_v30 = vld [vmem:[#allocation11 + $0x3c8] sm:$0xff]  ;;  %p3232_p8 = pnand %p3231_p5, %p3804_p2  ;;  %p3239_p0 = por %p3238_p13, %p3237_p4 }
 0x4a5   : > { %1393 = vmatprep.subr.mxu1 %v1344_v0  ;;  %v1694_v0 = vld [vmem:[#allocation11 + $0x3d8] sm:$0xff]  ;;  %1869 = vmatprep.subr.mxu0 %v1692_v30  ;;  %v1581_v30 = vld [vmem:[#allocation11 + $0x50] sm:$0xff] }
 0x4a6   : > { %1394 = vmatpush1.msra.mxu1 %v1343_v31  ;;  %v1691_v31 = vld [vmem:[#allocation11 + $0x3c0] sm:$0xff]  ;;  %p3233_p9 = pneg %p3232_p8 }
 0x4a7   : > { %1395 = vmatprep.subr.mxu1 %v1342_v1  ;;  %v1693_v1 = vld [vmem:[#allocation11 + $0x3d0] sm:$0xff]  ;;  %1870 = vmatpush1.msra.mxu0 %v1691_v31  ;;  %v1574_v31 = vld [vmem:[#allocation11 + $0x18] sm:$0xff] }
 0x4a8   : > { %1396 = vmatpush1.msra.mxu1 %v1341_v33  ;;  %v1684_v33 = vld [vmem:[#allocation11 + $0x388] sm:$0xff]  ;;  %p3240_p1 = pnand %p3239_p0, %p3233_p9 }
 0x4a9   : > { %1397 = vmatprep.subr.mxu1 %v1340_v34  ;;  %v1686_v34 = vld [vmem:[#allocation11 + $0x398] sm:$0xff]  ;;  %1871 = vmatprep.subr.mxu0 %v1684_v33  ;;  %v1573_v33 = vld [vmem:[#allocation11 + $0x10] sm:$0xff] }
 0x4aa   : > { %1398 = vmatpush1.msra.mxu1 %v1339_v23  ;;  %v1683_v23 = vld [vmem:[#allocation11 + $0x380] sm:$0xff] }
 0x4ab   : > { %1399 = vmatprep.subr.mxu1 %v1338_v22  ;;  %v1685_v22 = vld [vmem:[#allocation11 + $0x390] sm:$0xff]  ;;  %1872 = vmatpush1.msra.mxu0 %v1683_v23  ;;  %v1822_v23 = vld [vmem:[#allocation11 + $0x7d8] sm:$0xff] }
 0x4ac   : > { %1400 = vmatpush1.msra.mxu1 %v1337_v36  ;;  %v1676_v36 = vld [vmem:[#allocation11 + $0x348] sm:$0xff] }
 0x4ad   : > { %1440 = vmatprep.subr.mxu1 %v1181_v37  ;;  %v1678_v37 = vld [vmem:[#allocation11 + $0x358] sm:$0xff]  ;;  %1873 = vmatprep.subr.mxu0 %v1676_v36  ;;  %v1821_v36 = vld [vmem:[#allocation11 + $0x7d0] sm:$0xff] }
 0x54d   : > { %v1333_v38 = vpop.f32.mrf.mxu1 }
 0x54e   : > { %1434 = vmatmul.mubr.f32.vlgmr.msra.gmra.mxu1 %v1333_v38  ;;  %v1677_v38 = vld [vmem:[#allocation11 + $0x350] sm:$0xff] }
 0x54f   : > { %1441 = vmatpush1.msra.mxu1 %v1180_v32  ;;  %v2916_v41 = vpop.f32.mrf.mxu1  ;;  %1504 = vmatprep.mubr.f32.mxu1 %v3321_v35  ;;  %v1168_v35 = vld [vmem:[#allocation10 + $0x90] sm:$0xff]  ;;  %v1675_v32 = vld [vmem:[#allocation11 + $0x340] sm:$0xff] }
 0x550   : > { %1442 = vmatprep.subr.mxu1 %v1179_v39  ;;  %v1668_v39 = vld [vmem:[#allocation11 + $0x308] sm:$0xff]  ;;  %v1667_v41 = vld [vmem:[#allocation11 + $0x300] sm:$0xff]  ;;  %1874 = vmatpush1.msra.mxu0 %v1675_v32  ;;  %v1814_v32 = vld [vmem:[#allocation11 + $0x798] sm:$0xff] }
 0x551   : > { %1443 = vmatpush1.msra.mxu1 %v1178_v40  ;;  %v1146_v44 = vpop.f32.mrf.mxu0  ;;  %v1670_v40 = vld [vmem:[#allocation11 + $0x318] sm:$0xff]  ;;  %1875 = vmatprep.subr.mxu0 %v1668_v39  ;;  %v1813_v39 = vld [vmem:[#allocation11 + $0x790] sm:$0xff] }
 0x552   : > { %1444 = vmatprep.subr.mxu1 %v1177_v42  ;;  %v1669_v42 = vld [vmem:[#allocation11 + $0x310] sm:$0xff]  ;;  %1876 = vmatpush1.msra.mxu0 %v1667_v41  ;;  %v1806_v41 = vld [vmem:[#allocation11 + $0x758] sm:$0xff] }
 0x553   : > { %1445 = vmatpush1.msra.mxu1 %v1176_v43  ;;  %v2906_v47 = vpop.f32.mrf.mxu0  ;;  %v1660_v43 = vld [vmem:[#allocation11 + $0x2c8] sm:$0xff] }
 0x554   : > { %1446 = vmatprep.subr.mxu1 %v1175_v45  ;;  %v1659_v45 = vld [vmem:[#allocation11 + $0x2c0] sm:$0xff]  ;;  %v1652_v47 = vld [vmem:[#allocation11 + $0x288] sm:$0xff]  ;;  %1877 = vmatprep.subr.mxu0 %v1660_v43  ;;  %v1805_v43 = vld [vmem:[#allocation11 + $0x750] sm:$0xff] }
 0x555   : > { %1447 = vmatpush1.msra.mxu1 %v1174_v46  ;;  %v1661_v46 = vld [vmem:[#allocation11 + $0x2d0] sm:$0xff]  ;;  %1878 = vmatpush1.msra.mxu0 %v1659_v45  ;;  %v1798_v45 = vld [vmem:[#allocation11 + $0x718] sm:$0xff] }
 0x556   : > { %1448 = vmatprep.subr.mxu1 %v1173_v48  ;;  %v1654_v48 = vld [vmem:[#allocation11 + $0x298] sm:$0xff]  ;;  %1879 = vmatprep.subr.mxu0 %v1652_v47  ;;  %v1797_v47 = vld [vmem:[#allocation11 + $0x710] sm:$0xff] }
 0x557   : > { %1449 = vmatpush1.msra.mxu1 %v1172_v49  ;;  %v1651_v49 = vld [vmem:[#allocation11 + $0x280] sm:$0xff] }
 0x558   : > { %1450 = vmatprep.subr.mxu1 %v1171_v50  ;;  %v1653_v50 = vld [vmem:[#allocation11 + $0x290] sm:$0xff]  ;;  %1880 = vmatpush1.msra.mxu0 %v1651_v49 }
 0x559   : > { %1451 = vmatpush1.msra.mxu1 %v1170_v51  ;;  %v1644_v51 = vld [vmem:[#allocation11 + $0x248] sm:$0xff] }
 0x55a   : > { %1452 = vmatprep.subr.mxu1 %v1169_v52  ;;  %v1646_v52 = vld [vmem:[#allocation11 + $0x258] sm:$0xff]  ;;  %1881 = vmatprep.subr.mxu0 %v1644_v51 }
 0x55b   : > { %1453 = vmatpush1.msra.mxu1 %v1168_v35  ;;  %v1643_v35 = vld [vmem:[#allocation11 + $0x240] sm:$0xff] }
 0x55c   : > { %1454 = vmatprep.subr.mxu1 %v1167_v53  ;;  %v1645_v53 = vld [vmem:[#allocation11 + $0x250] sm:$0xff]  ;;  %1882 = vmatpush1.msra.mxu0 %v1643_v35 }
 0x55d   : > { %1455 = vmatpush1.msra.mxu1 %v1166_v54  ;;  %v1636_v54 = vld [vmem:[#allocation11 + $0x208] sm:$0xff] }
 0x55e   : > { %1456 = vmatprep.subr.mxu1 %v1165_v55  ;;  %v1638_v55 = vld [vmem:[#allocation11 + $0x218] sm:$0xff]  ;;  %1883 = vmatprep.subr.mxu0 %v1636_v54  ;;  %v1788_v54 = vld [vmem:[#allocation11 + $0x6c8] sm:$0xff] }
 0x55f   : > { %1457 = vmatpush1.msra.mxu1 %v1164_v56  ;;  %v1635_v56 = vld [vmem:[#allocation11 + $0x200] sm:$0xff] }
 0x560   : > { %1458 = vmatprep.subr.mxu1 %v1163_v57  ;;  %v1637_v57 = vld [vmem:[#allocation11 + $0x210] sm:$0xff]  ;;  %1884 = vmatpush1.msra.mxu0 %v1635_v56  ;;  %v1787_v56 = vld [vmem:[#allocation11 + $0x6c0] sm:$0xff] }
 0x561   : > { %1459 = vmatpush1.msra.mxu1 %v1162_v58  ;;  %v1628_v58 = vld [vmem:[#allocation11 + $0x1c8] sm:$0xff] }
 0x562   : > { %1460 = vmatprep.subr.mxu1 %v1161_v59  ;;  %v1630_v59 = vld [vmem:[#allocation11 + $0x1d8] sm:$0xff]  ;;  %1885 = vmatprep.subr.mxu0 %v1628_v58  ;;  %v1780_v58 = vld [vmem:[#allocation11 + $0x688] sm:$0xff] }
 0x563   : > { %1461 = vmatpush1.msra.mxu1 %v1160_v60  ;;  %v1627_v60 = vld [vmem:[#allocation11 + $0x1c0] sm:$0xff] }
 0x564   : > { %1462 = vmatprep.subr.mxu1 %v1159_v61  ;;  %v1629_v61 = vld [vmem:[#allocation11 + $0x1d0] sm:$0xff]  ;;  %1886 = vmatpush1.msra.mxu0 %v1627_v60  ;;  %v1779_v60 = vld [vmem:[#allocation11 + $0x680] sm:$0xff] }
 0x565   : > { %1463 = vmatpush1.msra.mxu1 %v1158_v62  ;;  %v1620_v62 = vld [vmem:[#allocation11 + $0x188] sm:$0xff] }
 0x566   : > { %1464 = vmatprep.subr.mxu1 %v1157_v63  ;;  %v1622_v63 = vld [vmem:[#allocation11 + $0x198] sm:$0xff]  ;;  %1887 = vmatprep.subr.mxu0 %v1620_v62  ;;  %v1772_v62 = vld [vmem:[#allocation11 + $0x648] sm:$0xff] }
 0x567   : > { %1465 = vmatpush1.msra.mxu1 %v1156_v2  ;;  %v1619_v2 = vld [vmem:[#allocation11 + $0x180] sm:$0xff] }
 0x568   : > { %1466 = vmatprep.subr.mxu1 %v1155_v3  ;;  %v1621_v3 = vld [vmem:[#allocation11 + $0x190] sm:$0xff]  ;;  %1888 = vmatpush1.msra.mxu0 %v1619_v2  ;;  %v1771_v2 = vld [vmem:[#allocation11 + $0x640] sm:$0xff] }
 0x569   : > { %1467 = vmatpush1.msra.mxu1 %v1154_v4  ;;  %v1612_v4 = vld [vmem:[#allocation11 + $0x148] sm:$0xff] }
 0x56a   : > { %1468 = vmatprep.subr.mxu1 %v1153_v5  ;;  %v1614_v5 = vld [vmem:[#allocation11 + $0x158] sm:$0xff]  ;;  %1889 = vmatprep.subr.mxu0 %v1612_v4  ;;  %v1764_v4 = vld [vmem:[#allocation11 + $0x608] sm:$0xff] }
 0x56b   : > { %1469 = vmatpush1.msra.mxu1 %v1152_v6  ;;  %v1611_v6 = vld [vmem:[#allocation11 + $0x140] sm:$0xff] }
 0x56c   : > { %1470 = vmatprep.subr.mxu1 %v1151_v7  ;;  %v1613_v7 = vld [vmem:[#allocation11 + $0x150] sm:$0xff]  ;;  %1890 = vmatpush1.msra.mxu0 %v1611_v6  ;;  %v1763_v6 = vld [vmem:[#allocation11 + $0x600] sm:$0xff] }
 0x56d   : > { %1471 = vmatpush1.msra.mxu1 %v1150_v8  ;;  %v1604_v8 = vld [vmem:[#allocation11 + $0x108] sm:$0xff] }
 0x56e   : > { %1505 = vmatmul.mubr.f32.vlgmr.msra.gmra.mxu1 %v1146_v44  ;;  %1940 = vmatprep.subr.mxu1 %v1694_v0  ;;  %v1662_v44 = vld [vmem:[#allocation11 + $0x2d8] sm:$0xff]  ;;  %v1572_v0 = vld [vmem:[#allocation11 + $0x8] sm:$0xff] }
 0x56f   : > { %1941 = vmatpush1.msra.mxu1 %v1693_v1  ;;  %1891 = vmatprep.subr.mxu0 %v1604_v8  ;;  %v1571_v1 = vld [vmem:[#allocation11] sm:$0xff]  ;;  %v1756_v8 = vld [vmem:[#allocation11 + $0x5c8] sm:$0xff] }
 0x570   : > { %1942 = vmatprep.subr.mxu1 %v1686_v34  ;;  %v1820_v34 = vld [vmem:[#allocation11 + $0x7c8] sm:$0xff] }
 0x571   : > { %1943 = vmatpush1.msra.mxu1 %v1685_v22  ;;  %v1819_v22 = vld [vmem:[#allocation11 + $0x7c0] sm:$0xff] }
 0x572   : > { %1944 = vmatprep.subr.mxu1 %v1678_v37  ;;  %v1812_v37 = vld [vmem:[#allocation11 + $0x788] sm:$0xff] }
 0x573   : > { %1945 = vmatpush1.msra.mxu1 %v1677_v38  ;;  %v1811_v38 = vld [vmem:[#allocation11 + $0x780] sm:$0xff] }
 0x574   : > { %1946 = vmatprep.subr.mxu1 %v1670_v40  ;;  %v1804_v40 = vld [vmem:[#allocation11 + $0x748] sm:$0xff] }
 0x575   : > { %1947 = vmatpush1.msra.mxu1 %v1669_v42  ;;  %v1803_v42 = vld [vmem:[#allocation11 + $0x740] sm:$0xff] }
 0x576   : > { %1948 = vmatprep.subr.mxu1 %v1662_v44  ;;  %v1796_v44 = vld [vmem:[#allocation11 + $0x708] sm:$0xff] }
 0x577   : > { %1949 = vmatpush1.msra.mxu1 %v1661_v46  ;;  %v1795_v46 = vld [vmem:[#allocation11 + $0x700] sm:$0xff] }
 0x578   : > { %1950 = vmatprep.subr.mxu1 %v1654_v48 }
 0x579   : > { %1951 = vmatpush1.msra.mxu1 %v1653_v50 }
 0x57a   : > { %1952 = vmatprep.subr.mxu1 %v1646_v52 }
 0x57b   : > { %1953 = vmatpush1.msra.mxu1 %v1645_v53 }
 0x57c   : > { %1954 = vmatprep.subr.mxu1 %v1638_v55  ;;  %v1790_v55 = vld [vmem:[#allocation11 + $0x6d8] sm:$0xff] }
 0x57d   : > { %1955 = vmatpush1.msra.mxu1 %v1637_v57  ;;  %v1789_v57 = vld [vmem:[#allocation11 + $0x6d0] sm:$0xff] }
 0x57e   : > { %1956 = vmatprep.subr.mxu1 %v1630_v59  ;;  %v1782_v59 = vld [vmem:[#allocation11 + $0x698] sm:$0xff] }
 0x57f   : > { %1957 = vmatpush1.msra.mxu1 %v1629_v61  ;;  %v1781_v61 = vld [vmem:[#allocation11 + $0x690] sm:$0xff] }
 0x580   : > { %1958 = vmatprep.subr.mxu1 %v1622_v63  ;;  %v1774_v63 = vld [vmem:[#allocation11 + $0x658] sm:$0xff] }
 0x581   : > { %1959 = vmatpush1.msra.mxu1 %v1621_v3  ;;  %v1773_v3 = vld [vmem:[#allocation11 + $0x650] sm:$0xff] }
 0x582   : > { %1960 = vmatprep.subr.mxu1 %v1614_v5  ;;  %v1766_v5 = vld [vmem:[#allocation11 + $0x618] sm:$0xff] }
 0x583   : > { %1961 = vmatpush1.msra.mxu1 %v1613_v7  ;;  %v1765_v7 = vld [vmem:[#allocation11 + $0x610] sm:$0xff] }
 0x60e   : > { %v1435_v9 = vpop.f32.mrf.mxu1 }
 0x610   : > { %v1437_v10 = vpop.f32.mrf.mxu1 }
 0x62e   : > { %v1506_v11 = vpop.f32.mrf.mxu1 }
 0x62f   : > { %v1507_v13 = vadd.f32 %v1506_v11, %v1435_v9  ;;  %v1606_v9 = vld [vmem:[#allocation11 + $0x118] sm:$0xff]  ;;  %v1605_v11 = vld [vmem:[#allocation11 + $0x110] sm:$0xff] }
 0x630   : > { %v1508_v14 = vpop.f32.mrf.mxu1  ;;  %1962 = vmatprep.subr.mxu1 %v1606_v9  ;;  %v1758_v9 = vld [vmem:[#allocation11 + $0x5d8] sm:$0xff] }
 0x631   : > { %v1511_v16 = vadd.f32 %v3044_v15, %v1507_v13  ;;  %v1509_v21 = vadd.f32 %v1508_v14, %v1437_v10  ;;  %v1603_v10 = vld [vmem:[#allocation11 + $0x100] sm:$0xff]  ;;  %v1598_v13 = vld [vmem:[#allocation11 + $0xd8] sm:$0xff]  ;;  %v1597_v15 = vld [vmem:[#allocation11 + $0xd0] sm:$0xff]  ;;  %1963 = vmatpush1.msra.mxu1 %v1605_v11 }
 0x632   : > { %v1595_v14 = vld [vmem:[#allocation11 + $0xc0] sm:$0xff]  ;;  %1892 = vmatpush1.msra.mxu0 %v1603_v10  ;;  %1964 = vmatprep.subr.mxu1 %v1598_v13  ;;  %v1757_v11 = vld [vmem:[#allocation11 + $0x5d0] sm:$0xff]  ;;  %v1750_v13 = vld [vmem:[#allocation11 + $0x598] sm:$0xff] }
 0x633   : > { %v1512_v26 = vadd.f32 %v3045_v25, %v1509_v21  ;;  %v3656_v27 = vadd.f32 %v1518_v20, %v1511_v16  ;;  %v1588_v16 = vld [vmem:[#allocation11 + $0x88] sm:$0xff]  ;;  %v1590_v20 = vld [vmem:[#allocation11 + $0x98] sm:$0xff]  ;;  %1893 = vmatprep.subr.mxu0 %v1596_v12  ;;  %v1587_v21 = vld [vmem:[#allocation11 + $0x80] sm:$0xff]  ;;  %1965 = vmatpush1.msra.mxu1 %v1597_v15 }
 0x634   : > { %1894 = vmatpush1.msra.mxu0 %v1595_v14  ;;  %v1580_v25 = vld [vmem:[#allocation11 + $0x48] sm:$0xff]  ;;  %1966 = vmatprep.subr.mxu1 %v1590_v20  ;;  %v1755_v10 = vld [vmem:[#allocation11 + $0x5c0] sm:$0xff]  ;;  %v1749_v15 = vld [vmem:[#allocation11 + $0x590] sm:$0xff] }
 0x635   : > { %v3658_v28 = vadd.f32 %v1522_v24, %v1512_v26  ;;  %v1589_v24 = vld [vmem:[#allocation11 + $0x90] sm:$0xff]  ;;  %v1582_v26 = vld [vmem:[#allocation11 + $0x58] sm:$0xff]  ;;  %1895 = vmatprep.subr.mxu0 %v1588_v16  ;;  %v1748_v12 = vld [vmem:[#allocation11 + $0x588] sm:$0xff] }
 0x636   : > { %1896 = vmatpush1.msra.mxu0 %v1587_v21  ;;  %1967 = vmatpush1.msra.mxu1 %v1589_v24  ;;  %v1747_v14 = vld [vmem:[#allocation11 + $0x580] sm:$0xff]  ;;  %v1740_v16 = vld [vmem:[#allocation11 + $0x548] sm:$0xff]  ;;  %v1742_v20 = vld [vmem:[#allocation11 + $0x558] sm:$0xff] }
 0x637   : > { %v1527_v29 = vadd.f32 %v3658_v28, %v3656_v27  ;;  %1897 = vmatprep.subr.mxu0 %v1580_v25  ;;  %1968 = vmatprep.subr.mxu1 %v1582_v26  ;;  %v1739_v21 = vld [vmem:[#allocation11 + $0x540] sm:$0xff]  ;;  %v1741_v24 = vld [vmem:[#allocation11 + $0x550] sm:$0xff]  ;;  %v1732_v25 = vld [vmem:[#allocation11 + $0x508] sm:$0xff] }
 0x638   : > { %1969 = vmatpush1.msra.mxu1 %v1581_v30  ;;  %v1734_v26 = vld [vmem:[#allocation11 + $0x518] sm:$0xff]  ;;  %v1733_v30 = vld [vmem:[#allocation11 + $0x510] sm:$0xff] }
 0x639   : > { %1528 = vadd.xlane.f32.xlu0 %v1527_v29  ;;  %v1579_v29 = vld [vmem:[#allocation11 + $0x40] sm:$0xff]  ;;  %1970 = vmatprep.subr.mxu1 %v1574_v31  ;;  %v1726_v31 = vld [vmem:[#allocation11 + $0x4d8] sm:$0xff] }
 0x63a   : > { %1898 = vmatpush1.msra.mxu0 %v1579_v29  ;;  %1971 = vmatpush1.msra.mxu1 %v1573_v33  ;;  %v1731_v29 = vld [vmem:[#allocation11 + $0x500] sm:$0xff]  ;;  %v1725_v33 = vld [vmem:[#allocation11 + $0x4d0] sm:$0xff] }
 0x63b   : > { %1899 = vmatprep.subr.mxu0 %v1572_v0  ;;  %1972 = vmatprep.subr.mxu1 %v1822_v23  ;;  %v1724_v0 = vld [vmem:[#allocation11 + $0x4c8] sm:$0xff]  ;;  %v1718_v23 = vld [vmem:[#allocation11 + $0x498] sm:$0xff] }
 0x63c   : > { %1900 = vmatpush1.msra.mxu0 %v1571_v1  ;;  %1973 = vmatpush2.msra.mxu1 %v1821_v36  ;;  %v1723_v1 = vld [vmem:[#allocation11 + $0x4c0] sm:$0xff]  ;;  %v1717_v36 = vld [vmem:[#allocation11 + $0x490] sm:$0xff] }
 0x63d   : > { %1901 = vmatprep.subr.mxu0 %v1820_v34  ;;  %1974 = vmatprep.subr.mxu1 %v1814_v32  ;;  %v1716_v34 = vld [vmem:[#allocation11 + $0x488] sm:$0xff]  ;;  %v1710_v32 = vld [vmem:[#allocation11 + $0x458] sm:$0xff] }
 0x63e   : > { %1902 = vmatpush2.msra.mxu0 %v1819_v22  ;;  %1975 = vmatpush2.msra.mxu1 %v1813_v39  ;;  %v1715_v22 = vld [vmem:[#allocation11 + $0x480] sm:$0xff]  ;;  %v1709_v39 = vld [vmem:[#allocation11 + $0x450] sm:$0xff] }
 0x63f   : > { %1903 = vmatprep.subr.mxu0 %v1812_v37  ;;  %1976 = vmatprep.subr.mxu1 %v1806_v41  ;;  %v1708_v37 = vld [vmem:[#allocation11 + $0x448] sm:$0xff]  ;;  %v1702_v41 = vld [vmem:[#allocation11 + $0x418] sm:$0xff] }
 0x640   : > { %1904 = vmatpush2.msra.mxu0 %v1811_v38  ;;  %1977 = vmatpush2.msra.mxu1 %v1805_v43  ;;  %v1707_v38 = vld [vmem:[#allocation11 + $0x440] sm:$0xff]  ;;  %v1701_v43 = vld [vmem:[#allocation11 + $0x410] sm:$0xff] }
 0x641   : > { %1905 = vmatprep.subr.mxu0 %v1804_v40  ;;  %1978 = vmatprep.subr.mxu1 %v1798_v45  ;;  %v1700_v40 = vld [vmem:[#allocation11 + $0x408] sm:$0xff]  ;;  %v1698_v45 = vld [vmem:[#allocation11 + $0x3f8] sm:$0xff] }
 0x642   : > { %1906 = vmatpush2.msra.mxu0 %v1803_v42  ;;  %1979 = vmatpush2.msra.mxu1 %v1797_v47  ;;  %v1699_v42 = vld [vmem:[#allocation11 + $0x400] sm:$0xff] }
 0x643   : > { %1907 = vmatprep.subr.mxu0 %v1796_v44  ;;  %1980 = vmatprep.subr.mxu1 %v1790_v55  ;;  %v1696_v44 = vld [vmem:[#allocation11 + $0x3e8] sm:$0xff] }
 0x644   : > { %1908 = vmatpush2.msra.mxu0 %v1795_v46  ;;  %1981 = vmatpush2.msra.mxu1 %v1789_v57 }
 0x645   : > { %1909 = vmatprep.subr.mxu0 %v1788_v54  ;;  %1982 = vmatprep.subr.mxu1 %v1782_v59 }
 0x646   : > { %1910 = vmatpush2.msra.mxu0 %v1787_v56  ;;  %1983 = vmatpush2.msra.mxu1 %v1781_v61 }
 0x647   : > { %1911 = vmatprep.subr.mxu0 %v1780_v58  ;;  %1984 = vmatprep.subr.mxu1 %v1774_v63  ;;  %v1695_v63 = vld [vmem:[#allocation11 + $0x3e0] sm:$0xff] }
 0x648   : > { %1912 = vmatpush2.msra.mxu0 %v1779_v60  ;;  %1985 = vmatpush2.msra.mxu1 %v1773_v3  ;;  %v1688_v3 = vld [vmem:[#allocation11 + $0x3a8] sm:$0xff] }
 0x649   : > { %1913 = vmatprep.subr.mxu0 %v1772_v62  ;;  %1986 = vmatprep.subr.mxu1 %v1766_v5  ;;  %v1680_v5 = vld [vmem:[#allocation11 + $0x368] sm:$0xff] }
 0x64a   : > { %1914 = vmatpush2.msra.mxu0 %v1771_v2  ;;  %1987 = vmatpush2.msra.mxu1 %v1765_v7  ;;  %v1697_v2 = vld [vmem:[#allocation11 + $0x3f0] sm:$0xff]  ;;  %v1679_v7 = vld [vmem:[#allocation11 + $0x360] sm:$0xff] }
 0x64b   : > { %1915 = vmatprep.subr.mxu0 %v1764_v4  ;;  %1988 = vmatprep.subr.mxu1 %v1758_v9  ;;  %v1689_v4 = vld [vmem:[#allocation11 + $0x3b0] sm:$0xff]  ;;  %v1672_v9 = vld [vmem:[#allocation11 + $0x328] sm:$0xff] }
 0x64c   : > { %1916 = vmatpush2.msra.mxu0 %v1763_v6  ;;  %1989 = vmatpush2.msra.mxu1 %v1757_v11  ;;  %v1682_v6 = vld [vmem:[#allocation11 + $0x378] sm:$0xff]  ;;  %v1671_v11 = vld [vmem:[#allocation11 + $0x320] sm:$0xff] }
 0x64d   : > { %1917 = vmatprep.subr.mxu0 %v1756_v8  ;;  %1990 = vmatprep.subr.mxu1 %v1750_v13  ;;  %v1681_v8 = vld [vmem:[#allocation11 + $0x370] sm:$0xff]  ;;  %v1664_v13 = vld [vmem:[#allocation11 + $0x2e8] sm:$0xff] }
 0x64e   : > { %1918 = vmatpush2.msra.mxu0 %v1755_v10  ;;  %1991 = vmatpush2.msra.mxu1 %v1749_v15  ;;  %v1674_v10 = vld [vmem:[#allocation11 + $0x338] sm:$0xff]  ;;  %v1663_v15 = vld [vmem:[#allocation11 + $0x2e0] sm:$0xff] }
 0x64f   : > { %1919 = vmatprep.subr.mxu0 %v1748_v12  ;;  %1992 = vmatprep.subr.mxu1 %v1742_v20  ;;  %v1673_v12 = vld [vmem:[#allocation11 + $0x330] sm:$0xff]  ;;  %v1656_v20 = vld [vmem:[#allocation11 + $0x2a8] sm:$0xff] }
 0x650   : > { %1920 = vmatpush2.msra.mxu0 %v1747_v14  ;;  %1993 = vmatpush2.msra.mxu1 %v1741_v24  ;;  %v1666_v14 = vld [vmem:[#allocation11 + $0x2f8] sm:$0xff]  ;;  %v1655_v24 = vld [vmem:[#allocation11 + $0x2a0] sm:$0xff] }
 0x651   : > { %1921 = vmatprep.subr.mxu0 %v1740_v16  ;;  %1994 = vmatprep.subr.mxu1 %v1734_v26  ;;  %v1665_v16 = vld [vmem:[#allocation11 + $0x2f0] sm:$0xff]  ;;  %v1648_v26 = vld [vmem:[#allocation11 + $0x268] sm:$0xff] }
 0x652   : > { %1922 = vmatpush2.msra.mxu0 %v1739_v21  ;;  %1995 = vmatpush2.msra.mxu1 %v1733_v30  ;;  %v1658_v21 = vld [vmem:[#allocation11 + $0x2b8] sm:$0xff]  ;;  %v1647_v30 = vld [vmem:[#allocation11 + $0x260] sm:$0xff] }
 0x653   : > { %1923 = vmatprep.subr.mxu0 %v1732_v25  ;;  %1996 = vmatprep.subr.mxu1 %v1726_v31  ;;  %v1657_v25 = vld [vmem:[#allocation11 + $0x2b0] sm:$0xff]  ;;  %v1640_v31 = vld [vmem:[#allocation11 + $0x228] sm:$0xff] }
 0x654   : > { %1924 = vmatpush2.msra.mxu0 %v1731_v29  ;;  %1997 = vmatpush2.msra.mxu1 %v1725_v33  ;;  %v1650_v29 = vld [vmem:[#allocation11 + $0x278] sm:$0xff]  ;;  %v1639_v33 = vld [vmem:[#allocation11 + $0x220] sm:$0xff] }
 0x655   : > { %1925 = vmatprep.subr.mxu0 %v1724_v0  ;;  %1998 = vmatprep.subr.mxu1 %v1718_v23  ;;  %v1649_v0 = vld [vmem:[#allocation11 + $0x270] sm:$0xff]  ;;  %v1632_v23 = vld [vmem:[#allocation11 + $0x1e8] sm:$0xff] }
 0x656   : > { %1926 = vmatpush2.msra.mxu0 %v1723_v1  ;;  %1999 = vmatpush2.msra.mxu1 %v1717_v36  ;;  %v1642_v1 = vld [vmem:[#allocation11 + $0x238] sm:$0xff]  ;;  %v1631_v36 = vld [vmem:[#allocation11 + $0x1e0] sm:$0xff] }
 0x657   : > { %1927 = vmatprep.subr.mxu0 %v1716_v34  ;;  %2000 = vmatprep.subr.mxu1 %v1710_v32  ;;  %v1641_v34 = vld [vmem:[#allocation11 + $0x230] sm:$0xff]  ;;  %v1624_v32 = vld [vmem:[#allocation11 + $0x1a8] sm:$0xff] }
 0x658   : > { %1928 = vmatpush2.msra.mxu0 %v1715_v22  ;;  %2001 = vmatpush2.msra.mxu1 %v1709_v39  ;;  %v1634_v22 = vld [vmem:[#allocation11 + $0x1f8] sm:$0xff]  ;;  %v1623_v39 = vld [vmem:[#allocation11 + $0x1a0] sm:$0xff] }
 0x659   : > { %1929 = vmatprep.subr.mxu0 %v1708_v37  ;;  %2002 = vmatprep.subr.mxu1 %v1702_v41  ;;  %v1633_v37 = vld [vmem:[#allocation11 + $0x1f0] sm:$0xff]  ;;  %v1616_v41 = vld [vmem:[#allocation11 + $0x168] sm:$0xff] }
 0x65a   : > { %1930 = vmatpush2.msra.mxu0 %v1707_v38  ;;  %2003 = vmatpush2.msra.mxu1 %v1701_v43  ;;  %v1626_v38 = vld [vmem:[#allocation11 + $0x1b8] sm:$0xff]  ;;  %v1615_v43 = vld [vmem:[#allocation11 + $0x160] sm:$0xff] }
 0x65b   : > { %1931 = vmatprep.subr.mxu0 %v1700_v40  ;;  %2082 = vmatprep.subr.mxu1 %v1698_v45  ;;  %v1625_v40 = vld [vmem:[#allocation11 + $0x1b0] sm:$0xff]  ;;  %v1608_v45 = vld [vmem:[#allocation11 + $0x128] sm:$0xff] }
 0x65c   : > { %1932 = vmatpush2.msra.mxu0 %v1699_v42  ;;  %v1618_v42 = vld [vmem:[#allocation11 + $0x178] sm:$0xff] }
 0x65d   : > { %2011 = vmatprep.subr.mxu0 %v1696_v44  ;;  %v1617_v44 = vld [vmem:[#allocation11 + $0x170] sm:$0xff] }
 0x6c2   : > { %v1529_v48 = vpop.xlane.xlu0 %1528 }
 0x6c3   : > { %v1530_v49 = vmul.f32 0.00390625, %v1529_v48 }
 0x6c5   : > { %v3663_v50 = vsub.f32 %v3656_v27, %v1530_v49  ;;  %v3666_v51 = vsub.f32 %v3658_v28, %v1530_v49  ;;  %v1543_v49 = vld [vmem:[%s3762_s7] sm:$0x3] }
 0x6c7   : > { %v1533_v52 = vmul.f32 %v3663_v50, %v3663_v50  ;;  %v1534_v35 = vmul.f32 %v3666_v51, %v3666_v51 }
 0x6c9   : > { %v1535_v53 = vadd.f32 %v1534_v35, %v1533_v52  ;;  %v1557_v52 = vld [vmem:[%s3763_s8] sm:$0x3]  ;;  %v1552_v35 = vrot.slane %v1543_v49, %v3614_v18 }
 0x6ca   : > { %v1566_v56 = vrot.slane %v1557_v52, %v3614_v18  ;;  %v1562_v58 = vrot.slane %v1557_v52, %v3617_v19  ;;  %v1602_v52 = vld [vmem:[#allocation11 + $0xf8] sm:$0xff] }
 0x6cb   : > { %1536 = vadd.xlane.f32.xlu1 %v1535_v53  ;;  %v1548_v53 = vrot.slane %v1543_v49, %v3617_v19  ;;  %v1600_v49 = vld [vmem:[#allocation11 + $0xe8] sm:$0xff] }
 0x754   : > { %v1537_v46 = vpop.xlane.xlu1 %1536 }
 0x755   : > { %v1538_v47 = vmul.f32 0.00390625, %v1537_v46  ;;  %v1610_v46 = vld [vmem:[#allocation11 + $0x138] sm:$0xff] }
 0x757   : > { %v1539_v48 = vadd.f32 1e-05, %v1538_v47  ;;  %v1607_v47 = vld [vmem:[#allocation11 + $0x120] sm:$0xff] }
 0x759   : > { %3042 = vrsqrt.f32 %v1539_v48  ;;  %v1609_v48 = vld [vmem:[#allocation11 + $0x130] sm:$0xff] }
 0x766   : > { %v3043_v54 = vpop.eup %3042 }
 0x767   : > { %v1542_v55 = vmul.f32 %v3043_v54, %v3666_v51  ;;  %v1541_v57 = vmul.f32 %v3043_v54, %v3663_v50  ;;  %v1690_v51 = vld [vmem:[#allocation11 + $0x3b8] sm:$0xff]  ;;  %v1687_v50 = vld [vmem:[#allocation11 + $0x3a0] sm:$0xff]  ;;  %v1592_v54 = vld [vmem:[#allocation11 + $0xa8] sm:$0xff] }
 0x769   : > { %v1556_v59 = vmul.f32 %v1552_v35, %v1542_v55  ;;  %v1555_v60 = vmul.f32 %v1548_v53, %v1541_v57  ;;  %v1599_v35 = vld [vmem:[#allocation11 + $0xe0] sm:$0xff]  ;;  %v1601_v53 = vld [vmem:[#allocation11 + $0xf0] sm:$0xff]  ;;  %v1594_v55 = vld [vmem:[#allocation11 + $0xb8] sm:$0xff] }
 0x76a   : > { %v1593_v57 = vld [vmem:[#allocation11 + $0xb0] sm:$0xff] }
 0x76b   : > { %v1570_v61 = vadd.f32 %v1566_v56, %v1556_v59  ;;  %v3684_v62 = vadd.f32 %v1562_v58, %v1555_v60  ;;  %v1591_v56 = vld [vmem:[#allocation11 + $0xa0] sm:$0xff]  ;;  %v1584_v58 = vld [vmem:[#allocation11 + $0x68] sm:$0xff]  ;;  %v1586_v59 = vld [vmem:[#allocation11 + $0x78] sm:$0xff] }
 0x76c   : > { %v1583_v60 = vld [vmem:[#allocation11 + $0x60] sm:$0xff] }
 0x76d   : > { %1933 = vmatprep.mubr.f32.mxu0 %v1570_v61  ;;  %2004 = vmatprep.mubr.f32.mxu1 %v1570_v61 }
 0x76e   : > { %1934 = vmatmul.mubr.f32.vlgmr.msra.gmra.mxu0 %v3684_v62  ;;  %2005 = vmatmul.mubr.f32.vlgmr.msra.gmra.mxu1 %v3684_v62 }
 0x76f   : > { %2012 = vmatpush1.msra.mxu0 %v1695_v63  ;;  %2083 = vmatpush1.msra.mxu1 %v1697_v2  ;;  %v1576_v63 = vld [vmem:[#allocation11 + $0x28] sm:$0xff]  ;;  %v1578_v2 = vld [vmem:[#allocation11 + $0x38] sm:$0xff] }
 0x770   : > { %2013 = vmatprep.subr.mxu0 %v1688_v3  ;;  %2075 = vmatprep.mubr.f32.mxu0 %v1570_v61  ;;  %v1575_v3 = vld [vmem:[#allocation11 + $0x20] sm:$0xff] }
 0x771   : > { %2084 = vmatprep.subr.mxu1 %v1690_v51  ;;  %2146 = vmatprep.mubr.f32.mxu1 %v1570_v61  ;;  %v1585_v61 = vld [vmem:[#allocation11 + $0x70] sm:$0xff] }
 0x772   : > { %2014 = vmatpush1.msra.mxu0 %v1687_v50  ;;  %2085 = vmatpush1.msra.mxu1 %v1689_v4  ;;  %v1577_v51 = vld [vmem:[#allocation11 + $0x30] sm:$0xff]  ;;  %v1824_v50 = vld [vmem:[#allocation11 + $0x7e8] sm:$0xff]  ;;  %v1826_v4 = vld [vmem:[#allocation11 + $0x7f8] sm:$0xff] }
 0x773   : > { %2015 = vmatprep.subr.mxu0 %v1680_v5  ;;  %2086 = vmatprep.subr.mxu1 %v1682_v6  ;;  %v1823_v5 = vld [vmem:[#allocation11 + $0x7e0] sm:$0xff]  ;;  %v1825_v6 = vld [vmem:[#allocation11 + $0x7f0] sm:$0xff] }
 0x774   : > { %2016 = vmatpush1.msra.mxu0 %v1679_v7  ;;  %2087 = vmatpush1.msra.mxu1 %v1681_v8  ;;  %v1816_v7 = vld [vmem:[#allocation11 + $0x7a8] sm:$0xff]  ;;  %v1818_v8 = vld [vmem:[#allocation11 + $0x7b8] sm:$0xff] }
 0x775   : > { %2017 = vmatprep.subr.mxu0 %v1672_v9  ;;  %2088 = vmatprep.subr.mxu1 %v1674_v10  ;;  %v1815_v9 = vld [vmem:[#allocation11 + $0x7a0] sm:$0xff]  ;;  %v1817_v10 = vld [vmem:[#allocation11 + $0x7b0] sm:$0xff] }
 0x776   : > { %2018 = vmatpush1.msra.mxu0 %v1671_v11  ;;  %2089 = vmatpush1.msra.mxu1 %v1673_v12  ;;  %v1808_v11 = vld [vmem:[#allocation11 + $0x768] sm:$0xff]  ;;  %v1810_v12 = vld [vmem:[#allocation11 + $0x778] sm:$0xff] }
 0x777   : > { %2019 = vmatprep.subr.mxu0 %v1664_v13  ;;  %2090 = vmatprep.subr.mxu1 %v1666_v14  ;;  %v1807_v13 = vld [vmem:[#allocation11 + $0x760] sm:$0xff]  ;;  %v1809_v14 = vld [vmem:[#allocation11 + $0x770] sm:$0xff] }
 0x778   : > { %2020 = vmatpush1.msra.mxu0 %v1663_v15  ;;  %2091 = vmatpush1.msra.mxu1 %v1665_v16  ;;  %v1800_v15 = vld [vmem:[#allocation11 + $0x728] sm:$0xff]  ;;  %v1802_v16 = vld [vmem:[#allocation11 + $0x738] sm:$0xff] }
 0x779   : > { %2021 = vmatprep.subr.mxu0 %v1656_v20  ;;  %2092 = vmatprep.subr.mxu1 %v1658_v21  ;;  %v1799_v20 = vld [vmem:[#allocation11 + $0x720] sm:$0xff]  ;;  %v1801_v21 = vld [vmem:[#allocation11 + $0x730] sm:$0xff] }
 0x77a   : > { %2022 = vmatpush1.msra.mxu0 %v1655_v24  ;;  %2093 = vmatpush1.msra.mxu1 %v1657_v25  ;;  %v1792_v24 = vld [vmem:[#allocation11 + $0x6e8] sm:$0xff]  ;;  %v1794_v25 = vld [vmem:[#allocation11 + $0x6f8] sm:$0xff] }
 0x77b   : > { %2023 = vmatprep.subr.mxu0 %v1648_v26  ;;  %2094 = vmatprep.subr.mxu1 %v1650_v29  ;;  %v1791_v26 = vld [vmem:[#allocation11 + $0x6e0] sm:$0xff]  ;;  %v1793_v29 = vld [vmem:[#allocation11 + $0x6f0] sm:$0xff] }
 0x77c   : > { %2024 = vmatpush1.msra.mxu0 %v1647_v30  ;;  %2095 = vmatpush1.msra.mxu1 %v1649_v0  ;;  %v1784_v30 = vld [vmem:[#allocation11 + $0x6a8] sm:$0xff]  ;;  %v1786_v0 = vld [vmem:[#allocation11 + $0x6b8] sm:$0xff] }
 0x77d   : > { %2025 = vmatprep.subr.mxu0 %v1640_v31  ;;  %2096 = vmatprep.subr.mxu1 %v1642_v1  ;;  %v1783_v31 = vld [vmem:[#allocation11 + $0x6a0] sm:$0xff]  ;;  %v1785_v1 = vld [vmem:[#allocation11 + $0x6b0] sm:$0xff] }
 0x77e   : > { %2026 = vmatpush1.msra.mxu0 %v1639_v33  ;;  %2097 = vmatpush1.msra.mxu1 %v1641_v34  ;;  %v1776_v33 = vld [vmem:[#allocation11 + $0x668] sm:$0xff]  ;;  %v1778_v34 = vld [vmem:[#allocation11 + $0x678] sm:$0xff] }
 0x77f   : > { %2027 = vmatprep.subr.mxu0 %v1632_v23  ;;  %2098 = vmatprep.subr.mxu1 %v1634_v22  ;;  %v1775_v23 = vld [vmem:[#allocation11 + $0x660] sm:$0xff]  ;;  %v1777_v22 = vld [vmem:[#allocation11 + $0x670] sm:$0xff] }
 0x780   : > { %2028 = vmatpush1.msra.mxu0 %v1631_v36  ;;  %2099 = vmatpush1.msra.mxu1 %v1633_v37  ;;  %v1768_v36 = vld [vmem:[#allocation11 + $0x628] sm:$0xff]  ;;  %v1770_v37 = vld [vmem:[#allocation11 + $0x638] sm:$0xff] }
 0x781   : > { %2029 = vmatprep.subr.mxu0 %v1624_v32  ;;  %2100 = vmatprep.subr.mxu1 %v1626_v38  ;;  %v1767_v32 = vld [vmem:[#allocation11 + $0x620] sm:$0xff]  ;;  %v1769_v38 = vld [vmem:[#allocation11 + $0x630] sm:$0xff] }
 0x782   : > { %2030 = vmatpush1.msra.mxu0 %v1623_v39  ;;  %2101 = vmatpush1.msra.mxu1 %v1625_v40  ;;  %v1760_v39 = vld [vmem:[#allocation11 + $0x5e8] sm:$0xff]  ;;  %v1762_v40 = vld [vmem:[#allocation11 + $0x5f8] sm:$0xff] }
 0x783   : > { %2031 = vmatprep.subr.mxu0 %v1616_v41  ;;  %2102 = vmatprep.subr.mxu1 %v1618_v42  ;;  %v1759_v41 = vld [vmem:[#allocation11 + $0x5e0] sm:$0xff]  ;;  %v1761_v42 = vld [vmem:[#allocation11 + $0x5f0] sm:$0xff] }
 0x784   : > { %2032 = vmatpush1.msra.mxu0 %v1615_v43  ;;  %2103 = vmatpush1.msra.mxu1 %v1617_v44  ;;  %v1752_v43 = vld [vmem:[#allocation11 + $0x5a8] sm:$0xff]  ;;  %v1754_v44 = vld [vmem:[#allocation11 + $0x5b8] sm:$0xff] }
 0x785   : > { %2033 = vmatprep.subr.mxu0 %v1608_v45  ;;  %2104 = vmatprep.subr.mxu1 %v1610_v46  ;;  %v1751_v45 = vld [vmem:[#allocation11 + $0x5a0] sm:$0xff]  ;;  %v1753_v46 = vld [vmem:[#allocation11 + $0x5b0] sm:$0xff] }
 0x786   : > { %2034 = vmatpush1.msra.mxu0 %v1607_v47  ;;  %2105 = vmatpush1.msra.mxu1 %v1609_v48  ;;  %v1744_v47 = vld [vmem:[#allocation11 + $0x568] sm:$0xff]  ;;  %v1746_v48 = vld [vmem:[#allocation11 + $0x578] sm:$0xff] }
 0x787   : > { %2035 = vmatprep.subr.mxu0 %v1600_v49  ;;  %2106 = vmatprep.subr.mxu1 %v1602_v52  ;;  %v1743_v49 = vld [vmem:[#allocation11 + $0x560] sm:$0xff]  ;;  %v1745_v52 = vld [vmem:[#allocation11 + $0x570] sm:$0xff] }
 0x788   : > { %2036 = vmatpush1.msra.mxu0 %v1599_v35  ;;  %2107 = vmatpush1.msra.mxu1 %v1601_v53  ;;  %v1736_v35 = vld [vmem:[#allocation11 + $0x528] sm:$0xff]  ;;  %v1738_v53 = vld [vmem:[#allocation11 + $0x538] sm:$0xff] }
 0x789   : > { %2037 = vmatprep.subr.mxu0 %v1592_v54  ;;  %2108 = vmatprep.subr.mxu1 %v1594_v55  ;;  %v1735_v54 = vld [vmem:[#allocation11 + $0x520] sm:$0xff]  ;;  %v1737_v55 = vld [vmem:[#allocation11 + $0x530] sm:$0xff] }
 0x78a   : > { %2038 = vmatpush1.msra.mxu0 %v1591_v56  ;;  %2109 = vmatpush1.msra.mxu1 %v1593_v57  ;;  %v1728_v56 = vld [vmem:[#allocation11 + $0x4e8] sm:$0xff]  ;;  %v1730_v57 = vld [vmem:[#allocation11 + $0x4f8] sm:$0xff] }
 0x78b   : > { %2039 = vmatprep.subr.mxu0 %v1584_v58  ;;  %2110 = vmatprep.subr.mxu1 %v1586_v59  ;;  %v1727_v58 = vld [vmem:[#allocation11 + $0x4e0] sm:$0xff]  ;;  %v1729_v59 = vld [vmem:[#allocation11 + $0x4f0] sm:$0xff] }
 0x78c   : > { %2040 = vmatpush1.msra.mxu0 %v1583_v60  ;;  %2111 = vmatpush1.msra.mxu1 %v1585_v61  ;;  %v1720_v60 = vld [vmem:[#allocation11 + $0x4a8] sm:$0xff]  ;;  %v1722_v61 = vld [vmem:[#allocation11 + $0x4b8] sm:$0xff] }
 0x78d   : > { %2041 = vmatprep.subr.mxu0 %v1576_v63  ;;  %2112 = vmatprep.subr.mxu1 %v1578_v2  ;;  %v1719_v63 = vld [vmem:[#allocation11 + $0x4a0] sm:$0xff]  ;;  %v1721_v2 = vld [vmem:[#allocation11 + $0x4b0] sm:$0xff] }
 0x78e   : > { %2042 = vmatpush1.msra.mxu0 %v1575_v3  ;;  %2113 = vmatpush1.msra.mxu1 %v1577_v51  ;;  %v1712_v3 = vld [vmem:[#allocation11 + $0x468] sm:$0xff]  ;;  %v1714_v51 = vld [vmem:[#allocation11 + $0x478] sm:$0xff] }
 0x78f   : > { %2043 = vmatprep.subr.mxu0 %v1824_v50  ;;  %2114 = vmatprep.subr.mxu1 %v1826_v4  ;;  %v1711_v50 = vld [vmem:[#allocation11 + $0x460] sm:$0xff]  ;;  %v1713_v4 = vld [vmem:[#allocation11 + $0x470] sm:$0xff] }
 0x790   : > { %2044 = vmatpush2.msra.mxu0 %v1823_v5  ;;  %2115 = vmatpush2.msra.mxu1 %v1825_v6  ;;  %v1704_v5 = vld [vmem:[#allocation11 + $0x428] sm:$0xff]  ;;  %v1706_v6 = vld [vmem:[#allocation11 + $0x438] sm:$0xff] }
 0x791   : > { %2045 = vmatprep.subr.mxu0 %v1816_v7  ;;  %2116 = vmatprep.subr.mxu1 %v1818_v8  ;;  %v1703_v7 = vld [vmem:[#allocation11 + $0x420] sm:$0xff]  ;;  %v1705_v8 = vld [vmem:[#allocation11 + $0x430] sm:$0xff] }
 0x792   : > { %2046 = vmatpush2.msra.mxu0 %v1815_v9  ;;  %2117 = vmatpush2.msra.mxu1 %v1817_v10  ;;  %v2192_v9 = vld [vmem:[#allocation13 + $0xf8] sm:$0xff] }
 0x793   : > { %2047 = vmatprep.subr.mxu0 %v1808_v11  ;;  %2118 = vmatprep.subr.mxu1 %v1810_v12  ;;  %v2256_v10 = vld [vmem:[#allocation13 + $0x2f8] sm:$0xff]  ;;  %v2191_v11 = vld [vmem:[#allocation13 + $0xf0] sm:$0xff] }
 0x794   : > { %2048 = vmatpush2.msra.mxu0 %v1807_v13  ;;  %2119 = vmatpush2.msra.mxu1 %v1809_v14  ;;  %v2255_v12 = vld [vmem:[#allocation13 + $0x2f0] sm:$0xff]  ;;  %v2190_v13 = vld [vmem:[#allocation13 + $0xe8] sm:$0xff] }
 0x795   : > { %2049 = vmatprep.subr.mxu0 %v1800_v15  ;;  %2120 = vmatprep.subr.mxu1 %v1802_v16  ;;  %v2254_v14 = vld [vmem:[#allocation13 + $0x2e8] sm:$0xff]  ;;  %v2189_v15 = vld [vmem:[#allocation13 + $0xe0] sm:$0xff] }
 0x796   : > { %2050 = vmatpush2.msra.mxu0 %v1799_v20  ;;  %2121 = vmatpush2.msra.mxu1 %v1801_v21  ;;  %v2253_v16 = vld [vmem:[#allocation13 + $0x2e0] sm:$0xff]  ;;  %v2188_v20 = vld [vmem:[#allocation13 + $0xd8] sm:$0xff] }
 0x797   : > { %2051 = vmatprep.subr.mxu0 %v1792_v24  ;;  %2122 = vmatprep.subr.mxu1 %v1794_v25  ;;  %v2252_v21 = vld [vmem:[#allocation13 + $0x2d8] sm:$0xff]  ;;  %v2187_v24 = vld [vmem:[#allocation13 + $0xd0] sm:$0xff] }
 0x798   : > { %2052 = vmatpush2.msra.mxu0 %v1791_v26  ;;  %2123 = vmatpush2.msra.mxu1 %v1793_v29  ;;  %v2251_v25 = vld [vmem:[#allocation13 + $0x2d0] sm:$0xff]  ;;  %v2186_v26 = vld [vmem:[#allocation13 + $0xc8] sm:$0xff] }
 0x799   : > { %2053 = vmatprep.subr.mxu0 %v1784_v30  ;;  %2124 = vmatprep.subr.mxu1 %v1786_v0  ;;  %v2250_v29 = vld [vmem:[#allocation13 + $0x2c8] sm:$0xff]  ;;  %v2249_v30 = vld [vmem:[#allocation13 + $0x2c0] sm:$0xff]  ;;  %v2184_v0 = vld [vmem:[#allocation13 + $0xb8] sm:$0xff] }
 0x79a   : > { %2054 = vmatpush2.msra.mxu0 %v1783_v31  ;;  %2125 = vmatpush2.msra.mxu1 %v1785_v1  ;;  %v2248_v31 = vld [vmem:[#allocation13 + $0x2b8] sm:$0xff]  ;;  %v2183_v1 = vld [vmem:[#allocation13 + $0xb0] sm:$0xff] }
 0x79b   : > { %2055 = vmatprep.subr.mxu0 %v1776_v33  ;;  %2126 = vmatprep.subr.mxu1 %v1778_v34  ;;  %v2247_v33 = vld [vmem:[#allocation13 + $0x2b0] sm:$0xff]  ;;  %v2182_v34 = vld [vmem:[#allocation13 + $0xa8] sm:$0xff] }
 0x79c   : > { %2056 = vmatpush2.msra.mxu0 %v1775_v23  ;;  %2127 = vmatpush2.msra.mxu1 %v1777_v22  ;;  %v2246_v23 = vld [vmem:[#allocation13 + $0x2a8] sm:$0xff]  ;;  %v2181_v22 = vld [vmem:[#allocation13 + $0xa0] sm:$0xff] }
 0x79d   : > { %2057 = vmatprep.subr.mxu0 %v1768_v36  ;;  %2128 = vmatprep.subr.mxu1 %v1770_v37  ;;  %v2245_v36 = vld [vmem:[#allocation13 + $0x2a0] sm:$0xff]  ;;  %v2180_v37 = vld [vmem:[#allocation13 + $0x98] sm:$0xff] }
 0x79e   : > { %2058 = vmatpush2.msra.mxu0 %v1767_v32  ;;  %2129 = vmatpush2.msra.mxu1 %v1769_v38  ;;  %v2244_v32 = vld [vmem:[#allocation13 + $0x298] sm:$0xff]  ;;  %v2179_v38 = vld [vmem:[#allocation13 + $0x90] sm:$0xff] }
 0x79f   : > { %2059 = vmatprep.subr.mxu0 %v1760_v39  ;;  %2130 = vmatprep.subr.mxu1 %v1762_v40  ;;  %v2243_v39 = vld [vmem:[#allocation13 + $0x290] sm:$0xff]  ;;  %v2178_v40 = vld [vmem:[#allocation13 + $0x88] sm:$0xff] }
 0x7a0   : > { %2060 = vmatpush2.msra.mxu0 %v1759_v41  ;;  %2131 = vmatpush2.msra.mxu1 %v1761_v42  ;;  %v2242_v41 = vld [vmem:[#allocation13 + $0x288] sm:$0xff]  ;;  %v2177_v42 = vld [vmem:[#allocation13 + $0x80] sm:$0xff] }
 0x7a1   : > { %2061 = vmatprep.subr.mxu0 %v1752_v43  ;;  %2132 = vmatprep.subr.mxu1 %v1754_v44  ;;  %v2241_v43 = vld [vmem:[#allocation13 + $0x280] sm:$0xff]  ;;  %v2176_v44 = vld [vmem:[#allocation13 + $0x78] sm:$0xff] }
 0x7a2   : > { %2062 = vmatpush2.msra.mxu0 %v1751_v45  ;;  %2133 = vmatpush2.msra.mxu1 %v1753_v46  ;;  %v2240_v45 = vld [vmem:[#allocation13 + $0x278] sm:$0xff]  ;;  %v2175_v46 = vld [vmem:[#allocation13 + $0x70] sm:$0xff] }
 0x7a3   : > { %2063 = vmatprep.subr.mxu0 %v1744_v47  ;;  %2134 = vmatprep.subr.mxu1 %v1746_v48  ;;  %v2239_v47 = vld [vmem:[#allocation13 + $0x270] sm:$0xff]  ;;  %v2174_v48 = vld [vmem:[#allocation13 + $0x68] sm:$0xff] }
 0x7a4   : > { %2064 = vmatpush2.msra.mxu0 %v1743_v49  ;;  %2135 = vmatpush2.msra.mxu1 %v1745_v52  ;;  %v2238_v49 = vld [vmem:[#allocation13 + $0x268] sm:$0xff]  ;;  %v2173_v52 = vld [vmem:[#allocation13 + $0x60] sm:$0xff] }
 0x7a5   : > { %2065 = vmatprep.subr.mxu0 %v1736_v35  ;;  %2136 = vmatprep.subr.mxu1 %v1738_v53  ;;  %v2237_v35 = vld [vmem:[#allocation13 + $0x260] sm:$0xff]  ;;  %v2172_v53 = vld [vmem:[#allocation13 + $0x58] sm:$0xff] }
 0x7a6   : > { %2066 = vmatpush2.msra.mxu0 %v1735_v54  ;;  %2137 = vmatpush2.msra.mxu1 %v1737_v55  ;;  %v2236_v54 = vld [vmem:[#allocation13 + $0x258] sm:$0xff]  ;;  %v2171_v55 = vld [vmem:[#allocation13 + $0x50] sm:$0xff] }
 0x7a7   : > { %2067 = vmatprep.subr.mxu0 %v1728_v56  ;;  %2138 = vmatprep.subr.mxu1 %v1730_v57  ;;  %v2235_v56 = vld [vmem:[#allocation13 + $0x250] sm:$0xff]  ;;  %v2170_v57 = vld [vmem:[#allocation13 + $0x48] sm:$0xff] }
 0x7a8   : > { %2068 = vmatpush2.msra.mxu0 %v1727_v58  ;;  %2139 = vmatpush2.msra.mxu1 %v1729_v59  ;;  %v2234_v58 = vld [vmem:[#allocation13 + $0x248] sm:$0xff]  ;;  %v2169_v59 = vld [vmem:[#allocation13 + $0x40] sm:$0xff] }
 0x7a9   : > { %2069 = vmatprep.subr.mxu0 %v1720_v60  ;;  %2140 = vmatprep.subr.mxu1 %v1722_v61  ;;  %v2233_v60 = vld [vmem:[#allocation13 + $0x240] sm:$0xff]  ;;  %v2168_v61 = vld [vmem:[#allocation13 + $0x38] sm:$0xff] }
 0x7aa   : > { %2070 = vmatpush2.msra.mxu0 %v1719_v63  ;;  %2141 = vmatpush2.msra.mxu1 %v1721_v2  ;;  %v2232_v63 = vld [vmem:[#allocation13 + $0x238] sm:$0xff]  ;;  %v2167_v2 = vld [vmem:[#allocation13 + $0x30] sm:$0xff] }
 0x7ab   : > { %2071 = vmatprep.subr.mxu0 %v1712_v3  ;;  %2142 = vmatprep.subr.mxu1 %v1714_v51  ;;  %v2231_v3 = vld [vmem:[#allocation13 + $0x230] sm:$0xff]  ;;  %v2166_v51 = vld [vmem:[#allocation13 + $0x28] sm:$0xff] }
 0x7ac   : > { %2072 = vmatpush2.msra.mxu0 %v1711_v50  ;;  %2143 = vmatpush2.msra.mxu1 %v1713_v4  ;;  %v2230_v50 = vld [vmem:[#allocation13 + $0x228] sm:$0xff]  ;;  %v2165_v4 = vld [vmem:[#allocation13 + $0x20] sm:$0xff] }
 0x7ad   : > { %2073 = vmatprep.subr.mxu0 %v1704_v5  ;;  %2144 = vmatprep.subr.mxu1 %v1706_v6  ;;  %v2229_v5 = vld [vmem:[#allocation13 + $0x220] sm:$0xff]  ;;  %v2164_v6 = vld [vmem:[#allocation13 + $0x18] sm:$0xff] }
 0x7ae   : > { %2074 = vmatpush2.msra.mxu0 %v1703_v7  ;;  %2145 = vmatpush2.msra.mxu1 %v1705_v8  ;;  %v2228_v7 = vld [vmem:[#allocation13 + $0x218] sm:$0xff]  ;;  %v2163_v8 = vld [vmem:[#allocation13 + $0x10] sm:$0xff] }
 0x7af   : > { %2076 = vmatmul.mubr.f32.vlgmr.msra.gmra.mxu0 %v3684_v62  ;;  %2147 = vmatmul.mubr.f32.vlgmr.msra.gmra.mxu1 %v3684_v62  ;;  %v2185_v62 = vld [vmem:[#allocation13 + $0xc0] sm:$0xff] }
 0x7b0   : > { %2429 = vmatprep.subr.mxu0 %v2192_v9  ;;  %2500 = vmatprep.subr.mxu1 %v2256_v10  ;;  %v2227_v9 = vld [vmem:[#allocation13 + $0x210] sm:$0xff]  ;;  %v2162_v10 = vld [vmem:[#allocation13 + $0x8] sm:$0xff] }
 0x7b1   : > { %2430 = vmatpush1.msra.mxu0 %v2191_v11  ;;  %2501 = vmatpush1.msra.mxu1 %v2255_v12  ;;  %v2226_v11 = vld [vmem:[#allocation13 + $0x208] sm:$0xff]  ;;  %v2161_v12 = vld [vmem:[#allocation13] sm:$0xff] }
 0x7b2   : > { %2431 = vmatprep.subr.mxu0 %v2190_v13  ;;  %2502 = vmatprep.subr.mxu1 %v2254_v14  ;;  %v2225_v13 = vld [vmem:[#allocation13 + $0x200] sm:$0xff]  ;;  %v2224_v14 = vld [vmem:[#allocation13 + $0x1f8] sm:$0xff] }
 0x7b3   : > { %2432 = vmatpush1.msra.mxu0 %v2189_v15  ;;  %2503 = vmatpush1.msra.mxu1 %v2253_v16  ;;  %v2288_v15 = vld [vmem:[#allocation13 + $0x3f8] sm:$0xff]  ;;  %v2223_v16 = vld [vmem:[#allocation13 + $0x1f0] sm:$0xff] }
 0x7b4   : > { %2433 = vmatprep.subr.mxu0 %v2188_v20  ;;  %2504 = vmatprep.subr.mxu1 %v2252_v21  ;;  %v2287_v20 = vld [vmem:[#allocation13 + $0x3f0] sm:$0xff]  ;;  %v2222_v21 = vld [vmem:[#allocation13 + $0x1e8] sm:$0xff] }
 0x7b5   : > { %2434 = vmatpush1.msra.mxu0 %v2187_v24  ;;  %2505 = vmatpush1.msra.mxu1 %v2251_v25  ;;  %v2286_v24 = vld [vmem:[#allocation13 + $0x3e8] sm:$0xff]  ;;  %v2221_v25 = vld [vmem:[#allocation13 + $0x1e0] sm:$0xff] }
 0x7b6   : > { %2435 = vmatprep.subr.mxu0 %v2186_v26  ;;  %2506 = vmatprep.subr.mxu1 %v2250_v29  ;;  %v2285_v26 = vld [vmem:[#allocation13 + $0x3e0] sm:$0xff]  ;;  %v2220_v29 = vld [vmem:[#allocation13 + $0x1d8] sm:$0xff] }
 0x7b7   : > { %2436 = vmatpush1.msra.mxu0 %v2185_v62  ;;  %2507 = vmatpush1.msra.mxu1 %v2249_v30  ;;  %v2284_v62 = vld [vmem:[#allocation13 + $0x3d8] sm:$0xff]  ;;  %v2219_v30 = vld [vmem:[#allocation13 + $0x1d0] sm:$0xff] }
 0x7b8   : > { %2437 = vmatprep.subr.mxu0 %v2184_v0  ;;  %2508 = vmatprep.subr.mxu1 %v2248_v31  ;;  %v2283_v0 = vld [vmem:[#allocation13 + $0x3d0] sm:$0xff]  ;;  %v2218_v31 = vld [vmem:[#allocation13 + $0x1c8] sm:$0xff] }
 0x7b9   : > { %2438 = vmatpush1.msra.mxu0 %v2183_v1  ;;  %2509 = vmatpush1.msra.mxu1 %v2247_v33  ;;  %v2282_v1 = vld [vmem:[#allocation13 + $0x3c8] sm:$0xff]  ;;  %v2217_v33 = vld [vmem:[#allocation13 + $0x1c0] sm:$0xff] }
 0x7ba   : > { %2439 = vmatprep.subr.mxu0 %v2182_v34  ;;  %2510 = vmatprep.subr.mxu1 %v2246_v23  ;;  %v2281_v34 = vld [vmem:[#allocation13 + $0x3c0] sm:$0xff]  ;;  %v2216_v23 = vld [vmem:[#allocation13 + $0x1b8] sm:$0xff] }
 0x7bb   : > { %2440 = vmatpush1.msra.mxu0 %v2181_v22  ;;  %2511 = vmatpush1.msra.mxu1 %v2245_v36  ;;  %v2280_v22 = vld [vmem:[#allocation13 + $0x3b8] sm:$0xff]  ;;  %v2215_v36 = vld [vmem:[#allocation13 + $0x1b0] sm:$0xff] }
 0x7bc   : > { %2441 = vmatprep.subr.mxu0 %v2180_v37  ;;  %2512 = vmatprep.subr.mxu1 %v2244_v32  ;;  %v2279_v37 = vld [vmem:[#allocation13 + $0x3b0] sm:$0xff]  ;;  %v2214_v32 = vld [vmem:[#allocation13 + $0x1a8] sm:$0xff] }
 0x7bd   : > { %2442 = vmatpush1.msra.mxu0 %v2179_v38  ;;  %2513 = vmatpush1.msra.mxu1 %v2243_v39  ;;  %v2278_v38 = vld [vmem:[#allocation13 + $0x3a8] sm:$0xff]  ;;  %v2213_v39 = vld [vmem:[#allocation13 + $0x1a0] sm:$0xff] }
 0x7be   : > { %2443 = vmatprep.subr.mxu0 %v2178_v40  ;;  %2514 = vmatprep.subr.mxu1 %v2242_v41  ;;  %v2277_v40 = vld [vmem:[#allocation13 + $0x3a0] sm:$0xff]  ;;  %v2212_v41 = vld [vmem:[#allocation13 + $0x198] sm:$0xff] }
 0x7bf   : > { %2444 = vmatpush1.msra.mxu0 %v2177_v42  ;;  %2515 = vmatpush1.msra.mxu1 %v2241_v43  ;;  %v2276_v42 = vld [vmem:[#allocation13 + $0x398] sm:$0xff]  ;;  %v2211_v43 = vld [vmem:[#allocation13 + $0x190] sm:$0xff] }
 0x7c0   : > { %2445 = vmatprep.subr.mxu0 %v2176_v44  ;;  %2516 = vmatprep.subr.mxu1 %v2240_v45  ;;  %v2275_v44 = vld [vmem:[#allocation13 + $0x390] sm:$0xff]  ;;  %v2210_v45 = vld [vmem:[#allocation13 + $0x188] sm:$0xff] }
 0x7c1   : > { %2446 = vmatpush1.msra.mxu0 %v2175_v46  ;;  %2517 = vmatpush1.msra.mxu1 %v2239_v47  ;;  %v2274_v46 = vld [vmem:[#allocation13 + $0x388] sm:$0xff]  ;;  %v2209_v47 = vld [vmem:[#allocation13 + $0x180] sm:$0xff] }
 0x7c2   : > { %2447 = vmatprep.subr.mxu0 %v2174_v48  ;;  %2518 = vmatprep.subr.mxu1 %v2238_v49  ;;  %v2273_v48 = vld [vmem:[#allocation13 + $0x380] sm:$0xff]  ;;  %v2208_v49 = vld [vmem:[#allocation13 + $0x178] sm:$0xff] }
 0x7c3   : > { %2448 = vmatpush1.msra.mxu0 %v2173_v52  ;;  %2519 = vmatpush1.msra.mxu1 %v2237_v35  ;;  %v2272_v52 = vld [vmem:[#allocation13 + $0x378] sm:$0xff]  ;;  %v2207_v35 = vld [vmem:[#allocation13 + $0x170] sm:$0xff] }
 0x7c4   : > { %2449 = vmatprep.subr.mxu0 %v2172_v53  ;;  %2520 = vmatprep.subr.mxu1 %v2236_v54  ;;  %v2271_v53 = vld [vmem:[#allocation13 + $0x370] sm:$0xff]  ;;  %v2206_v54 = vld [vmem:[#allocation13 + $0x168] sm:$0xff] }
 0x7c5   : > { %2450 = vmatpush1.msra.mxu0 %v2171_v55  ;;  %2521 = vmatpush1.msra.mxu1 %v2235_v56  ;;  %v2270_v55 = vld [vmem:[#allocation13 + $0x368] sm:$0xff]  ;;  %v2205_v56 = vld [vmem:[#allocation13 + $0x160] sm:$0xff] }
 0x7c6   : > { %2451 = vmatprep.subr.mxu0 %v2170_v57  ;;  %2522 = vmatprep.subr.mxu1 %v2234_v58  ;;  %v2269_v57 = vld [vmem:[#allocation13 + $0x360] sm:$0xff]  ;;  %v2204_v58 = vld [vmem:[#allocation13 + $0x158] sm:$0xff] }
 0x7c7   : > { %2452 = vmatpush1.msra.mxu0 %v2169_v59  ;;  %2523 = vmatpush1.msra.mxu1 %v2233_v60  ;;  %v2268_v59 = vld [vmem:[#allocation13 + $0x358] sm:$0xff]  ;;  %v2203_v60 = vld [vmem:[#allocation13 + $0x150] sm:$0xff] }
 0x7c8   : > { %2453 = vmatprep.subr.mxu0 %v2168_v61  ;;  %2524 = vmatprep.subr.mxu1 %v2232_v63  ;;  %v2267_v61 = vld [vmem:[#allocation13 + $0x350] sm:$0xff]  ;;  %v2202_v63 = vld [vmem:[#allocation13 + $0x148] sm:$0xff] }
 0x7c9   : > { %2454 = vmatpush1.msra.mxu0 %v2167_v2  ;;  %2525 = vmatpush1.msra.mxu1 %v2231_v3  ;;  %v2266_v2 = vld [vmem:[#allocation13 + $0x348] sm:$0xff]  ;;  %v2201_v3 = vld [vmem:[#allocation13 + $0x140] sm:$0xff] }
 0x7ca   : > { %2455 = vmatprep.subr.mxu0 %v2166_v51  ;;  %2526 = vmatprep.subr.mxu1 %v2230_v50  ;;  %v2265_v51 = vld [vmem:[#allocation13 + $0x340] sm:$0xff]  ;;  %v2200_v50 = vld [vmem:[#allocation13 + $0x138] sm:$0xff] }
 0x7cb   : > { %2456 = vmatpush1.msra.mxu0 %v2165_v4  ;;  %2527 = vmatpush1.msra.mxu1 %v2229_v5  ;;  %v2264_v4 = vld [vmem:[#allocation13 + $0x338] sm:$0xff]  ;;  %v2199_v5 = vld [vmem:[#allocation13 + $0x130] sm:$0xff] }
 0x7cc   : > { %2457 = vmatprep.subr.mxu0 %v2164_v6  ;;  %2528 = vmatprep.subr.mxu1 %v2228_v7  ;;  %v2263_v6 = vld [vmem:[#allocation13 + $0x330] sm:$0xff]  ;;  %v2198_v7 = vld [vmem:[#allocation13 + $0x128] sm:$0xff] }
 0x7cd   : > { %2458 = vmatpush1.msra.mxu0 %v2163_v8  ;;  %2529 = vmatpush1.msra.mxu1 %v2227_v9  ;;  %v2262_v8 = vld [vmem:[#allocation13 + $0x328] sm:$0xff]  ;;  %v2197_v9 = vld [vmem:[#allocation13 + $0x120] sm:$0xff] }
 0x7ce   : > { %2459 = vmatprep.subr.mxu0 %v2162_v10  ;;  %2530 = vmatprep.subr.mxu1 %v2226_v11  ;;  %v2261_v10 = vld [vmem:[#allocation13 + $0x320] sm:$0xff]  ;;  %v2196_v11 = vld [vmem:[#allocation13 + $0x118] sm:$0xff] }
 0x7cf   : > { %2460 = vmatpush1.msra.mxu0 %v2161_v12  ;;  %2531 = vmatpush1.msra.mxu1 %v2225_v13  ;;  %v2260_v12 = vld [vmem:[#allocation13 + $0x318] sm:$0xff]  ;;  %v2195_v13 = vld [vmem:[#allocation13 + $0x110] sm:$0xff] }
 0x7d0   : > { %2461 = vmatprep.subr.mxu0 %v2224_v14  ;;  %2532 = vmatprep.subr.mxu1 %v2288_v15  ;;  %v2259_v14 = vld [vmem:[#allocation13 + $0x310] sm:$0xff]  ;;  %v2194_v15 = vld [vmem:[#allocation13 + $0x108] sm:$0xff] }
 0x7d1   : > { %2462 = vmatpush2.msra.mxu0 %v2223_v16  ;;  %2533 = vmatpush2.msra.mxu1 %v2287_v20  ;;  %v2258_v16 = vld [vmem:[#allocation13 + $0x308] sm:$0xff]  ;;  %v2193_v20 = vld [vmem:[#allocation13 + $0x100] sm:$0xff] }
 0x7d2   : > { %2463 = vmatprep.subr.mxu0 %v2222_v21  ;;  %2534 = vmatprep.subr.mxu1 %v2286_v24  ;;  %v2257_v21 = vld [vmem:[#allocation13 + $0x300] sm:$0xff]  ;;  %v2320_v24 = vld [vmem:[#allocation13 + $0x4f8] sm:$0xff] }
 0x7d3   : > { %2464 = vmatpush2.msra.mxu0 %v2221_v25  ;;  %2535 = vmatpush2.msra.mxu1 %v2285_v26  ;;  %v2384_v25 = vld [vmem:[#allocation13 + $0x6f8] sm:$0xff]  ;;  %v1839_v26 = vsub.s32 2, %v3611_v17 }
 0x7d4   : > { %2465 = vmatprep.subr.mxu0 %v2220_v29  ;;  %2536 = vmatprep.subr.mxu1 %v2284_v62  ;;  %v3694_v29 = vld [vmem:[%s3765_s10] sm:$0xff]  ;;  %v1843_v62 = vsub.s32 3, %v3611_v17 }
 0x7d5   : > { %2466 = vmatpush2.msra.mxu0 %v2219_v30  ;;  %2537 = vmatpush2.msra.mxu1 %v2283_v0  ;;  %v1832_v30 = vrot.slane %v3694_v29, %v3617_v19  ;;  %v1840_v0 = vrot.slane %v3694_v29, %v1839_v26  ;;  %v2299_v26 = vld [vmem:[#allocation13 + $0x450] sm:$0xff] }
 0x7d6   : > { %2467 = vmatprep.subr.mxu0 %v2218_v31  ;;  %2538 = vmatprep.subr.mxu1 %v2282_v1  ;;  %v1836_v31 = vrot.slane %v3694_v29, %v3614_v18  ;;  %v1844_v1 = vrot.slane %v3694_v29, %v1843_v62  ;;  %v2363_v62 = vld [vmem:[#allocation13 + $0x650] sm:$0xff] }
 0x7d7   : > { %2468 = vmatpush2.msra.mxu0 %v2217_v33  ;;  %2539 = vmatpush2.msra.mxu1 %v2281_v34 }
 0x7d8   : > { %2469 = vmatprep.subr.mxu0 %v2216_v23  ;;  %2540 = vmatprep.subr.mxu1 %v2280_v22 }
 0x7d9   : > { %2470 = vmatpush2.msra.mxu0 %v2215_v36  ;;  %2541 = vmatpush2.msra.mxu1 %v2279_v37 }
 0x7da   : > { %2471 = vmatprep.subr.mxu0 %v2214_v32  ;;  %2542 = vmatprep.subr.mxu1 %v2278_v38 }
 0x7db   : > { %2472 = vmatpush2.msra.mxu0 %v2213_v39  ;;  %2543 = vmatpush2.msra.mxu1 %v2277_v40 }
 0x7dc   : > { %2473 = vmatprep.subr.mxu0 %v2212_v41  ;;  %2544 = vmatprep.subr.mxu1 %v2276_v42 }
 0x7dd   : > { %2474 = vmatpush2.msra.mxu0 %v2211_v43  ;;  %2545 = vmatpush2.msra.mxu1 %v2275_v44  ;;  %v2319_v43 = vld [vmem:[#allocation13 + $0x4f0] sm:$0xff] }
 0x7de   : > { %2475 = vmatprep.subr.mxu0 %v2210_v45  ;;  %2546 = vmatprep.subr.mxu1 %v2274_v46  ;;  %v2383_v44 = vld [vmem:[#allocation13 + $0x6f0] sm:$0xff]  ;;  %v2318_v45 = vld [vmem:[#allocation13 + $0x4e8] sm:$0xff] }
 0x7df   : > { %2476 = vmatpush2.msra.mxu0 %v2209_v47  ;;  %2547 = vmatpush2.msra.mxu1 %v2273_v48  ;;  %v2382_v46 = vld [vmem:[#allocation13 + $0x6e8] sm:$0xff]  ;;  %v2317_v47 = vld [vmem:[#allocation13 + $0x4e0] sm:$0xff] }
 0x7e0   : > { %2477 = vmatprep.subr.mxu0 %v2208_v49  ;;  %2548 = vmatprep.subr.mxu1 %v2272_v52  ;;  %v2381_v48 = vld [vmem:[#allocation13 + $0x6e0] sm:$0xff]  ;;  %v2316_v49 = vld [vmem:[#allocation13 + $0x4d8] sm:$0xff] }
 0x7e1   : > { %2478 = vmatpush2.msra.mxu0 %v2207_v35  ;;  %2549 = vmatpush2.msra.mxu1 %v2271_v53  ;;  %v2380_v52 = vld [vmem:[#allocation13 + $0x6d8] sm:$0xff]  ;;  %v2315_v35 = vld [vmem:[#allocation13 + $0x4d0] sm:$0xff] }
 0x7e2   : > { %2479 = vmatprep.subr.mxu0 %v2206_v54  ;;  %2550 = vmatprep.subr.mxu1 %v2270_v55  ;;  %v2379_v53 = vld [vmem:[#allocation13 + $0x6d0] sm:$0xff]  ;;  %v2314_v54 = vld [vmem:[#allocation13 + $0x4c8] sm:$0xff] }
 0x7e3   : > { %2480 = vmatpush2.msra.mxu0 %v2205_v56  ;;  %2551 = vmatpush2.msra.mxu1 %v2269_v57  ;;  %v2378_v55 = vld [vmem:[#allocation13 + $0x6c8] sm:$0xff]  ;;  %v2313_v56 = vld [vmem:[#allocation13 + $0x4c0] sm:$0xff] }
 0x7e4   : > { %2481 = vmatprep.subr.mxu0 %v2204_v58  ;;  %2552 = vmatprep.subr.mxu1 %v2268_v59  ;;  %v2377_v57 = vld [vmem:[#allocation13 + $0x6c0] sm:$0xff]  ;;  %v2312_v58 = vld [vmem:[#allocation13 + $0x4b8] sm:$0xff] }
 0x7e5   : > { %2482 = vmatpush2.msra.mxu0 %v2203_v60  ;;  %2553 = vmatpush2.msra.mxu1 %v2267_v61  ;;  %v2376_v59 = vld [vmem:[#allocation13 + $0x6b8] sm:$0xff]  ;;  %v2311_v60 = vld [vmem:[#allocation13 + $0x4b0] sm:$0xff] }
 0x7e6   : > { %2483 = vmatprep.subr.mxu0 %v2202_v63  ;;  %2554 = vmatprep.subr.mxu1 %v2266_v2  ;;  %v2375_v61 = vld [vmem:[#allocation13 + $0x6b0] sm:$0xff]  ;;  %v2310_v63 = vld [vmem:[#allocation13 + $0x4a8] sm:$0xff] }
 0x7e7   : > { %2484 = vmatpush2.msra.mxu0 %v2201_v3  ;;  %2555 = vmatpush2.msra.mxu1 %v2265_v51  ;;  %v2374_v2 = vld [vmem:[#allocation13 + $0x6a8] sm:$0xff]  ;;  %v2309_v3 = vld [vmem:[#allocation13 + $0x4a0] sm:$0xff] }
 0x7e8   : > { %2485 = vmatprep.subr.mxu0 %v2200_v50  ;;  %2556 = vmatprep.subr.mxu1 %v2264_v4  ;;  %v2373_v51 = vld [vmem:[#allocation13 + $0x6a0] sm:$0xff]  ;;  %v2308_v50 = vld [vmem:[#allocation13 + $0x498] sm:$0xff] }
 0x7e9   : > { %2486 = vmatpush2.msra.mxu0 %v2199_v5  ;;  %2557 = vmatpush2.msra.mxu1 %v2263_v6  ;;  %v2372_v4 = vld [vmem:[#allocation13 + $0x698] sm:$0xff]  ;;  %v2307_v5 = vld [vmem:[#allocation13 + $0x490] sm:$0xff] }
 0x7ea   : > { %2487 = vmatprep.subr.mxu0 %v2198_v7  ;;  %2558 = vmatprep.subr.mxu1 %v2262_v8  ;;  %v2371_v6 = vld [vmem:[#allocation13 + $0x690] sm:$0xff]  ;;  %v2306_v7 = vld [vmem:[#allocation13 + $0x488] sm:$0xff] }
 0x7eb   : > { %2488 = vmatpush2.msra.mxu0 %v2197_v9  ;;  %2559 = vmatpush2.msra.mxu1 %v2261_v10  ;;  %v2370_v8 = vld [vmem:[#allocation13 + $0x688] sm:$0xff]  ;;  %v2305_v9 = vld [vmem:[#allocation13 + $0x480] sm:$0xff] }
 0x7ec   : > { %2489 = vmatprep.subr.mxu0 %v2196_v11  ;;  %2560 = vmatprep.subr.mxu1 %v2260_v12  ;;  %v2369_v10 = vld [vmem:[#allocation13 + $0x680] sm:$0xff]  ;;  %v2304_v11 = vld [vmem:[#allocation13 + $0x478] sm:$0xff] }
 0x7ed   : > { %2490 = vmatpush2.msra.mxu0 %v2195_v13  ;;  %2561 = vmatpush2.msra.mxu1 %v2259_v14  ;;  %v2368_v12 = vld [vmem:[#allocation13 + $0x678] sm:$0xff]  ;;  %v2303_v13 = vld [vmem:[#allocation13 + $0x470] sm:$0xff] }
 0x7ee   : > { %2491 = vmatprep.subr.mxu0 %v2194_v15  ;;  %2562 = vmatprep.subr.mxu1 %v2258_v16  ;;  %v2367_v14 = vld [vmem:[#allocation13 + $0x670] sm:$0xff]  ;;  %v2302_v15 = vld [vmem:[#allocation13 + $0x468] sm:$0xff] }
 0x7ef   : > { %2492 = vmatpush2.msra.mxu0 %v2193_v20  ;;  %2563 = vmatpush2.msra.mxu1 %v2257_v21  ;;  %v2366_v16 = vld [vmem:[#allocation13 + $0x668] sm:$0xff]  ;;  %v2301_v20 = vld [vmem:[#allocation13 + $0x460] sm:$0xff] }
 0x7f0   : > { %2571 = vmatprep.subr.mxu0 %v2320_v24  ;;  %2642 = vmatprep.subr.mxu1 %v2384_v25  ;;  %v2365_v21 = vld [vmem:[#allocation13 + $0x660] sm:$0xff]  ;;  %v2300_v24 = vld [vmem:[#allocation13 + $0x458] sm:$0xff] }
 0x7f1   : > { %v2364_v25 = vld [vmem:[#allocation13 + $0x658] sm:$0xff] }
 0x82e   : > { %v1935_v33 = vpop.f32.mrf.mxu0  ;;  %v2006_v34 = vpop.f32.mrf.mxu1 }
 0x82f   : > { %v1936_v23 = vadd.f32 %v1935_v33, %v1832_v30  ;;  %v2007_v22 = vadd.f32 %v2006_v34, %v1840_v0  ;;  %v2298_v30 = vld [vmem:[#allocation13 + $0x448] sm:$0xff]  ;;  %v2296_v33 = vld [vmem:[#allocation13 + $0x438] sm:$0xff] }
 0x830   : > { %v1937_v36 = vpop.f32.mrf.mxu0  ;;  %v2008_v37 = vpop.f32.mrf.mxu1  ;;  %v2362_v0 = vld [vmem:[#allocation13 + $0x648] sm:$0xff]  ;;  %v2360_v34 = vld [vmem:[#allocation13 + $0x638] sm:$0xff] }
 0x831   : > { %v1938_v32 = vadd.f32 %v1937_v36, %v1836_v31  ;;  %v2009_v38 = vadd.f32 %v2008_v37, %v1844_v1  ;;  %v2153_v41 = vmax.f32 %v1936_v23, 0.0  ;;  %v2155_v42 = vmax.f32 %v2007_v22, 0.0  ;;  %v2297_v31 = vld [vmem:[#allocation13 + $0x440] sm:$0xff]  ;;  %v2295_v23 = vld [vmem:[#allocation13 + $0x430] sm:$0xff]  ;;  %v2294_v36 = vld [vmem:[#allocation13 + $0x428] sm:$0xff] }
 0x832   : > { %v2361_v1 = vld [vmem:[#allocation13 + $0x640] sm:$0xff]  ;;  %v2359_v22 = vld [vmem:[#allocation13 + $0x630] sm:$0xff]  ;;  %v2358_v37 = vld [vmem:[#allocation13 + $0x628] sm:$0xff] }
 0x833   : > { %v2154_v39 = vmax.f32 %v1938_v32, 0.0  ;;  %v2156_v40 = vmax.f32 %v2009_v38, 0.0  ;;  %v2293_v32 = vld [vmem:[#allocation13 + $0x420] sm:$0xff] }
 0x834   : > { %v2357_v38 = vld [vmem:[#allocation13 + $0x620] sm:$0xff] }
 0x835   : > { %2493 = vmatprep.mubr.f32.mxu0 %v2154_v39  ;;  %2564 = vmatprep.mubr.f32.mxu1 %v2156_v40  ;;  %v2292_v39 = vld [vmem:[#allocation13 + $0x418] sm:$0xff] }
 0x836   : > { %2494 = vmatmul.mubr.f32.vlgmr.msra.gmra.mxu0 %v2153_v41  ;;  %2565 = vmatmul.mubr.f32.vlgmr.msra.gmra.mxu1 %v2155_v42  ;;  %v2356_v40 = vld [vmem:[#allocation13 + $0x618] sm:$0xff]  ;;  %v2291_v41 = vld [vmem:[#allocation13 + $0x410] sm:$0xff] }
 0x837   : > { %2572 = vmatpush1.msra.mxu0 %v2319_v43  ;;  %2643 = vmatpush1.msra.mxu1 %v2383_v44  ;;  %v2355_v42 = vld [vmem:[#allocation13 + $0x610] sm:$0xff]  ;;  %v2290_v43 = vld [vmem:[#allocation13 + $0x408] sm:$0xff] }
 0x838   : > { %2573 = vmatprep.subr.mxu0 %v2318_v45  ;;  %2644 = vmatprep.subr.mxu1 %v2382_v46  ;;  %v2354_v44 = vld [vmem:[#allocation13 + $0x608] sm:$0xff]  ;;  %v2289_v45 = vld [vmem:[#allocation13 + $0x400] sm:$0xff] }
 0x839   : > { %2574 = vmatpush1.msra.mxu0 %v2317_v47  ;;  %2645 = vmatpush1.msra.mxu1 %v2381_v48  ;;  %v2353_v46 = vld [vmem:[#allocation13 + $0x600] sm:$0xff]  ;;  %v2352_v47 = vld [vmem:[#allocation13 + $0x5f8] sm:$0xff] }
 0x83a   : > { %2575 = vmatprep.subr.mxu0 %v2316_v49  ;;  %2646 = vmatprep.subr.mxu1 %v2380_v52  ;;  %v2416_v48 = vld [vmem:[#allocation13 + $0x7f8] sm:$0xff]  ;;  %v2351_v49 = vld [vmem:[#allocation13 + $0x5f0] sm:$0xff] }
 0x83b   : > { %2576 = vmatpush1.msra.mxu0 %v2315_v35  ;;  %2647 = vmatpush1.msra.mxu1 %v2379_v53  ;;  %v2415_v52 = vld [vmem:[#allocation13 + $0x7f0] sm:$0xff]  ;;  %v2350_v35 = vld [vmem:[#allocation13 + $0x5e8] sm:$0xff] }
 0x83c   : > { %2577 = vmatprep.subr.mxu0 %v2314_v54  ;;  %2648 = vmatprep.subr.mxu1 %v2378_v55  ;;  %v2414_v53 = vld [vmem:[#allocation13 + $0x7e8] sm:$0xff]  ;;  %v2349_v54 = vld [vmem:[#allocation13 + $0x5e0] sm:$0xff] }
 0x83d   : > { %2578 = vmatpush1.msra.mxu0 %v2313_v56  ;;  %2649 = vmatpush1.msra.mxu1 %v2377_v57  ;;  %v2413_v55 = vld [vmem:[#allocation13 + $0x7e0] sm:$0xff]  ;;  %v2348_v56 = vld [vmem:[#allocation13 + $0x5d8] sm:$0xff] }
 0x83e   : > { %2579 = vmatprep.subr.mxu0 %v2312_v58  ;;  %2650 = vmatprep.subr.mxu1 %v2376_v59  ;;  %v2412_v57 = vld [vmem:[#allocation13 + $0x7d8] sm:$0xff]  ;;  %v2347_v58 = vld [vmem:[#allocation13 + $0x5d0] sm:$0xff] }
 0x83f   : > { %2580 = vmatpush1.msra.mxu0 %v2311_v60  ;;  %2651 = vmatpush1.msra.mxu1 %v2375_v61  ;;  %v2411_v59 = vld [vmem:[#allocation13 + $0x7d0] sm:$0xff]  ;;  %v2346_v60 = vld [vmem:[#allocation13 + $0x5c8] sm:$0xff] }
 0x840   : > { %2581 = vmatprep.subr.mxu0 %v2310_v63  ;;  %2652 = vmatprep.subr.mxu1 %v2374_v2  ;;  %v2410_v61 = vld [vmem:[#allocation13 + $0x7c8] sm:$0xff]  ;;  %v2345_v63 = vld [vmem:[#allocation13 + $0x5c0] sm:$0xff] }
 0x841   : > { %2582 = vmatpush1.msra.mxu0 %v2309_v3  ;;  %2653 = vmatpush1.msra.mxu1 %v2373_v51  ;;  %v2409_v2 = vld [vmem:[#allocation13 + $0x7c0] sm:$0xff]  ;;  %v2344_v3 = vld [vmem:[#allocation13 + $0x5b8] sm:$0xff] }
 0x842   : > { %2583 = vmatprep.subr.mxu0 %v2308_v50  ;;  %2654 = vmatprep.subr.mxu1 %v2372_v4  ;;  %v2408_v51 = vld [vmem:[#allocation13 + $0x7b8] sm:$0xff]  ;;  %v2343_v50 = vld [vmem:[#allocation13 + $0x5b0] sm:$0xff] }
 0x843   : > { %2584 = vmatpush1.msra.mxu0 %v2307_v5  ;;  %2655 = vmatpush1.msra.mxu1 %v2371_v6  ;;  %v2407_v4 = vld [vmem:[#allocation13 + $0x7b0] sm:$0xff]  ;;  %v2342_v5 = vld [vmem:[#allocation13 + $0x5a8] sm:$0xff] }
 0x844   : > { %2585 = vmatprep.subr.mxu0 %v2306_v7  ;;  %2656 = vmatprep.subr.mxu1 %v2370_v8  ;;  %v2406_v6 = vld [vmem:[#allocation13 + $0x7a8] sm:$0xff]  ;;  %v2341_v7 = vld [vmem:[#allocation13 + $0x5a0] sm:$0xff] }
 0x845   : > { %2586 = vmatpush1.msra.mxu0 %v2305_v9  ;;  %2657 = vmatpush1.msra.mxu1 %v2369_v10  ;;  %v2405_v8 = vld [vmem:[#allocation13 + $0x7a0] sm:$0xff]  ;;  %v2340_v9 = vld [vmem:[#allocation13 + $0x598] sm:$0xff] }
 0x846   : > { %2587 = vmatprep.subr.mxu0 %v2304_v11  ;;  %2658 = vmatprep.subr.mxu1 %v2368_v12  ;;  %v2404_v10 = vld [vmem:[#allocation13 + $0x798] sm:$0xff]  ;;  %v2339_v11 = vld [vmem:[#allocation13 + $0x590] sm:$0xff] }
 0x847   : > { %2588 = vmatpush1.msra.mxu0 %v2303_v13  ;;  %2659 = vmatpush1.msra.mxu1 %v2367_v14  ;;  %v2403_v12 = vld [vmem:[#allocation13 + $0x790] sm:$0xff]  ;;  %v2338_v13 = vld [vmem:[#allocation13 + $0x588] sm:$0xff] }
 0x848   : > { %2589 = vmatprep.subr.mxu0 %v2302_v15  ;;  %2660 = vmatprep.subr.mxu1 %v2366_v16  ;;  %v2402_v14 = vld [vmem:[#allocation13 + $0x788] sm:$0xff]  ;;  %v2337_v15 = vld [vmem:[#allocation13 + $0x580] sm:$0xff] }
 0x849   : > { %2590 = vmatpush1.msra.mxu0 %v2301_v20  ;;  %2661 = vmatpush1.msra.mxu1 %v2365_v21  ;;  %v2401_v16 = vld [vmem:[#allocation13 + $0x780] sm:$0xff]  ;;  %v2336_v20 = vld [vmem:[#allocation13 + $0x578] sm:$0xff] }
 0x84a   : > { %2591 = vmatprep.subr.mxu0 %v2300_v24  ;;  %2662 = vmatprep.subr.mxu1 %v2364_v25  ;;  %v2400_v21 = vld [vmem:[#allocation13 + $0x778] sm:$0xff]  ;;  %v2335_v24 = vld [vmem:[#allocation13 + $0x570] sm:$0xff] }
 0x84b   : > { %2592 = vmatpush1.msra.mxu0 %v2299_v26  ;;  %2663 = vmatpush1.msra.mxu1 %v2363_v62  ;;  %v2399_v25 = vld [vmem:[#allocation13 + $0x770] sm:$0xff]  ;;  %v2334_v26 = vld [vmem:[#allocation13 + $0x568] sm:$0xff] }
 0x84c   : > { %2593 = vmatprep.subr.mxu0 %v2298_v30  ;;  %2664 = vmatprep.subr.mxu1 %v2362_v0  ;;  %v2398_v62 = vld [vmem:[#allocation13 + $0x768] sm:$0xff]  ;;  %v2333_v30 = vld [vmem:[#allocation13 + $0x560] sm:$0xff] }
 0x84d   : > { %2594 = vmatpush1.msra.mxu0 %v2297_v31  ;;  %2665 = vmatpush1.msra.mxu1 %v2361_v1  ;;  %v2397_v0 = vld [vmem:[#allocation13 + $0x760] sm:$0xff]  ;;  %v2332_v31 = vld [vmem:[#allocation13 + $0x558] sm:$0xff] }
 0x84e   : > { %2595 = vmatprep.subr.mxu0 %v2296_v33  ;;  %2666 = vmatprep.subr.mxu1 %v2360_v34  ;;  %v2396_v1 = vld [vmem:[#allocation13 + $0x758] sm:$0xff]  ;;  %v2331_v33 = vld [vmem:[#allocation13 + $0x550] sm:$0xff] }
 0x84f   : > { %2596 = vmatpush1.msra.mxu0 %v2295_v23  ;;  %2667 = vmatpush1.msra.mxu1 %v2359_v22  ;;  %v2395_v34 = vld [vmem:[#allocation13 + $0x750] sm:$0xff]  ;;  %v2330_v23 = vld [vmem:[#allocation13 + $0x548] sm:$0xff] }
 0x850   : > { %2597 = vmatprep.subr.mxu0 %v2294_v36  ;;  %2668 = vmatprep.subr.mxu1 %v2358_v37  ;;  %v2394_v22 = vld [vmem:[#allocation13 + $0x748] sm:$0xff]  ;;  %v1847_v36 = vsub.s32 4, %v3611_v17  ;;  %v1855_v37 = vsub.s32 6, %v3611_v17 }
 0x851   : > { %2598 = vmatpush1.msra.mxu0 %v2293_v32  ;;  %2669 = vmatpush1.msra.mxu1 %v2357_v38  ;;  %v2329_v32 = vld [vmem:[#allocation13 + $0x540] sm:$0xff] }
 0x852   : > { %2599 = vmatprep.subr.mxu0 %v2292_v39  ;;  %2670 = vmatprep.subr.mxu1 %v2356_v40  ;;  %v2393_v38 = vld [vmem:[#allocation13 + $0x740] sm:$0xff]  ;;  %v1851_v39 = vsub.s32 5, %v3611_v17  ;;  %v1859_v40 = vsub.s32 7, %v3611_v17 }
 0x853   : > { %2600 = vmatpush1.msra.mxu0 %v2291_v41  ;;  %2671 = vmatpush1.msra.mxu1 %v2355_v42  ;;  %v2328_v41 = vld [vmem:[#allocation13 + $0x538] sm:$0xff] }
 0x854   : > { %2601 = vmatprep.subr.mxu0 %v2290_v43  ;;  %2672 = vmatprep.subr.mxu1 %v2354_v44  ;;  %v2392_v42 = vld [vmem:[#allocation13 + $0x738] sm:$0xff]  ;;  %v2327_v43 = vld [vmem:[#allocation13 + $0x530] sm:$0xff]  ;;  %v1852_v17 = vrot.slane %v3694_v29, %v1851_v39 }
 0x855   : > { %2602 = vmatpush1.msra.mxu0 %v2289_v45  ;;  %2673 = vmatpush1.msra.mxu1 %v2353_v46  ;;  %v2391_v44 = vld [vmem:[#allocation13 + $0x730] sm:$0xff]  ;;  %v1848_v45 = vrot.slane %v3694_v29, %v1847_v36  ;;  %v1856_v46 = vrot.slane %v3694_v29, %v1855_v37 }
 0x856   : > { %2603 = vmatprep.subr.mxu0 %v2352_v47  ;;  %2674 = vmatprep.subr.mxu1 %v2416_v48  ;;  %v2326_v47 = vld [vmem:[#allocation13 + $0x528] sm:$0xff] }
 0x857   : > { %2604 = vmatpush2.msra.mxu0 %v2351_v49  ;;  %2675 = vmatpush2.msra.mxu1 %v2415_v52  ;;  %v2390_v48 = vld [vmem:[#allocation13 + $0x728] sm:$0xff]  ;;  %v1860_v49 = vrot.slane %v3694_v29, %v1859_v40  ;;  %v2325_v52 = vld [vmem:[#allocation13 + $0x520] sm:$0xff] }
 0x858   : > { %2605 = vmatprep.subr.mxu0 %v2350_v35  ;;  %2676 = vmatprep.subr.mxu1 %v2414_v53  ;;  %v2389_v35 = vld [vmem:[#allocation13 + $0x720] sm:$0xff]  ;;  %v2386_v29 = vld [vmem:[#allocation13 + $0x708] sm:$0xff] }
 0x859   : > { %2606 = vmatpush2.msra.mxu0 %v2349_v54  ;;  %2677 = vmatpush2.msra.mxu1 %v2413_v55  ;;  %v2324_v55 = vld [vmem:[#allocation13 + $0x518] sm:$0xff] }
 0x85a   : > { %2607 = vmatprep.subr.mxu0 %v2348_v56  ;;  %2678 = vmatprep.subr.mxu1 %v2412_v57  ;;  %v2388_v56 = vld [vmem:[#allocation13 + $0x718] sm:$0xff]  ;;  %v2323_v57 = vld [vmem:[#allocation13 + $0x510] sm:$0xff] }
 0x85b   : > { %2608 = vmatpush2.msra.mxu0 %v2347_v58  ;;  %2679 = vmatpush2.msra.mxu1 %v2411_v59  ;;  %v2387_v58 = vld [vmem:[#allocation13 + $0x710] sm:$0xff] }
 0x85c   : > { %2609 = vmatprep.subr.mxu0 %v2346_v60  ;;  %2680 = vmatprep.subr.mxu1 %v2410_v61 }
 0x85d   : > { %2610 = vmatpush2.msra.mxu0 %v2345_v63  ;;  %2681 = vmatpush2.msra.mxu1 %v2409_v2  ;;  %v2322_v2 = vld [vmem:[#allocation13 + $0x508] sm:$0xff] }
 0x85e   : > { %2611 = vmatprep.subr.mxu0 %v2344_v3  ;;  %2682 = vmatprep.subr.mxu1 %v2408_v51 }
 0x85f   : > { %2612 = vmatpush2.msra.mxu0 %v2343_v50  ;;  %2683 = vmatpush2.msra.mxu1 %v2407_v4  ;;  %v2321_v50 = vld [vmem:[#allocation13 + $0x500] sm:$0xff] }
 0x860   : > { %2613 = vmatprep.subr.mxu0 %v2342_v5  ;;  %2684 = vmatprep.subr.mxu1 %v2406_v6  ;;  %v2385_v4 = vld [vmem:[#allocation13 + $0x700] sm:$0xff] }
 0x861   : > { %2614 = vmatpush2.msra.mxu0 %v2341_v7  ;;  %2685 = vmatpush2.msra.mxu1 %v2405_v8 }
 0x862   : > { %2615 = vmatprep.subr.mxu0 %v2340_v9  ;;  %2686 = vmatprep.subr.mxu1 %v2404_v10  ;;  %v2417_v9 = vld [vmem:[%s3767_s12] sm:$0x3] }
 0x863   : > { %2616 = vmatpush2.msra.mxu0 %v2339_v11  ;;  %2687 = vmatpush2.msra.mxu1 %v2403_v12  ;;  %v2422_v11 = vrot.slane %v2417_v9, %v3617_v19  ;;  %v2426_v12 = vrot.slane %v2417_v9, %v3614_v18 }
 0x864   : > { %2617 = vmatprep.subr.mxu0 %v2338_v13  ;;  %2688 = vmatprep.subr.mxu1 %v2402_v14 }
 0x865   : > { %2618 = vmatpush2.msra.mxu0 %v2337_v15  ;;  %2689 = vmatpush2.msra.mxu1 %v2401_v16 }
 0x866   : > { %2619 = vmatprep.subr.mxu0 %v2336_v20  ;;  %2690 = vmatprep.subr.mxu1 %v2400_v21 }
 0x867   : > { %2620 = vmatpush2.msra.mxu0 %v2335_v24  ;;  %2691 = vmatpush2.msra.mxu1 %v2399_v25 }
 0x868   : > { %2621 = vmatprep.subr.mxu0 %v2334_v26  ;;  %2692 = vmatprep.subr.mxu1 %v2398_v62 }
 0x869   : > { %2622 = vmatpush2.msra.mxu0 %v2333_v30  ;;  %2693 = vmatpush2.msra.mxu1 %v2397_v0 }
 0x86a   : > { %2623 = vmatprep.subr.mxu0 %v2332_v31  ;;  %2694 = vmatprep.subr.mxu1 %v2396_v1 }
 0x86b   : > { %2624 = vmatpush2.msra.mxu0 %v2331_v33  ;;  %2695 = vmatpush2.msra.mxu1 %v2395_v34 }
 0x86c   : > { %2625 = vmatprep.subr.mxu0 %v2330_v23  ;;  %2696 = vmatprep.subr.mxu1 %v2394_v22 }
 0x86d   : > { %2626 = vmatpush2.msra.mxu0 %v2329_v32  ;;  %2697 = vmatpush2.msra.mxu1 %v2393_v38 }
 0x86e   : > { %2627 = vmatprep.subr.mxu0 %v2328_v41  ;;  %2698 = vmatprep.subr.mxu1 %v2392_v42 }
 0x86f   : > { %v2077_v53 = vpop.f32.mrf.mxu0  ;;  %v2148_v54 = vpop.f32.mrf.mxu1  ;;  %2628 = vmatpush2.msra.mxu0 %v2327_v43  ;;  %2699 = vmatpush2.msra.mxu1 %v2391_v44 }
 0x870   : > { %2629 = vmatprep.subr.mxu0 %v2326_v47  ;;  %2700 = vmatprep.subr.mxu1 %v2390_v48  ;;  %v2078_v59 = vadd.f32 %v2077_v53, %v1848_v45  ;;  %v2149_v60 = vadd.f32 %v2148_v54, %v1856_v46 }
 0x871   : > { %v2079_v61 = vpop.f32.mrf.mxu0  ;;  %v2150_v63 = vpop.f32.mrf.mxu1  ;;  %2630 = vmatpush2.msra.mxu0 %v2325_v52  ;;  %2701 = vmatpush2.msra.mxu1 %v2389_v35 }
 0x872   : > { %v2080_v3 = vadd.f32 %v2079_v61, %v1852_v17  ;;  %v2151_v51 = vadd.f32 %v2150_v63, %v1860_v49  ;;  %2631 = vmatprep.subr.mxu0 %v2324_v55  ;;  %2702 = vmatprep.subr.mxu1 %v2388_v56  ;;  %v2157_v7 = vmax.f32 %v2078_v59, 0.0  ;;  %v2159_v8 = vmax.f32 %v2149_v60, 0.0 }
 0x873   : > { %2632 = vmatpush2.msra.mxu0 %v2323_v57  ;;  %2703 = vmatpush2.msra.mxu1 %v2387_v58 }
 0x874   : > { %v2158_v5 = vmax.f32 %v2080_v3, 0.0  ;;  %v2160_v6 = vmax.f32 %v2151_v51, 0.0  ;;  %2633 = vmatprep.subr.mxu0 %v2322_v2  ;;  %2704 = vmatprep.subr.mxu1 %v2386_v29 }
 0x875   : > { %2634 = vmatpush2.msra.mxu0 %v2321_v50  ;;  %2705 = vmatpush2.msra.mxu1 %v2385_v4 }
 0x876   : > { %2635 = vmatprep.mubr.f32.mxu0 %v2158_v5  ;;  %2706 = vmatprep.mubr.f32.mxu1 %v2160_v6 }
 0x877   : > { %2636 = vmatmul.mubr.f32.vlgmr.msra.gmra.mxu0 %v2157_v7  ;;  %2707 = vmatmul.mubr.f32.vlgmr.msra.gmra.mxu1 %v2159_v8 }
 0x8f6   : > { %v2495_v10 = vpop.f32.mrf.mxu0  ;;  %v2566_v13 = vpop.f32.mrf.mxu1 }
 0x8f7   : > { %v2496_v15 = vadd.f32 %v2495_v10, %v2422_v11 }
 0x8f8   : > { %v2497_v14 = vpop.f32.mrf.mxu0  ;;  %v2568_v20 = vpop.f32.mrf.mxu1 }
 0x8f9   : > { %v2498_v16 = vadd.f32 %v2497_v14, %v2426_v12  ;;  %v2567_v21 = vadd.f32 %v2566_v13, %v2496_v15 }
 0x8fb   : > { %v2569_v26 = vadd.f32 %v2568_v20, %v2498_v16 }
 0x937   : > { %v2637_v24 = vpop.f32.mrf.mxu0  ;;  %v2708_v25 = vpop.f32.mrf.mxu1 }
 0x938   : > { %v2638_v62 = vadd.f32 %v2637_v24, %v2567_v21 }
 0x939   : > { %v2639_v30 = vpop.f32.mrf.mxu0  ;;  %v2710_v19 = vpop.f32.mrf.mxu1 }
 0x93a   : > { %v2709_v0 = vadd.f32 %v2708_v25, %v2638_v62  ;;  %v2640_v31 = vadd.f32 %v2639_v30, %v2569_v26 }
 0x93c   : > { %v2713_v18 = vadd.f32 %v2709_v0, %v3656_v27  ;;  %v2711_v1 = vadd.f32 %v2710_v19, %v2640_v31 }
 0x93e   : > { %2715 = vst [vmem:[%s541_s27] sm:$0xff] %v2713_v18  ;;  %v2714_v33 = vadd.f32 %v2711_v1, %v3658_v28 }
 0x940   : > { %2716 = vst [vmem:[%s541_s27 + $0x8] sm:$0xff] %v2714_v33 }
 0x941   : > { %3243 = shalt.err (!%p3240_p1)
}
 0x942   : > { %s3244_s19 = scalar_lea.hbm %s2730_s9, 256  ;;  %s3248_s18 = scalar_lea.hbm %s3768_s13, 512 }
 0x943   : > { %p3245_p3 = scmp.ne.s32.totalorder %s2730_s9, %s3244_s19  ;;  %p3249_p12 = scmp.lt.s32.totalorder %s2730_s9, %s3768_s13 }
 0x944   : > { %p3250_p10 = scmp.lt.s32.totalorder %s3248_s18, %s3244_s19 }
 0x945   : > { %p3246_p6 = pnand %p3245_p3, %p3804_p2 }
 0x946   : > { %p3251_p7 = por %p3250_p10, %p3249_p12 }
 0x947   : > { %p3247_p11 = pneg %p3246_p6 }
 0x949   : > { %p3252_p5 = pnand %p3251_p7, %p3247_p11 }
 0x94b   : > { %3255 = shalt.err (!%p3252_p5)
}
 0x94c   : > { %2943 = dma.vmem_to_hbm [thread:$0]  (%p3804_p2), %s2733_s3, 256, %s2730_s9, %s2718_s15  }
 0x94d PF: > { %s2744_s16 = sand.u32 1, %s3294_s25   ;;  %p3805_p8 = scmp.ne.s32.totalorder %s3794_s20, 0 }
 0x94e   : > { %p3806_p9 = scmp.ge.s32.totalorder %s3306_s28, 2  ;;  %s2745_s27 = scalar_lea.sflag [#allocation4], %s2744_s16 }
 0x950   : > { %p2969_p4 = pnand %p3806_p9, %p3805_p8 }
 0x952   : > { %p2970_p13 = pneg %p2969_p4 }
 0x954   : > { %3289 = dma.done.wait (%p2970_p13), %s2745_s27, 256  }
 0x955   : > { %3291 = vsyncadd (%p2970_p13), %s2745_s27, 4294967040  ;;  %s3807_s4 = sld [smem:[#allocation20_spill]]  ;;  %p29_p0 = scmp.ge.s32.totalorder %s3506_s21, 4  }
 0x956   : > { %s3808_s27 = sld [smem:[#allocation21_spill]]  ;;  %s3809_s25 = smov %s3298_s26 }
 0x957   : > { %s3811_s28 = smov %s3506_s21  ;;  %31 = sbr.rel (!%p29_p0) target bundleno = 15 (0xf), region = 141 }
 0x95b   : > { %s3810_s26 = smov %s3807_s4 }
 0x95c   :  { %2750 = vsyncpa [#allocation3], 1 }
 0x95d   :  { %2752 = vsyncpa [#allocation3 + $0x1], 1 }
 0x95e   :  { %2753 = vsyncpa [#allocation6], 1 }
 0x95f   :  { %2754 = vsyncpa [#allocation9], 1 }
 0x960   :  { %2755 = vsyncpa [#allocation12], 1 }
 0x961   :  { %2756 = vsyncpa [#allocation4], 1 }
 0x962   :  { %2758 = vsyncpa [#allocation4 + $0x1], 1 }

</bundles_post_ra>
